<compile_context>
chip_gen: v5e
topology: v5e:2x2
jax: 0.10.0
libtpu: 0.0.40
codegen_flags: <defaults>
</compile_context>

<pallas_src>
import numpy as np
import jax
import jax.numpy as jnp
from jax.experimental import pallas as pl
from jax.experimental.pallas import tpu as pltpu

# ----- config (AtstFeatureExtractor defaults) -----
N_MELS = 64
N_FFT = 1024
HOP = 160
WIN_LENGTH = 1024
FMIN = 60.0
FMAX = 7800.0
SR = 16000
N_FREQS = N_FFT // 2 + 1          # 513

N_FREQS_KEPT = 500                # bins >= 500 (>= 7812.5 Hz) have all-zero mel weights
N_FREQS_PAD = 512                 # 500 padded up to a lane multiple
N_MELS_PAD = 128                  # 64 padded up to 128 (lane-dense output)

AMIN = 1e-10                      # AmplitudeToDB amin
TOP_DB = 80.0                     # AmplitudeToDB top_db
CLAMP_MIN = -50.0                 # ATSTNorm.amp2db clamp
CLAMP_MAX = 80.0
SC_MIN = -79.6482                 # MinMax scaler
SC_MAX = 50.6842


# ----- deterministic "parameters" (windowed DFT matrix, mel filterbank) -----
def _hann_window(win_length):
    # torch.hann_window default (periodic=True)
    n = np.arange(win_length, dtype=np.float64)
    return 0.5 - 0.5 * np.cos(2.0 * np.pi * n / win_length)


def _dft_matrices(n_fft):
    """Raw (un-windowed) real-DFT cos/sin matrices, (n_fft, n_fft//2+1)."""
    n = np.arange(n_fft, dtype=np.float64)[:, None]
    k = np.arange(n_fft // 2 + 1, dtype=np.float64)[None, :]
    ang = -2.0 * np.pi * n * k / n_fft
    return np.cos(ang), np.sin(ang)


def _mel_fbanks(n_freqs, f_min, f_max, n_mels, sr):
    # torchaudio.functional.melscale_fbanks, mel_scale='htk', norm=None
    all_freqs = np.linspace(0.0, sr / 2.0, n_freqs)

    def hz_to_mel(f):
        return 2595.0 * np.log10(1.0 + f / 700.0)

    def mel_to_hz(m):
        return 700.0 * (10.0 ** (m / 2595.0) - 1.0)

    m_pts = np.linspace(hz_to_mel(f_min), hz_to_mel(f_max), n_mels + 2)
    f_pts = mel_to_hz(m_pts)
    f_diff = f_pts[1:] - f_pts[:-1]                         # (n_mels+1,)
    slopes = f_pts[None, :] - all_freqs[:, None]            # (n_freqs, n_mels+2)
    down = -slopes[:, :-2] / f_diff[:-1]
    up = slopes[:, 2:] / f_diff[1:]
    fb = np.maximum(0.0, np.minimum(down, up))              # (n_freqs, n_mels)
    return fb.astype(np.float32)


def build_params():
    win = _hann_window(WIN_LENGTH)                          # float64
    cos, sin = _dft_matrices(N_FFT)                         # raw, (1024, 513)
    fb = _mel_fbanks(N_FREQS, FMIN, FMAX, N_MELS, SR)       # (513, 64)

    # Exactness guard for the 513 -> 500 frequency truncation (review concern):
    assert float(np.abs(fb[N_FREQS_KEPT:]).max()) == 0.0, \
        "frequency truncation no longer exact; adjust N_FREQS_KEPT"

    # Kernel RHS: [diag(win) @ cos | diag(win) @ sin], truncated + zero padded -> (1024, 1024)
    wcs = np.zeros((N_FFT, 2 * N_FREQS_PAD), dtype=np.float64)
    wcs[:, :N_FREQS_KEPT] = cos[:, :N_FREQS_KEPT] * win[:, None]
    wcs[:, N_FREQS_PAD:N_FREQS_PAD + N_FREQS_KEPT] = sin[:, :N_FREQS_KEPT] * win[:, None]

    fb_pad = np.zeros((N_FREQS_PAD, N_MELS_PAD), dtype=np.float32)
    fb_pad[:N_FREQS_KEPT, :N_MELS] = fb[:N_FREQS_KEPT]

    # Reference params: window applied ONCE to the frames, RAW cos/sin matrices.
    ref_params = (jnp.asarray(win.astype(np.float32))[None, :],
                  jnp.asarray(cos.astype(np.float32)),
                  jnp.asarray(sin.astype(np.float32)),
                  jnp.asarray(fb))
    return jnp.asarray(wcs.astype(np.float32)), jnp.asarray(fb_pad), ref_params


# ----- kernel: windowed rDFT power spectrum + mel projection + power-dB (+ per-tile max) -----
def mel_db_kernel(frames_ref, wcs_ref, fb_ref, db_ref, tmax_ref):
    x = frames_ref[0]                                            # (TN, n_fft)
    # (TN, n_fft) @ (n_fft, 2*512) -> [Re | Im]; Hann window folded into wcs.
    cs = jnp.dot(x, wcs_ref[...], preferred_element_type=jnp.float32)   # (TN, 1024)
    re = cs[:, :N_FREQS_PAD]
    im = cs[:, N_FREQS_PAD:]
    power = re * re + im * im                                    # |X|^2, zero in pad cols
    mel = jnp.dot(power, fb_ref[...], preferred_element_type=jnp.float32)  # (TN, 128)
    db = 10.0 * jnp.log10(jnp.maximum(mel, AMIN))                # AmplitudeToDB (ref=1.0)
    db_ref[0] = db
    # Per-tile max for the top_db floor (pad rows/cols are exactly -100 dB, never above real max).
    tmax_ref[0] = jnp.broadcast_to(jnp.max(db), (8, N_MELS_PAD))


def _pick_frame_tile(T):
    """Frame-row tile: MXU-sized on v6e/v7x (256x256 MXU), 128 elsewhere; shrink for short clips."""
    kind = ""
    try:
        kind = jax.devices()[0].device_kind.lower()
    except Exception:
        pass
    tn = 256 if ("v6" in kind or "v7" in kind or "7x" in kind) else 128
    tn = min(tn, max(8, -(-T // 8) * 8))      # don't pad tiny clips to a full MXU tile
    return tn


def atst_feature_extractor(wavs, w_cs, fb_pad):
    B, n_samples = wavs.shape
    pad = N_FFT // 2
    # center=True, pad_mode='reflect' (torchaudio Spectrogram default)
    padded = jnp.pad(wavs, ((0, 0), (pad, pad)), mode="reflect")
    T = n_samples // HOP + 1
    # TODO(synk): build frames in-kernel from the padded waveform (memory_space=pl.ANY + manual
    #             DMA of a ((TN-1)*HOP + N_FFT)-sample chunk) to remove this 6.4x-redundant gather.
    idx = jnp.arange(T)[:, None] * HOP + jnp.arange(N_FFT)[None, :]
    frames = padded[:, idx]                                      # (B, T, n_fft) f32

    tn = _pick_frame_tile(T)
    nt = -(-T // tn)
    T_pad = nt * tn
    frames = jnp.pad(frames, ((0, 0), (0, T_pad - T), (0, 0)))   # (B, T_pad, n_fft)

    db, tmax = pl.pallas_call(
        mel_db_kernel,
        out_shape=(
            jax.ShapeDtypeStruct((B, T_pad, N_MELS_PAD), jnp.float32),
            jax.ShapeDtypeStruct((B, nt * 8, N_MELS_PAD), jnp.float32),
        ),
        grid_spec=pltpu.PrefetchScalarGridSpec(
            num_scalar_prefetch=0,
            grid=(B, nt),
            in_specs=[
                pl.BlockSpec((1, tn, N_FFT), lambda b, i: (b, i, 0)),
                # Grid-invariant weights: single buffer (no benefit from double-buffering).
                pl.BlockSpec((N_FFT, 2 * N_FREQS_PAD), lambda b, i: (0, 0),
                             pipeline_mode=pl.Buffered(1)),
                pl.BlockSpec((N_FREQS_PAD, N_MELS_PAD), lambda b, i: (0, 0),
                             pipeline_mode=pl.Buffered(1)),
            ],
            out_specs=(
                pl.BlockSpec((1, tn, N_MELS_PAD), lambda b, i: (b, i, 0)),
                pl.BlockSpec((1, 8, N_MELS_PAD), lambda b, i: (b, i, 0)),
            ),
        ),
        compiler_params=pltpu.CompilerParams(
            dimension_semantics=("parallel", "parallel"),
            vmem_limit_bytes=32 * 1024 * 1024),
    )(frames, w_cs, fb_pad)

    # top_db floor per batch item (torchaudio amplitude_to_DB per-channel max) + clamp + MinMax,
    # done in fused jnp on the small valid (B, T, 64) slice; the per-item max comes from the
    # kernel's per-tile max output (no extra full read of the dB array).
    db = db[:, :T, :N_MELS]                                      # (B, T, 64)
    gmax = jnp.max(tmax, axis=(1, 2))[:, None, None]             # (B, 1, 1)
    x = jnp.maximum(db, gmax - TOP_DB)
    x = jnp.clip(x, CLAMP_MIN, CLAMP_MAX)
    out = (x - SC_MIN) / (SC_MAX - SC_MIN) * 2.0 - 1.0
    # (B, T, n_mels) -> (B, n_mels, T) to match torchaudio MelSpectrogram layout
    return out.transpose(0, 2, 1)


# ----- pure-JAX reference (raw DFT matrices, window applied once, HIGHEST precision) -----
def reference(wavs, window, cos_m, sin_m, fb):
    B, n_samples = wavs.shape
    pad = N_FFT // 2
    padded = jnp.pad(wavs, ((0, 0), (pad, pad)), mode="reflect")
    T = n_samples // HOP + 1
    idx = jnp.arange(T)[:, None] * HOP + jnp.arange(N_FFT)[None, :]
    frames = padded[:, idx] * window                             # (B, T, n_fft), windowed ONCE
    hi = jax.lax.Precision.HIGHEST
    re = jnp.einsum("btn,nf->btf", frames, cos_m, precision=hi)
    im = jnp.einsum("btn,nf->btf", frames, sin_m, precision=hi)
    power = re * re + im * im
    mel = jnp.einsum("btf,fm->btm", power, fb, precision=hi)     # (B, T, 64)
    db = 10.0 * jnp.log10(jnp.maximum(mel, AMIN))
    db = jnp.maximum(db, jnp.max(db, axis=(1, 2), keepdims=True) - TOP_DB)
    db = jnp.clip(db, CLAMP_MIN, CLAMP_MAX)
    out = (db - SC_MIN) / (SC_MAX - SC_MIN) * 2.0 - 1.0
    return out.transpose(0, 2, 1)


if __name__ == "__main__":
    key = jax.random.PRNGKey(0)
    B, n_samples = 2, 1600  # 0.1 s of 16 kHz audio -> 11 frames
    wavs = jax.random.normal(key, (B, n_samples), dtype=jnp.float32)

    w_cs, fb_pad, ref_params = build_params()

    fn = jax.jit(atst_feature_extractor)
    out = jax.block_until_ready(fn(wavs, w_cs, fb_pad))

    ref = jax.block_until_ready(reference(wavs, *ref_params))
    np.testing.assert_allclose(np.asarray(out), np.asarray(ref),
                               atol=2e-3, rtol=2e-3)
    print("KERNEL_OK")
</pallas_src>

<mosaic_0001>
module attributes {stable_mosaic.version = 11 : i64} {
  func.func @mel_db_kernel(%arg0: i32, %arg1: i32, %arg2: memref<1x16x1024xf32, #tpu.memory_space<vmem>>, %arg3: memref<1024x1024xf32, #tpu.memory_space<vmem>>, %arg4: memref<512x128xf32, #tpu.memory_space<vmem>>, %arg5: memref<1x16x128xf32, #tpu.memory_space<vmem>>, %arg6: memref<1x8x128xf32, #tpu.memory_space<vmem>>) attributes {dimension_semantics = [#tpu.dimension_semantics<parallel>, #tpu.dimension_semantics<parallel>], iteration_bounds = array<i64: 2, 1>, scalar_prefetch = 0 : i64, scratch_operands = 0 : i64, tpu.core_type = #tpu.core_type<tc>, window_params = [{transform_indices = @transform_0, window_bounds = array<i64: 1, 16, 1024>}, {pipeline_mode = #tpu.pipeline_mode<synchronous>, transform_indices = @transform_1, window_bounds = array<i64: 1024, 1024>}, {pipeline_mode = #tpu.pipeline_mode<synchronous>, transform_indices = @transform_2, window_bounds = array<i64: 512, 128>}, {transform_indices = @transform_3, window_bounds = array<i64: 1, 16, 128>}, {transform_indices = @transform_4, window_bounds = array<i64: 1, 8, 128>}]} {
    %c0 = arith.constant 0 : index
    %c0_0 = arith.constant 0 : index
    %c0_1 = arith.constant 0 : index
    %0 = vector.load %arg2[%c0, %c0_0, %c0_1] : memref<1x16x1024xf32, #tpu.memory_space<vmem>>, vector<1x16x1024xf32>
    %1 = vector.shape_cast %0 : vector<1x16x1024xf32> to vector<16x1024xf32>
    %c0_2 = arith.constant 0 : index
    %c0_3 = arith.constant 0 : index
    %2 = vector.load %arg3[%c0_2, %c0_3] : memref<1024x1024xf32, #tpu.memory_space<vmem>>, vector<1024x1024xf32>
    %cst = arith.constant dense<0.000000e+00> : vector<16x1024xf32>
    %3 = tpu.matmul %1, %2, %cst {dimension_numbers = #tpu.dot_dimension_numbers<[1], [0], [0], [1], [0, 0, 1, 1], [], []>} : vector<16x1024xf32>, vector<1024x1024xf32>, vector<16x1024xf32> -> vector<16x1024xf32>
    %4 = vector.extract_strided_slice %3 {offsets = [0, 0], sizes = [16, 512], strides = [1, 1]} : vector<16x1024xf32> to vector<16x512xf32>
    %5 = vector.extract_strided_slice %3 {offsets = [0, 512], sizes = [16, 512], strides = [1, 1]} : vector<16x1024xf32> to vector<16x512xf32>
    %6 = arith.mulf %4, %4 : vector<16x512xf32>
    %7 = arith.mulf %5, %5 : vector<16x512xf32>
    %8 = arith.addf %6, %7 : vector<16x512xf32>
    %c0_4 = arith.constant 0 : index
    %c0_5 = arith.constant 0 : index
    %9 = vector.load %arg4[%c0_4, %c0_5] : memref<512x128xf32, #tpu.memory_space<vmem>>, vector<512x128xf32>
    %cst_6 = arith.constant dense<0.000000e+00> : vector<16x128xf32>
    %10 = tpu.matmul %8, %9, %cst_6 {dimension_numbers = #tpu.dot_dimension_numbers<[1], [0], [0], [1], [0, 0, 1, 1], [], []>} : vector<16x512xf32>, vector<512x128xf32>, vector<16x128xf32> -> vector<16x128xf32>
    %cst_7 = arith.constant 1.000000e-10 : f32
    %11 = vector.broadcast %cst_7 : f32 to vector<16x128xf32>
    %12 = arith.maximumf %10, %11 : vector<16x128xf32>
    %13 = math.log %12 : vector<16x128xf32>
    %cst_8 = arith.constant 0.434294492 : f32
    %14 = vector.broadcast %cst_8 : f32 to vector<16x128xf32>
    %15 = arith.mulf %13, %14 : vector<16x128xf32>
    %cst_9 = arith.constant 1.000000e+01 : f32
    %16 = vector.broadcast %cst_9 : f32 to vector<16x128xf32>
    %17 = arith.mulf %16, %15 : vector<16x128xf32>
    %c0_10 = arith.constant 0 : index
    %c0_11 = arith.constant 0 : index
    %c0_12 = arith.constant 0 : index
    %18 = vector.load %arg5[%c0_10, %c0_11, %c0_12] : memref<1x16x128xf32, #tpu.memory_space<vmem>>, vector<1x16x128xf32>
    %19 = vector.shape_cast %18 : vector<1x16x128xf32> to vector<16x128xf32>
    %20 = vector.shape_cast %17 : vector<16x128xf32> to vector<1x16x128xf32>
    tpu.vector_store %arg5[%c0_10, %c0_11, %c0_12], %20 {strides = array<i32>} : memref<1x16x128xf32, #tpu.memory_space<vmem>>, vector<1x16x128xf32>,
    %21 = vector.shape_cast %17 : vector<16x128xf32> to vector<1x16x128xf32>
    %cst_13 = arith.constant dense<0xFF800000> : vector<1xf32>
    %22 = vector.multi_reduction <maximumf>, %21, %cst_13 [1, 2] : vector<1x16x128xf32> to vector<1xf32>
    %23 = vector.shape_cast %22 : vector<1xf32> to vector<1x1x1xf32>
    %24 = vector.extract %23[0, 0, 0] : f32 from vector<1x1x1xf32>
    %25 = vector.broadcast %24 : f32 to vector<8x128xf32>
    %c0_14 = arith.constant 0 : index
    %c0_15 = arith.constant 0 : index
    %c0_16 = arith.constant 0 : index
    %26 = vector.load %arg6[%c0_14, %c0_15, %c0_16] : memref<1x8x128xf32, #tpu.memory_space<vmem>>, vector<1x8x128xf32>
    %27 = vector.shape_cast %26 : vector<1x8x128xf32> to vector<8x128xf32>
    %28 = vector.shape_cast %25 : vector<8x128xf32> to vector<1x8x128xf32>
    tpu.vector_store %arg6[%c0_14, %c0_15, %c0_16], %28 {strides = array<i32>} : memref<1x8x128xf32, #tpu.memory_space<vmem>>, vector<1x8x128xf32>,
    return
  }
  func.func @transform_0(%arg0: i32, %arg1: i32) -> (i32, i32, i32) {
    %c0_i32 = arith.constant 0 : i32
    %c0_i32_0 = arith.constant 0 : i32
    return %arg0, %arg1, %c0_i32 : i32, i32, i32
  }
  func.func @transform_1(%arg0: i32, %arg1: i32) -> (i32, i32) {
    %c0_i32 = arith.constant 0 : i32
    %c0_i32_0 = arith.constant 0 : i32
    %c0_i32_1 = arith.constant 0 : i32
    return %c0_i32, %c0_i32_0 : i32, i32
  }
  func.func @transform_2(%arg0: i32, %arg1: i32) -> (i32, i32) {
    %c0_i32 = arith.constant 0 : i32
    %c0_i32_0 = arith.constant 0 : i32
    %c0_i32_1 = arith.constant 0 : i32
    return %c0_i32, %c0_i32_0 : i32, i32
  }
  func.func @transform_3(%arg0: i32, %arg1: i32) -> (i32, i32, i32) {
    %c0_i32 = arith.constant 0 : i32
    %c0_i32_0 = arith.constant 0 : i32
    return %arg0, %arg1, %c0_i32 : i32, i32, i32
  }
  func.func @transform_4(%arg0: i32, %arg1: i32) -> (i32, i32, i32) {
    %c0_i32 = arith.constant 0 : i32
    %c0_i32_0 = arith.constant 0 : i32
    return %arg0, %arg1, %c0_i32 : i32, i32, i32
  }
}

</mosaic_0001>

<bundles_post_ra>
// kernel: atst_feature_extractor.1
= control target key start
LH: loop header
LB: loop body
LE: loop exit
PB: predicated region body
PF: predicated region fallthrough
CT: control target
= control target key end

     0   :  { %s3247_s15 = smov 0   ;;  %s3249_s16 = smov 0   ;;  %s7043_s0 = inlined_call_operand.vmem [shape: f32[2,16,1024], index: 0, kind: input, shape index: {}]   ;;  %s7044_s1 = inlined_call_operand.vmem [shape: f32[1024,1024], index: 1, kind: input, shape index: {}]   ;;  %s7045_s2 = inlined_call_operand.vmem [shape: f32[512,128], index: 2, kind: input, shape index: {}]   ;;  %s7046_s3 = inlined_call_operand.vmem [shape: f32[2,16,128], index: 3, kind: output, shape index: {0}]   ;;  %s7047_s4 = inlined_call_operand.vmem [shape: f32[2,8,128], index: 4, kind: output, shape index: {1}]  }
   0x1   :  { %s3251_s17 = smov 0  }
   0x2 LB: > { %s27_s18 = sadd.s32 1, %s3216_s16  ;;  %p3110_p0 = scmp.ge.s32.totalorder %s3220_s17, 1  ;;  %s3220_s17 = sphi %s3251_s17, %s15_s17   ;;  %s3216_s16 = sphi %s3249_s16, %s7063_s16   ;;  %s3212_s15 = sphi %s3247_s15, %s7062_s15  }
   0x3   : > { %p29_p1 = scmp.ge.s32.totalorder %s27_s18, 2  ;;  %p189_p2 = scmp.lt.s32.totalorder %s3220_s17, 3 }
   0x5   : > { %s7065_s18 = smov (%p29_p1, %s27_s18), 0  ;;  %p190_p3 = pnand %p3110_p0, %p189_p2 }
   0x7   : > { %193 = sbr.rel (%p190_p3) target bundleno = 1306 (0x51a), region = 32 }
   0xc   : > { %v395_v0 = vld [vmem:[%s7044_s1 + $0x3c0] sm:$0xff]  ;;  %p232_p4 = scmp.lt.s32.totalorder %s3212_s15, 1 }
   0xd   : > { %v523_v1 = vld [vmem:[%s7044_s1 + $0x7c0] sm:$0xff]  ;;  %1299 = vmatpush.msra.mxu0 %v395_v0 }
   0xe   : > { %v651_v2 = vld [vmem:[%s7044_s1 + $0xbc0] sm:$0xff]  ;;  %1322 = vmatpush.msra.mxu1 %v523_v1  ;;  %s7067_s15 = smov (!%p232_p4, %s3212_s15), 1 }
   0xf   : > { %v387_v3 = vld [vmem:[%s7044_s1 + $0x380] sm:$0xff]  ;;  %1345 = vmatpush.msra.mxu2 %v651_v2  ;;  %s3118_s11 = sshll.u32 %s7067_s15, 7  ;;  %s3119_s21 = sshll.u32 %s7067_s15, 4 }
  0x10   : > { %v515_v4 = vld [vmem:[%s7044_s1 + $0x780] sm:$0xff]  ;;  %1300 = vmatpush.msra.mxu0 %v387_v3  ;;  %s3586_s30 = scalar_lea.vmem %s7043_s0, %s3118_s11  ;;  %s250_s24 = scalar_lea.vmem %s7046_s3, %s3119_s21 }
  0x11   : > { %v643_v5 = vld [vmem:[%s7044_s1 + $0xb80] sm:$0xff]  ;;  %1323 = vmatpush.msra.mxu1 %v515_v4  ;;  %s3115_s25 = sshll.u32 %s7067_s15, 3 }
  0x12   : > { %v779_v6 = vld [vmem:[%s7044_s1 + $0xfc0] sm:$0xff]  ;;  %1346 = vmatpush.msra.mxu2 %v643_v5  ;;  %s258_s28 = scalar_lea.vmem %s7047_s4, %s3115_s25 }
  0x13   : > { %v379_v7 = vld [vmem:[%s7044_s1 + $0x340] sm:$0xff]  ;;  %1368 = vmatpush.msra.mxu3 %v779_v6 }
  0x14   : > { %v507_v8 = vld [vmem:[%s7044_s1 + $0x740] sm:$0xff]  ;;  %1301 = vmatpush.msra.mxu0 %v379_v7 }
  0x15   : > { %v635_v9 = vld [vmem:[%s7044_s1 + $0xb40] sm:$0xff]  ;;  %1324 = vmatpush.msra.mxu1 %v507_v8 }
  0x16   : > { %v771_v10 = vld [vmem:[%s7044_s1 + $0xf80] sm:$0xff]  ;;  %1347 = vmatpush.msra.mxu2 %v635_v9 }
  0x17   : > { %v371_v11 = vld [vmem:[%s7044_s1 + $0x300] sm:$0xff]  ;;  %1369 = vmatpush.msra.mxu3 %v771_v10 }
  0x18   : > { %v499_v12 = vld [vmem:[%s7044_s1 + $0x700] sm:$0xff]  ;;  %1302 = vmatpush.msra.mxu0 %v371_v11 }
  0x19   : > { %v627_v13 = vld [vmem:[%s7044_s1 + $0xb00] sm:$0xff]  ;;  %1325 = vmatpush.msra.mxu1 %v499_v12 }
  0x1a   : > { %v763_v14 = vld [vmem:[%s7044_s1 + $0xf40] sm:$0xff]  ;;  %1348 = vmatpush.msra.mxu2 %v627_v13 }
  0x1b   : > { %v363_v15 = vld [vmem:[%s7044_s1 + $0x2c0] sm:$0xff]  ;;  %1370 = vmatpush.msra.mxu3 %v763_v14 }
  0x1c   : > { %v491_v16 = vld [vmem:[%s7044_s1 + $0x6c0] sm:$0xff]  ;;  %1303 = vmatpush.msra.mxu0 %v363_v15 }
  0x1d   : > { %v619_v17 = vld [vmem:[%s7044_s1 + $0xac0] sm:$0xff]  ;;  %1326 = vmatpush.msra.mxu1 %v491_v16 }
  0x1e   : > { %v755_v18 = vld [vmem:[%s7044_s1 + $0xf00] sm:$0xff]  ;;  %1349 = vmatpush.msra.mxu2 %v619_v17 }
  0x1f   : > { %v355_v19 = vld [vmem:[%s7044_s1 + $0x280] sm:$0xff]  ;;  %1371 = vmatpush.msra.mxu3 %v755_v18 }
  0x20   : > { %v483_v20 = vld [vmem:[%s7044_s1 + $0x680] sm:$0xff]  ;;  %1304 = vmatpush.msra.mxu0 %v355_v19 }
  0x21   : > { %v611_v21 = vld [vmem:[%s7044_s1 + $0xa80] sm:$0xff]  ;;  %1327 = vmatpush.msra.mxu1 %v483_v20 }
  0x22   : > { %v747_v22 = vld [vmem:[%s7044_s1 + $0xec0] sm:$0xff]  ;;  %1350 = vmatpush.msra.mxu2 %v611_v21 }
  0x23   : > { %v347_v23 = vld [vmem:[%s7044_s1 + $0x240] sm:$0xff]  ;;  %1372 = vmatpush.msra.mxu3 %v747_v22 }
  0x24   : > { %v475_v24 = vld [vmem:[%s7044_s1 + $0x640] sm:$0xff]  ;;  %1305 = vmatpush.msra.mxu0 %v347_v23 }
  0x25   : > { %v603_v25 = vld [vmem:[%s7044_s1 + $0xa40] sm:$0xff]  ;;  %1328 = vmatpush.msra.mxu1 %v475_v24 }
  0x26   : > { %v739_v26 = vld [vmem:[%s7044_s1 + $0xe80] sm:$0xff]  ;;  %1351 = vmatpush.msra.mxu2 %v603_v25 }
  0x27   : > { %v339_v27 = vld [vmem:[%s7044_s1 + $0x200] sm:$0xff]  ;;  %1373 = vmatpush.msra.mxu3 %v739_v26 }
  0x28   : > { %v467_v28 = vld [vmem:[%s7044_s1 + $0x600] sm:$0xff]  ;;  %1306 = vmatpush.msra.mxu0 %v339_v27 }
  0x29   : > { %v595_v29 = vld [vmem:[%s7044_s1 + $0xa00] sm:$0xff]  ;;  %1329 = vmatpush.msra.mxu1 %v467_v28 }
  0x2a   : > { %v731_v30 = vld [vmem:[%s7044_s1 + $0xe40] sm:$0xff]  ;;  %1352 = vmatpush.msra.mxu2 %v595_v29 }
  0x2b   : > { %v331_v31 = vld [vmem:[%s7044_s1 + $0x1c0] sm:$0xff]  ;;  %1374 = vmatpush.msra.mxu3 %v731_v30 }
  0x2c   : > { %v459_v32 = vld [vmem:[%s7044_s1 + $0x5c0] sm:$0xff]  ;;  %1307 = vmatpush.msra.mxu0 %v331_v31 }
  0x2d   : > { %v587_v33 = vld [vmem:[%s7044_s1 + $0x9c0] sm:$0xff]  ;;  %1330 = vmatpush.msra.mxu1 %v459_v32 }
  0x2e   : > { %v723_v34 = vld [vmem:[%s7044_s1 + $0xe00] sm:$0xff]  ;;  %1353 = vmatpush.msra.mxu2 %v587_v33 }
  0x2f   : > { %v323_v35 = vld [vmem:[%s7044_s1 + $0x180] sm:$0xff]  ;;  %1375 = vmatpush.msra.mxu3 %v723_v34 }
  0x30   : > { %v451_v36 = vld [vmem:[%s7044_s1 + $0x580] sm:$0xff]  ;;  %1308 = vmatpush.msra.mxu0 %v323_v35 }
  0x31   : > { %v579_v37 = vld [vmem:[%s7044_s1 + $0x980] sm:$0xff]  ;;  %1331 = vmatpush.msra.mxu1 %v451_v36 }
  0x32   : > { %v715_v38 = vld [vmem:[%s7044_s1 + $0xdc0] sm:$0xff]  ;;  %1354 = vmatpush.msra.mxu2 %v579_v37 }
  0x33   : > { %v315_v39 = vld [vmem:[%s7044_s1 + $0x140] sm:$0xff]  ;;  %1376 = vmatpush.msra.mxu3 %v715_v38 }
  0x34   : > { %v443_v40 = vld [vmem:[%s7044_s1 + $0x540] sm:$0xff]  ;;  %1309 = vmatpush.msra.mxu0 %v315_v39 }
  0x35   : > { %v571_v41 = vld [vmem:[%s7044_s1 + $0x940] sm:$0xff]  ;;  %1332 = vmatpush.msra.mxu1 %v443_v40 }
  0x36   : > { %v707_v42 = vld [vmem:[%s7044_s1 + $0xd80] sm:$0xff]  ;;  %1355 = vmatpush.msra.mxu2 %v571_v41 }
  0x37   : > { %v307_v43 = vld [vmem:[%s7044_s1 + $0x100] sm:$0xff]  ;;  %1377 = vmatpush.msra.mxu3 %v707_v42 }
  0x38   : > { %v435_v44 = vld [vmem:[%s7044_s1 + $0x500] sm:$0xff]  ;;  %1310 = vmatpush.msra.mxu0 %v307_v43  ;;  %v3601_v43 = vld [vmem:[%s3586_s30 + $0x10] sm:$0xff] }
  0x39   : > { %v563_v45 = vld [vmem:[%s7044_s1 + $0x900] sm:$0xff]  ;;  %1333 = vmatpush.msra.mxu1 %v435_v44 }
  0x3a   : > { %v699_v46 = vld [vmem:[%s7044_s1 + $0xd40] sm:$0xff]  ;;  %1356 = vmatpush.msra.mxu2 %v563_v45 }
  0x3b   : > { %v299_v47 = vld [vmem:[%s7044_s1 + $0xc0] sm:$0xff]  ;;  %1378 = vmatpush.msra.mxu3 %v699_v46 }
  0x3c   : > { %v427_v48 = vld [vmem:[%s7044_s1 + $0x4c0] sm:$0xff]  ;;  %1311 = vmatpush.msra.mxu0 %v299_v47 }
  0x3d   : > { %v555_v49 = vld [vmem:[%s7044_s1 + $0x8c0] sm:$0xff]  ;;  %1334 = vmatpush.msra.mxu1 %v427_v48 }
  0x3e   : > { %v691_v50 = vld [vmem:[%s7044_s1 + $0xd00] sm:$0xff]  ;;  %1357 = vmatpush.msra.mxu2 %v555_v49  ;;  %v3620_v49 = vld [vmem:[%s3586_s30 + $0x18] sm:$0xff] }
  0x3f   : > { %v291_v51 = vld [vmem:[%s7044_s1 + $0x80] sm:$0xff]  ;;  %1379 = vmatpush.msra.mxu3 %v691_v50 }
  0x40   : > { %v419_v52 = vld [vmem:[%s7044_s1 + $0x480] sm:$0xff]  ;;  %1312 = vmatpush.msra.mxu0 %v291_v51 }
  0x41   : > { %v547_v53 = vld [vmem:[%s7044_s1 + $0x880] sm:$0xff]  ;;  %1335 = vmatpush.msra.mxu1 %v419_v52 }
  0x42   : > { %v683_v54 = vld [vmem:[%s7044_s1 + $0xcc0] sm:$0xff]  ;;  %1358 = vmatpush.msra.mxu2 %v547_v53 }
  0x43   : > { %v283_v55 = vld [vmem:[%s7044_s1 + $0x40] sm:$0xff]  ;;  %1380 = vmatpush.msra.mxu3 %v683_v54  ;;  %v3636_v54 = vld [vmem:[%s3586_s30 + $0x8] sm:$0xff] }
  0x44   : > { %v411_v56 = vld [vmem:[%s7044_s1 + $0x440] sm:$0xff]  ;;  %1313 = vmatpush.msra.mxu0 %v283_v55 }
  0x45   : > { %v539_v57 = vld [vmem:[%s7044_s1 + $0x840] sm:$0xff]  ;;  %1336 = vmatpush.msra.mxu1 %v411_v56 }
  0x46   : > { %v675_v58 = vld [vmem:[%s7044_s1 + $0xc80] sm:$0xff]  ;;  %1359 = vmatpush.msra.mxu2 %v539_v57 }
  0x47   : > { %v275_v59 = vld [vmem:[%s7044_s1] sm:$0xff]  ;;  %1381 = vmatpush.msra.mxu3 %v675_v58 }
  0x48   : > { %v403_v60 = vld [vmem:[%s7044_s1 + $0x400] sm:$0xff]  ;;  %1314 = vmatpush.msra.mxu0 %v275_v59 }
  0x49   : > { %v531_v61 = vld [vmem:[%s7044_s1 + $0x800] sm:$0xff]  ;;  %1337 = vmatpush.msra.mxu1 %v403_v60 }
  0x4a   : > { %v667_v62 = vld [vmem:[%s7044_s1 + $0xc40] sm:$0xff]  ;;  %1360 = vmatpush.msra.mxu2 %v531_v61  ;;  %1338 = vmatmul.f32.vlgmr.msra.gmra.mxu1 %v3636_v54 }
  0x4b   : > { %v907_v63 = vld [vmem:[%s7044_s1 + $0x13c0] sm:$0xff]  ;;  %1382 = vmatpush.msra.mxu3 %v667_v62  ;;  %1361 = vmatmul.f32.vlgmr.msra.gmra.mxu2 %v3601_v43 }
  0x4c   : > { %v1035_v0 = vld [vmem:[%s7044_s1 + $0x17c0] sm:$0xff]  ;;  %1391 = vmatpush.msrb.mxu0 %v907_v63  ;;  %v3665_v63 = vld [vmem:[%s3586_s30 + $0x50] sm:$0xff] }
  0x4d   : > { %v1163_v1 = vld [vmem:[%s7044_s1 + $0x1bc0] sm:$0xff]  ;;  %1414 = vmatpush.msrb.mxu1 %v1035_v0 }
  0x4e   : > { %v659_v2 = vld [vmem:[%s7044_s1 + $0xc00] sm:$0xff]  ;;  %1437 = vmatpush.msrb.mxu2 %v1163_v1 }
  0x4f   : > { %v899_v3 = vld [vmem:[%s7044_s1 + $0x1380] sm:$0xff]  ;;  %1383 = vmatpush.msra.mxu3 %v659_v2 }
  0x50   : > { %v1027_v4 = vld [vmem:[%s7044_s1 + $0x1780] sm:$0xff]  ;;  %1392 = vmatpush.msrb.mxu0 %v899_v3  ;;  %1384 = vmatmul.f32.vlgmr.msra.gmra.mxu3 %v3620_v49 }
  0x51   : > { %v1155_v5 = vld [vmem:[%s7044_s1 + $0x1b80] sm:$0xff]  ;;  %1415 = vmatpush.msrb.mxu1 %v1027_v4 }
  0x52   : > { %v1291_v6 = vld [vmem:[%s7044_s1 + $0x1fc0] sm:$0xff]  ;;  %1438 = vmatpush.msrb.mxu2 %v1155_v5  ;;  %v3684_v5 = vld [vmem:[%s3586_s30 + $0x58] sm:$0xff] }
  0x53   : > { %v891_v7 = vld [vmem:[%s7044_s1 + $0x1340] sm:$0xff]  ;;  %1460 = vmatpush.msrb.mxu3 %v1291_v6  ;;  %1364 = vmatmul.f32.gmra.mxu2 %v3665_v63  ;;  %v396_v6 = vld [vmem:[%s7044_s1 + $0x3c8] sm:$0xff] }
  0x54   : > { %v1019_v8 = vld [vmem:[%s7044_s1 + $0x1740] sm:$0xff]  ;;  %1393 = vmatpush.msrb.mxu0 %v891_v7  ;;  %v524_v7 = vld [vmem:[%s7044_s1 + $0x7c8] sm:$0xff] }
  0x55   : > { %v1147_v9 = vld [vmem:[%s7044_s1 + $0x1b40] sm:$0xff]  ;;  %1416 = vmatpush.msrb.mxu1 %v1019_v8  ;;  %v652_v8 = vld [vmem:[%s7044_s1 + $0xbc8] sm:$0xff] }
  0x56   : > { %v1283_v10 = vld [vmem:[%s7044_s1 + $0x1f80] sm:$0xff]  ;;  %1439 = vmatpush.msrb.mxu2 %v1147_v9 }
  0x57   : > { %v883_v11 = vld [vmem:[%s7044_s1 + $0x1300] sm:$0xff]  ;;  %1461 = vmatpush.msrb.mxu3 %v1283_v10  ;;  %v3700_v10 = vld [vmem:[%s3586_s30 + $0x48] sm:$0xff] }
  0x58   : > { %v1011_v12 = vld [vmem:[%s7044_s1 + $0x1700] sm:$0xff]  ;;  %1394 = vmatpush.msrb.mxu0 %v883_v11  ;;  %1387 = vmatmul.f32.gmra.mxu3 %v3684_v5  ;;  %v388_v11 = vld [vmem:[%s7044_s1 + $0x388] sm:$0xff] }
  0x59   : > { %v1139_v13 = vld [vmem:[%s7044_s1 + $0x1b00] sm:$0xff]  ;;  %1417 = vmatpush.msrb.mxu1 %v1011_v12  ;;  %v516_v12 = vld [vmem:[%s7044_s1 + $0x788] sm:$0xff] }
  0x5a   : > { %v1275_v14 = vld [vmem:[%s7044_s1 + $0x1f40] sm:$0xff]  ;;  %1440 = vmatpush.msrb.mxu2 %v1139_v13  ;;  %v644_v13 = vld [vmem:[%s7044_s1 + $0xb88] sm:$0xff]  ;;  %1341 = vmatmul.f32.gmra.mxu1 %v3700_v10 }
  0x5b   : > { %v875_v15 = vld [vmem:[%s7044_s1 + $0x12c0] sm:$0xff]  ;;  %1462 = vmatpush.msrb.mxu3 %v1275_v14  ;;  %v780_v14 = vld [vmem:[%s7044_s1 + $0xfc8] sm:$0xff] }
  0x5c   : > { %v1003_v16 = vld [vmem:[%s7044_s1 + $0x16c0] sm:$0xff]  ;;  %1395 = vmatpush.msrb.mxu0 %v875_v15  ;;  %v380_v15 = vld [vmem:[%s7044_s1 + $0x348] sm:$0xff] }
  0x5d   : > { %v1131_v17 = vld [vmem:[%s7044_s1 + $0x1ac0] sm:$0xff]  ;;  %1418 = vmatpush.msrb.mxu1 %v1003_v16  ;;  %v508_v16 = vld [vmem:[%s7044_s1 + $0x748] sm:$0xff] }
  0x5e   : > { %v1267_v18 = vld [vmem:[%s7044_s1 + $0x1f00] sm:$0xff]  ;;  %1441 = vmatpush.msrb.mxu2 %v1131_v17  ;;  %v636_v17 = vld [vmem:[%s7044_s1 + $0xb48] sm:$0xff] }
  0x5f   : > { %v867_v19 = vld [vmem:[%s7044_s1 + $0x1280] sm:$0xff]  ;;  %1463 = vmatpush.msrb.mxu3 %v1267_v18  ;;  %v772_v18 = vld [vmem:[%s7044_s1 + $0xf88] sm:$0xff] }
  0x60   : > { %v995_v20 = vld [vmem:[%s7044_s1 + $0x1680] sm:$0xff]  ;;  %1396 = vmatpush.msrb.mxu0 %v867_v19  ;;  %v3729_v19 = vld [vmem:[%s3586_s30 + $0x30] sm:$0xff] }
  0x61   : > { %v1123_v21 = vld [vmem:[%s7044_s1 + $0x1a80] sm:$0xff]  ;;  %1419 = vmatpush.msrb.mxu1 %v995_v20  ;;  %v372_v20 = vld [vmem:[%s7044_s1 + $0x308] sm:$0xff] }
  0x62   : > { %v1259_v22 = vld [vmem:[%s7044_s1 + $0x1ec0] sm:$0xff]  ;;  %1442 = vmatpush.msrb.mxu2 %v1123_v21  ;;  %v500_v21 = vld [vmem:[%s7044_s1 + $0x708] sm:$0xff] }
  0x63   : > { %v859_v23 = vld [vmem:[%s7044_s1 + $0x1240] sm:$0xff]  ;;  %1464 = vmatpush.msrb.mxu3 %v1259_v22  ;;  %v628_v22 = vld [vmem:[%s7044_s1 + $0xb08] sm:$0xff] }
  0x64   : > { %v987_v24 = vld [vmem:[%s7044_s1 + $0x1640] sm:$0xff]  ;;  %1397 = vmatpush.msrb.mxu0 %v859_v23  ;;  %v764_v23 = vld [vmem:[%s7044_s1 + $0xf48] sm:$0xff] }
  0x65   : > { %v1115_v25 = vld [vmem:[%s7044_s1 + $0x1a40] sm:$0xff]  ;;  %1420 = vmatpush.msrb.mxu1 %v987_v24 }
  0x66   : > { %v1251_v26 = vld [vmem:[%s7044_s1 + $0x1e80] sm:$0xff]  ;;  %1443 = vmatpush.msrb.mxu2 %v1115_v25  ;;  %v3748_v25 = vld [vmem:[%s3586_s30 + $0x38] sm:$0xff] }
  0x67   : > { %v851_v27 = vld [vmem:[%s7044_s1 + $0x1200] sm:$0xff]  ;;  %1465 = vmatpush.msrb.mxu3 %v1251_v26  ;;  %v364_v26 = vld [vmem:[%s7044_s1 + $0x2c8] sm:$0xff] }
  0x68   : > { %v979_v28 = vld [vmem:[%s7044_s1 + $0x1600] sm:$0xff]  ;;  %1398 = vmatpush.msrb.mxu0 %v851_v27  ;;  %v492_v27 = vld [vmem:[%s7044_s1 + $0x6c8] sm:$0xff] }
  0x69   : > { %v1107_v29 = vld [vmem:[%s7044_s1 + $0x1a00] sm:$0xff]  ;;  %1421 = vmatpush.msrb.mxu1 %v979_v28  ;;  %v620_v28 = vld [vmem:[%s7044_s1 + $0xac8] sm:$0xff] }
  0x6a   : > { %v1243_v30 = vld [vmem:[%s7044_s1 + $0x1e40] sm:$0xff]  ;;  %1444 = vmatpush.msrb.mxu2 %v1107_v29  ;;  %v756_v29 = vld [vmem:[%s7044_s1 + $0xf08] sm:$0xff] }
  0x6b   : > { %v843_v31 = vld [vmem:[%s7044_s1 + $0x11c0] sm:$0xff]  ;;  %1466 = vmatpush.msrb.mxu3 %v1243_v30  ;;  %v3764_v30 = vld [vmem:[%s3586_s30 + $0x28] sm:$0xff] }
  0x6c   : > { %v971_v32 = vld [vmem:[%s7044_s1 + $0x15c0] sm:$0xff]  ;;  %1399 = vmatpush.msrb.mxu0 %v843_v31  ;;  %v356_v31 = vld [vmem:[%s7044_s1 + $0x288] sm:$0xff] }
  0x6d   : > { %v1099_v33 = vld [vmem:[%s7044_s1 + $0x19c0] sm:$0xff]  ;;  %1422 = vmatpush.msrb.mxu1 %v971_v32  ;;  %v484_v32 = vld [vmem:[%s7044_s1 + $0x688] sm:$0xff] }
  0x6e   : > { %v1235_v34 = vld [vmem:[%s7044_s1 + $0x1e00] sm:$0xff]  ;;  %1445 = vmatpush.msrb.mxu2 %v1099_v33  ;;  %v612_v33 = vld [vmem:[%s7044_s1 + $0xa88] sm:$0xff] }
  0x6f   : > { %v835_v35 = vld [vmem:[%s7044_s1 + $0x1180] sm:$0xff]  ;;  %1467 = vmatpush.msrb.mxu3 %v1235_v34  ;;  %v748_v34 = vld [vmem:[%s7044_s1 + $0xec8] sm:$0xff] }
  0x70   : > { %v963_v36 = vld [vmem:[%s7044_s1 + $0x1580] sm:$0xff]  ;;  %1400 = vmatpush.msrb.mxu0 %v835_v35  ;;  %v348_v35 = vld [vmem:[%s7044_s1 + $0x248] sm:$0xff] }
  0x71   : > { %v1091_v37 = vld [vmem:[%s7044_s1 + $0x1980] sm:$0xff]  ;;  %1423 = vmatpush.msrb.mxu1 %v963_v36  ;;  %v476_v36 = vld [vmem:[%s7044_s1 + $0x648] sm:$0xff] }
  0x72   : > { %v1227_v38 = vld [vmem:[%s7044_s1 + $0x1dc0] sm:$0xff]  ;;  %1446 = vmatpush.msrb.mxu2 %v1091_v37  ;;  %v604_v37 = vld [vmem:[%s7044_s1 + $0xa48] sm:$0xff] }
  0x73   : > { %v827_v39 = vld [vmem:[%s7044_s1 + $0x1140] sm:$0xff]  ;;  %1468 = vmatpush.msrb.mxu3 %v1227_v38  ;;  %v740_v38 = vld [vmem:[%s7044_s1 + $0xe88] sm:$0xff] }
  0x74   : > { %v955_v40 = vld [vmem:[%s7044_s1 + $0x1540] sm:$0xff]  ;;  %1401 = vmatpush.msrb.mxu0 %v827_v39  ;;  %v340_v39 = vld [vmem:[%s7044_s1 + $0x208] sm:$0xff] }
  0x75   : > { %v1083_v41 = vld [vmem:[%s7044_s1 + $0x1940] sm:$0xff]  ;;  %1424 = vmatpush.msrb.mxu1 %v955_v40  ;;  %v468_v40 = vld [vmem:[%s7044_s1 + $0x608] sm:$0xff] }
  0x76   : > { %v1219_v42 = vld [vmem:[%s7044_s1 + $0x1d80] sm:$0xff]  ;;  %1447 = vmatpush.msrb.mxu2 %v1083_v41  ;;  %v596_v41 = vld [vmem:[%s7044_s1 + $0xa08] sm:$0xff] }
  0x77   : > { %v819_v44 = vld [vmem:[%s7044_s1 + $0x1100] sm:$0xff]  ;;  %1469 = vmatpush.msrb.mxu3 %v1219_v42  ;;  %v732_v42 = vld [vmem:[%s7044_s1 + $0xe48] sm:$0xff] }
  0x78   : > { %v947_v45 = vld [vmem:[%s7044_s1 + $0x1500] sm:$0xff]  ;;  %1402 = vmatpush.msrb.mxu0 %v819_v44  ;;  %v332_v44 = vld [vmem:[%s7044_s1 + $0x1c8] sm:$0xff] }
  0x79   : > { %v1075_v46 = vld [vmem:[%s7044_s1 + $0x1900] sm:$0xff]  ;;  %1425 = vmatpush.msrb.mxu1 %v947_v45  ;;  %v460_v45 = vld [vmem:[%s7044_s1 + $0x5c8] sm:$0xff] }
  0x7a   : > { %v1211_v47 = vld [vmem:[%s7044_s1 + $0x1d40] sm:$0xff]  ;;  %1448 = vmatpush.msrb.mxu2 %v1075_v46  ;;  %v588_v46 = vld [vmem:[%s7044_s1 + $0x9c8] sm:$0xff] }
  0x7b   : > { %v3616_v48 = vld [vmem:[%s3586_s30] sm:$0xff]  ;;  %1470 = vmatpush.msrb.mxu3 %v1211_v47  ;;  %v724_v47 = vld [vmem:[%s7044_s1 + $0xe08] sm:$0xff] }
  0x7c   : > { %v811_v50 = vld [vmem:[%s7044_s1 + $0x10c0] sm:$0xff]  ;;  %1315 = vmatmul.f32.vlgmr.msra.gmra.mxu0 %v3616_v48 }
  0x7d   : > { %v939_v51 = vld [vmem:[%s7044_s1 + $0x14c0] sm:$0xff]  ;;  %1403 = vmatpush.msrb.mxu0 %v811_v50  ;;  %v324_v50 = vld [vmem:[%s7044_s1 + $0x188] sm:$0xff] }
  0x7e   : > { %v1067_v52 = vld [vmem:[%s7044_s1 + $0x18c0] sm:$0xff]  ;;  %1426 = vmatpush.msrb.mxu1 %v939_v51  ;;  %v452_v51 = vld [vmem:[%s7044_s1 + $0x588] sm:$0xff] }
  0x7f   : > { %v1203_v53 = vld [vmem:[%s7044_s1 + $0x1d00] sm:$0xff]  ;;  %1449 = vmatpush.msrb.mxu2 %v1067_v52  ;;  %v580_v52 = vld [vmem:[%s7044_s1 + $0x988] sm:$0xff] }
  0x80   : > { %v803_v55 = vld [vmem:[%s7044_s1 + $0x1080] sm:$0xff]  ;;  %1471 = vmatpush.msrb.mxu3 %v1203_v53  ;;  %v716_v53 = vld [vmem:[%s7044_s1 + $0xdc8] sm:$0xff] }
  0x81   : > { %v931_v56 = vld [vmem:[%s7044_s1 + $0x1480] sm:$0xff]  ;;  %1404 = vmatpush.msrb.mxu0 %v803_v55  ;;  %v316_v55 = vld [vmem:[%s7044_s1 + $0x148] sm:$0xff] }
  0x82   : > { %v1059_v57 = vld [vmem:[%s7044_s1 + $0x1880] sm:$0xff]  ;;  %1427 = vmatpush.msrb.mxu1 %v931_v56  ;;  %v444_v56 = vld [vmem:[%s7044_s1 + $0x548] sm:$0xff] }
  0x83   : > { %v1195_v58 = vld [vmem:[%s7044_s1 + $0x1cc0] sm:$0xff]  ;;  %1450 = vmatpush.msrb.mxu2 %v1059_v57  ;;  %v572_v57 = vld [vmem:[%s7044_s1 + $0x948] sm:$0xff] }
  0x84   : > { %v795_v59 = vld [vmem:[%s7044_s1 + $0x1040] sm:$0xff]  ;;  %1472 = vmatpush.msrb.mxu3 %v1195_v58  ;;  %v708_v58 = vld [vmem:[%s7044_s1 + $0xd88] sm:$0xff] }
  0x85   : > { %v923_v60 = vld [vmem:[%s7044_s1 + $0x1440] sm:$0xff]  ;;  %1405 = vmatpush.msrb.mxu0 %v795_v59  ;;  %v308_v59 = vld [vmem:[%s7044_s1 + $0x108] sm:$0xff] }
  0x86   : > { %v1051_v61 = vld [vmem:[%s7044_s1 + $0x1840] sm:$0xff]  ;;  %1428 = vmatpush.msrb.mxu1 %v923_v60  ;;  %v436_v60 = vld [vmem:[%s7044_s1 + $0x508] sm:$0xff] }
  0x87   : > { %v1187_v62 = vld [vmem:[%s7044_s1 + $0x1c80] sm:$0xff]  ;;  %1451 = vmatpush.msrb.mxu2 %v1051_v61  ;;  %v564_v61 = vld [vmem:[%s7044_s1 + $0x908] sm:$0xff] }
  0x88   : > { %v787_v0 = vld [vmem:[%s7044_s1 + $0x1000] sm:$0xff]  ;;  %1473 = vmatpush.msrb.mxu3 %v1187_v62  ;;  %v700_v62 = vld [vmem:[%s7044_s1 + $0xd48] sm:$0xff] }
  0x89   : > { %v915_v1 = vld [vmem:[%s7044_s1 + $0x1400] sm:$0xff]  ;;  %1406 = vmatpush.msrb.mxu0 %v787_v0  ;;  %v300_v0 = vld [vmem:[%s7044_s1 + $0xc8] sm:$0xff] }
  0x8a   : > { %v1043_v2 = vld [vmem:[%s7044_s1 + $0x1800] sm:$0xff]  ;;  %1429 = vmatpush.msrb.mxu1 %v915_v1  ;;  %v428_v1 = vld [vmem:[%s7044_s1 + $0x4c8] sm:$0xff] }
  0x8b   : > { %v1179_v3 = vld [vmem:[%s7044_s1 + $0x1c40] sm:$0xff]  ;;  %1452 = vmatpush.msrb.mxu2 %v1043_v2  ;;  %1483 = vmatpush.msra.mxu0 %v396_v6  ;;  %v556_v2 = vld [vmem:[%s7044_s1 + $0x8c8] sm:$0xff] }
  0x8c   : > { %v3680_v4 = vld [vmem:[%s3586_s30 + $0x40] sm:$0xff]  ;;  %1474 = vmatpush.msrb.mxu3 %v1179_v3  ;;  %1506 = vmatpush.msra.mxu1 %v524_v7  ;;  %v692_v3 = vld [vmem:[%s7044_s1 + $0xd08] sm:$0xff] }
  0x8d   : > { %1318 = vmatmul.f32.gmra.mxu0 %v3680_v4  ;;  %v1171_v9 = vld [vmem:[%s7044_s1 + $0x1c00] sm:$0xff]  ;;  %1529 = vmatpush.msra.mxu2 %v652_v8  ;;  %v292_v6 = vld [vmem:[%s7044_s1 + $0x88] sm:$0xff] }
  0x8e   : > { %1475 = vmatpush.msrb.mxu3 %v1171_v9  ;;  %1484 = vmatpush.msra.mxu0 %v388_v11  ;;  %v3744_v24 = vld [vmem:[%s3586_s30 + $0x20] sm:$0xff]  ;;  %v420_v7 = vld [vmem:[%s7044_s1 + $0x488] sm:$0xff] }
  0x8f   : > { %1507 = vmatpush.msra.mxu1 %v516_v12  ;;  %1530 = vmatpush.msra.mxu2 %v644_v13  ;;  %v548_v8 = vld [vmem:[%s7044_s1 + $0x888] sm:$0xff] }
  0x90   : > { %1552 = vmatpush.msra.mxu3 %v780_v14  ;;  %1485 = vmatpush.msra.mxu0 %v380_v15  ;;  %v684_v9 = vld [vmem:[%s7044_s1 + $0xcc8] sm:$0xff]  ;;  %v3889_v15 = vld [vmem:[%s3586_s30 + $0x70] sm:$0xff] }
  0x91   : > { %1508 = vmatpush.msra.mxu1 %v508_v16  ;;  %1531 = vmatpush.msra.mxu2 %v636_v17  ;;  %v284_v11 = vld [vmem:[%s7044_s1 + $0x48] sm:$0xff] }
  0x92   : > { %1553 = vmatpush.msra.mxu3 %v772_v18  ;;  %1453 = vmatmul.f32.vlgmr.msrb.gmra.mxu2 %v3729_v19  ;;  %v412_v12 = vld [vmem:[%s7044_s1 + $0x448] sm:$0xff] }
  0x93   : > { %1486 = vmatpush.msra.mxu0 %v372_v20  ;;  %1509 = vmatpush.msra.mxu1 %v500_v21  ;;  %v540_v13 = vld [vmem:[%s7044_s1 + $0x848] sm:$0xff]  ;;  %v3904_v21 = vld [vmem:[%s3586_s30 + $0x60] sm:$0xff] }
  0x94   : > { %1532 = vmatpush.msra.mxu2 %v628_v22  ;;  %1554 = vmatpush.msra.mxu3 %v764_v23  ;;  %v676_v14 = vld [vmem:[%s7044_s1 + $0xc88] sm:$0xff]  ;;  %v3908_v22 = vld [vmem:[%s3586_s30 + $0x78] sm:$0xff] }
  0x95   : > { %1407 = vmatmul.f32.vlgmr.msrb.gmra.mxu0 %v3744_v24  ;;  %1476 = vmatmul.f32.vlgmr.msrb.gmra.mxu3 %v3748_v25  ;;  %v276_v16 = vld [vmem:[%s7044_s1 + $0x8] sm:$0xff] }
  0x96   : > { %1487 = vmatpush.msra.mxu0 %v364_v26  ;;  %1510 = vmatpush.msra.mxu1 %v492_v27  ;;  %v404_v17 = vld [vmem:[%s7044_s1 + $0x408] sm:$0xff] }
  0x97   : > { %1533 = vmatpush.msra.mxu2 %v620_v28  ;;  %1555 = vmatpush.msra.mxu3 %v756_v29  ;;  %v532_v18 = vld [vmem:[%s7044_s1 + $0x808] sm:$0xff] }
  0x98   : > { %1430 = vmatmul.f32.vlgmr.msrb.gmra.mxu1 %v3764_v30  ;;  %1488 = vmatpush.msra.mxu0 %v356_v31  ;;  %v668_v20 = vld [vmem:[%s7044_s1 + $0xc48] sm:$0xff] }
  0x99   : > { %1511 = vmatpush.msra.mxu1 %v484_v32  ;;  %1534 = vmatpush.msra.mxu2 %v612_v33  ;;  %v908_v23 = vld [vmem:[%s7044_s1 + $0x13c8] sm:$0xff] }
  0x9a   : > { %1556 = vmatpush.msra.mxu3 %v748_v34  ;;  %1489 = vmatpush.msra.mxu0 %v348_v35  ;;  %v1036_v26 = vld [vmem:[%s7044_s1 + $0x17c8] sm:$0xff] }
  0x9b   : > { %1512 = vmatpush.msra.mxu1 %v476_v36  ;;  %1535 = vmatpush.msra.mxu2 %v604_v37  ;;  %v1164_v27 = vld [vmem:[%s7044_s1 + $0x1bc8] sm:$0xff] }
  0x9c   : > { %1557 = vmatpush.msra.mxu3 %v740_v38  ;;  %1490 = vmatpush.msra.mxu0 %v340_v39  ;;  %v660_v28 = vld [vmem:[%s7044_s1 + $0xc08] sm:$0xff] }
  0x9d   : > { %1513 = vmatpush.msra.mxu1 %v468_v40  ;;  %1536 = vmatpush.msra.mxu2 %v596_v41  ;;  %v3924_v29 = vld [vmem:[%s3586_s30 + $0x68] sm:$0xff] }
  0x9e   : > { %1558 = vmatpush.msra.mxu3 %v732_v42  ;;  %1491 = vmatpush.msra.mxu0 %v332_v44  ;;  %v900_v31 = vld [vmem:[%s7044_s1 + $0x1388] sm:$0xff] }
  0x9f   : > { %1514 = vmatpush.msra.mxu1 %v460_v45  ;;  %1537 = vmatpush.msra.mxu2 %v588_v46  ;;  %v1028_v32 = vld [vmem:[%s7044_s1 + $0x1788] sm:$0xff] }
  0xa0   : > { %1559 = vmatpush.msra.mxu3 %v724_v47  ;;  %1492 = vmatpush.msra.mxu0 %v324_v50  ;;  %v1156_v33 = vld [vmem:[%s7044_s1 + $0x1b88] sm:$0xff] }
  0xa1   : > { %1515 = vmatpush.msra.mxu1 %v452_v51  ;;  %1538 = vmatpush.msra.mxu2 %v580_v52  ;;  %v1292_v34 = vld [vmem:[%s7044_s1 + $0x1fc8] sm:$0xff] }
  0xa2   : > { %1560 = vmatpush.msra.mxu3 %v716_v53  ;;  %1493 = vmatpush.msra.mxu0 %v316_v55  ;;  %v892_v35 = vld [vmem:[%s7044_s1 + $0x1348] sm:$0xff] }
  0xa3   : > { %1516 = vmatpush.msra.mxu1 %v444_v56  ;;  %1539 = vmatpush.msra.mxu2 %v572_v57  ;;  %v1020_v36 = vld [vmem:[%s7044_s1 + $0x1748] sm:$0xff] }
  0xa4   : > { %1561 = vmatpush.msra.mxu3 %v708_v58  ;;  %1494 = vmatpush.msra.mxu0 %v308_v59  ;;  %v1148_v37 = vld [vmem:[%s7044_s1 + $0x1b48] sm:$0xff] }
  0xa5   : > { %1517 = vmatpush.msra.mxu1 %v436_v60  ;;  %1540 = vmatpush.msra.mxu2 %v564_v61  ;;  %v1284_v38 = vld [vmem:[%s7044_s1 + $0x1f88] sm:$0xff] }
  0xa6   : > { %1562 = vmatpush.msra.mxu3 %v700_v62  ;;  %1495 = vmatpush.msra.mxu0 %v300_v0  ;;  %v884_v39 = vld [vmem:[%s7044_s1 + $0x1308] sm:$0xff] }
  0xa7   : > { %1518 = vmatpush.msra.mxu1 %v428_v1  ;;  %1541 = vmatpush.msra.mxu2 %v556_v2  ;;  %v1012_v40 = vld [vmem:[%s7044_s1 + $0x1708] sm:$0xff] }
  0xa8   : > { %1563 = vmatpush.msra.mxu3 %v692_v3  ;;  %1496 = vmatpush.msra.mxu0 %v292_v6  ;;  %v1140_v41 = vld [vmem:[%s7044_s1 + $0x1b08] sm:$0xff] }
  0xa9   : > { %1519 = vmatpush.msra.mxu1 %v420_v7  ;;  %1542 = vmatpush.msra.mxu2 %v548_v8  ;;  %v1276_v42 = vld [vmem:[%s7044_s1 + $0x1f48] sm:$0xff] }
  0xaa   : > { %1564 = vmatpush.msra.mxu3 %v684_v9  ;;  %1497 = vmatpush.msra.mxu0 %v284_v11  ;;  %v876_v44 = vld [vmem:[%s7044_s1 + $0x12c8] sm:$0xff] }
  0xab   : > { %1520 = vmatpush.msra.mxu1 %v412_v12  ;;  %1543 = vmatpush.msra.mxu2 %v540_v13  ;;  %v1004_v45 = vld [vmem:[%s7044_s1 + $0x16c8] sm:$0xff] }
  0xac   : > { %1565 = vmatpush.msra.mxu3 %v676_v14  ;;  %1456 = vmatmul.f32.gmra.mxu2 %v3889_v15  ;;  %v1132_v46 = vld [vmem:[%s7044_s1 + $0x1ac8] sm:$0xff] }
  0xad   : > { %1498 = vmatpush.msra.mxu0 %v276_v16  ;;  %1521 = vmatpush.msra.mxu1 %v404_v17  ;;  %v1268_v47 = vld [vmem:[%s7044_s1 + $0x1f08] sm:$0xff] }
  0xae   : > { %1544 = vmatpush.msra.mxu2 %v532_v18  ;;  %1566 = vmatpush.msra.mxu3 %v668_v20  ;;  %v868_v50 = vld [vmem:[%s7044_s1 + $0x1288] sm:$0xff] }
  0xaf   : > { %1410 = vmatmul.f32.gmra.mxu0 %v3904_v21  ;;  %1479 = vmatmul.f32.gmra.mxu3 %v3908_v22  ;;  %v996_v51 = vld [vmem:[%s7044_s1 + $0x1688] sm:$0xff] }
  0xb0   : > { %1575 = vmatpush.msrb.mxu0 %v908_v23  ;;  %1598 = vmatpush.msrb.mxu1 %v1036_v26  ;;  %v1124_v52 = vld [vmem:[%s7044_s1 + $0x1a88] sm:$0xff] }
  0xb1   : > { %1621 = vmatpush.msrb.mxu2 %v1164_v27  ;;  %1567 = vmatpush.msra.mxu3 %v660_v28  ;;  %v1260_v53 = vld [vmem:[%s7044_s1 + $0x1ec8] sm:$0xff] }
  0xb2   : > { %1433 = vmatmul.f32.gmra.mxu1 %v3924_v29  ;;  %1576 = vmatpush.msrb.mxu0 %v900_v31  ;;  %v860_v55 = vld [vmem:[%s7044_s1 + $0x1248] sm:$0xff] }
  0xb3   : > { %1599 = vmatpush.msrb.mxu1 %v1028_v32  ;;  %1622 = vmatpush.msrb.mxu2 %v1156_v33  ;;  %v988_v56 = vld [vmem:[%s7044_s1 + $0x1648] sm:$0xff] }
  0xb4   : > { %1644 = vmatpush.msrb.mxu3 %v1292_v34  ;;  %1577 = vmatpush.msrb.mxu0 %v892_v35  ;;  %v1116_v57 = vld [vmem:[%s7044_s1 + $0x1a48] sm:$0xff] }
  0xb5   : > { %1600 = vmatpush.msrb.mxu1 %v1020_v36  ;;  %1623 = vmatpush.msrb.mxu2 %v1148_v37  ;;  %v1252_v58 = vld [vmem:[%s7044_s1 + $0x1e88] sm:$0xff] }
  0xb6   : > { %1645 = vmatpush.msrb.mxu3 %v1284_v38  ;;  %1578 = vmatpush.msrb.mxu0 %v884_v39  ;;  %v852_v59 = vld [vmem:[%s7044_s1 + $0x1208] sm:$0xff]  ;;  %v397_v39 = vld [vmem:[%s7044_s1 + $0x3d0] sm:$0xff] }
  0xb7   : > { %1601 = vmatpush.msrb.mxu1 %v1012_v40  ;;  %1624 = vmatpush.msrb.mxu2 %v1140_v41  ;;  %v980_v60 = vld [vmem:[%s7044_s1 + $0x1608] sm:$0xff]  ;;  %v525_v40 = vld [vmem:[%s7044_s1 + $0x7d0] sm:$0xff] }
  0xb8   : > { %1646 = vmatpush.msrb.mxu3 %v1276_v42  ;;  %1579 = vmatpush.msrb.mxu0 %v876_v44  ;;  %v1108_v61 = vld [vmem:[%s7044_s1 + $0x1a08] sm:$0xff]  ;;  %v653_v41 = vld [vmem:[%s7044_s1 + $0xbd0] sm:$0xff] }
  0xb9   : > { %1602 = vmatpush.msrb.mxu1 %v1004_v45  ;;  %1625 = vmatpush.msrb.mxu2 %v1132_v46  ;;  %v1244_v62 = vld [vmem:[%s7044_s1 + $0x1e48] sm:$0xff]  ;;  %v389_v42 = vld [vmem:[%s7044_s1 + $0x390] sm:$0xff] }
  0xba   : > { %1647 = vmatpush.msrb.mxu3 %v1268_v47  ;;  %1580 = vmatpush.msrb.mxu0 %v868_v50  ;;  %v844_v0 = vld [vmem:[%s7044_s1 + $0x11c8] sm:$0xff]  ;;  %v517_v44 = vld [vmem:[%s7044_s1 + $0x790] sm:$0xff] }
  0xbb   : > { %1603 = vmatpush.msrb.mxu1 %v996_v51  ;;  %1626 = vmatpush.msrb.mxu2 %v1124_v52  ;;  %v972_v1 = vld [vmem:[%s7044_s1 + $0x15c8] sm:$0xff]  ;;  %v781_v45 = vld [vmem:[%s7044_s1 + $0xfd0] sm:$0xff] }
  0xbc   : > { %1648 = vmatpush.msrb.mxu3 %v1260_v53  ;;  %1581 = vmatpush.msrb.mxu0 %v860_v55  ;;  %v1100_v2 = vld [vmem:[%s7044_s1 + $0x19c8] sm:$0xff]  ;;  %v509_v46 = vld [vmem:[%s7044_s1 + $0x750] sm:$0xff] }
  0xbd   : > { %1604 = vmatpush.msrb.mxu1 %v988_v56  ;;  %1627 = vmatpush.msrb.mxu2 %v1116_v57  ;;  %v1236_v3 = vld [vmem:[%s7044_s1 + $0x1e08] sm:$0xff]  ;;  %v637_v47 = vld [vmem:[%s7044_s1 + $0xb50] sm:$0xff] }
  0xbe   : > { %1649 = vmatpush.msrb.mxu3 %v1252_v58  ;;  %1582 = vmatpush.msrb.mxu0 %v852_v59  ;;  %v836_v6 = vld [vmem:[%s7044_s1 + $0x1188] sm:$0xff]  ;;  %v773_v50 = vld [vmem:[%s7044_s1 + $0xf90] sm:$0xff] }
  0xbf   : > { %1605 = vmatpush.msrb.mxu1 %v980_v60  ;;  %1628 = vmatpush.msrb.mxu2 %v1108_v61  ;;  %v964_v7 = vld [vmem:[%s7044_s1 + $0x1588] sm:$0xff]  ;;  %v501_v51 = vld [vmem:[%s7044_s1 + $0x710] sm:$0xff] }
  0xc0   : > { %1650 = vmatpush.msrb.mxu3 %v1244_v62  ;;  %1583 = vmatpush.msrb.mxu0 %v844_v0  ;;  %v1092_v8 = vld [vmem:[%s7044_s1 + $0x1988] sm:$0xff]  ;;  %v629_v52 = vld [vmem:[%s7044_s1 + $0xb10] sm:$0xff] }
  0xc1   : > { %1606 = vmatpush.msrb.mxu1 %v972_v1  ;;  %v1228_v9 = vld [vmem:[%s7044_s1 + $0x1dc8] sm:$0xff]  ;;  %1629 = vmatpush.msrb.mxu2 %v1100_v2  ;;  %v765_v53 = vld [vmem:[%s7044_s1 + $0xf50] sm:$0xff] }
  0xc2   : > { %1651 = vmatpush.msrb.mxu3 %v1236_v3  ;;  %v828_v11 = vld [vmem:[%s7044_s1 + $0x1148] sm:$0xff]  ;;  %1584 = vmatpush.msrb.mxu0 %v836_v6  ;;  %v365_v55 = vld [vmem:[%s7044_s1 + $0x2d0] sm:$0xff] }
  0xc3   : > { %v956_v12 = vld [vmem:[%s7044_s1 + $0x1548] sm:$0xff]  ;;  %1607 = vmatpush.msrb.mxu1 %v964_v7  ;;  %1630 = vmatpush.msrb.mxu2 %v1092_v8  ;;  %v493_v56 = vld [vmem:[%s7044_s1 + $0x6d0] sm:$0xff] }
  0xc4   : > { %v1084_v13 = vld [vmem:[%s7044_s1 + $0x1948] sm:$0xff]  ;;  %1652 = vmatpush.msrb.mxu3 %v1228_v9  ;;  %1585 = vmatpush.msrb.mxu0 %v828_v11  ;;  %v621_v57 = vld [vmem:[%s7044_s1 + $0xad0] sm:$0xff] }
  0xc5   : > { %v1220_v14 = vld [vmem:[%s7044_s1 + $0x1d88] sm:$0xff]  ;;  %1608 = vmatpush.msrb.mxu1 %v956_v12  ;;  %1631 = vmatpush.msrb.mxu2 %v1084_v13  ;;  %v357_v58 = vld [vmem:[%s7044_s1 + $0x290] sm:$0xff] }
  0xc6   : > { %v820_v16 = vld [vmem:[%s7044_s1 + $0x1108] sm:$0xff]  ;;  %1653 = vmatpush.msrb.mxu3 %v1220_v14  ;;  %1545 = vmatmul.f32.vlgmr.msra.gmra.mxu2 %v3601_v43  ;;  %v485_v59 = vld [vmem:[%s7044_s1 + $0x690] sm:$0xff] }
  0xc7   : > { %v948_v17 = vld [vmem:[%s7044_s1 + $0x1508] sm:$0xff]  ;;  %1586 = vmatpush.msrb.mxu0 %v820_v16  ;;  %1568 = vmatmul.f32.vlgmr.msra.gmra.mxu3 %v3620_v49  ;;  %v749_v60 = vld [vmem:[%s7044_s1 + $0xed0] sm:$0xff] }
  0xc8   : > { %v1076_v18 = vld [vmem:[%s7044_s1 + $0x1908] sm:$0xff]  ;;  %1609 = vmatpush.msrb.mxu1 %v948_v17  ;;  %1499 = vmatmul.f32.vlgmr.msra.gmra.mxu0 %v3616_v48  ;;  %v477_v61 = vld [vmem:[%s7044_s1 + $0x650] sm:$0xff] }
  0xc9   : > { %v1212_v20 = vld [vmem:[%s7044_s1 + $0x1d48] sm:$0xff]  ;;  %1632 = vmatpush.msrb.mxu2 %v1076_v18  ;;  %1522 = vmatmul.f32.vlgmr.msra.gmra.mxu1 %v3636_v54  ;;  %v605_v62 = vld [vmem:[%s7044_s1 + $0xa50] sm:$0xff] }
  0xca   : > { %v812_v23 = vld [vmem:[%s7044_s1 + $0x10c8] sm:$0xff]  ;;  %1654 = vmatpush.msrb.mxu3 %v1212_v20  ;;  %v741_v0 = vld [vmem:[%s7044_s1 + $0xe90] sm:$0xff] }
  0xcb   : > { %v940_v26 = vld [vmem:[%s7044_s1 + $0x14c8] sm:$0xff]  ;;  %1587 = vmatpush.msrb.mxu0 %v812_v23  ;;  %v469_v1 = vld [vmem:[%s7044_s1 + $0x610] sm:$0xff] }
  0xcc   : > { %v1068_v27 = vld [vmem:[%s7044_s1 + $0x18c8] sm:$0xff]  ;;  %1610 = vmatpush.msrb.mxu1 %v940_v26  ;;  %v597_v2 = vld [vmem:[%s7044_s1 + $0xa10] sm:$0xff] }
  0xcd   : > { %v1204_v43 = vld [vmem:[%s7044_s1 + $0x1d08] sm:$0xff]  ;;  %1633 = vmatpush.msrb.mxu2 %v1068_v27  ;;  %v733_v3 = vld [vmem:[%s7044_s1 + $0xe50] sm:$0xff] }
  0xce   : > { %v804_v28 = vld [vmem:[%s7044_s1 + $0x1088] sm:$0xff]  ;;  %1655 = vmatpush.msrb.mxu3 %v1204_v43  ;;  %1548 = vmatmul.f32.gmra.mxu2 %v3665_v63  ;;  %v333_v6 = vld [vmem:[%s7044_s1 + $0x1d0] sm:$0xff] }
  0xcf   : > { %v932_v31 = vld [vmem:[%s7044_s1 + $0x1488] sm:$0xff]  ;;  %1588 = vmatpush.msrb.mxu0 %v804_v28  ;;  %1571 = vmatmul.f32.gmra.mxu3 %v3684_v5  ;;  %v381_v5 = vld [vmem:[%s7044_s1 + $0x350] sm:$0xff] }
  0xd0   : > { %v1060_v48 = vld [vmem:[%s7044_s1 + $0x1888] sm:$0xff]  ;;  %1611 = vmatpush.msrb.mxu1 %v932_v31  ;;  %1502 = vmatmul.f32.gmra.mxu0 %v3680_v4  ;;  %v645_v4 = vld [vmem:[%s7044_s1 + $0xb90] sm:$0xff] }
  0xd1   : > { %v1196_v32 = vld [vmem:[%s7044_s1 + $0x1cc8] sm:$0xff]  ;;  %1634 = vmatpush.msrb.mxu2 %v1060_v48  ;;  %1525 = vmatmul.f32.gmra.mxu1 %v3700_v10  ;;  %v373_v10 = vld [vmem:[%s7044_s1 + $0x310] sm:$0xff] }
  0xd2   : > { %v796_v49 = vld [vmem:[%s7044_s1 + $0x1048] sm:$0xff]  ;;  %1656 = vmatpush.msrb.mxu3 %v1196_v32  ;;  %v461_v7 = vld [vmem:[%s7044_s1 + $0x5d0] sm:$0xff] }
  0xd3   : > { %v924_v33 = vld [vmem:[%s7044_s1 + $0x1448] sm:$0xff]  ;;  %1589 = vmatpush.msrb.mxu0 %v796_v49  ;;  %v589_v8 = vld [vmem:[%s7044_s1 + $0x9d0] sm:$0xff] }
  0xd4   : > { %v1052_v34 = vld [vmem:[%s7044_s1 + $0x1848] sm:$0xff]  ;;  %1612 = vmatpush.msrb.mxu1 %v924_v33  ;;  %v725_v9 = vld [vmem:[%s7044_s1 + $0xe10] sm:$0xff] }
  0xd5   : > { %v1188_v35 = vld [vmem:[%s7044_s1 + $0x1c88] sm:$0xff]  ;;  %1635 = vmatpush.msrb.mxu2 %v1052_v34  ;;  %v325_v11 = vld [vmem:[%s7044_s1 + $0x190] sm:$0xff] }
  0xd6   : > { %v788_v54 = vld [vmem:[%s7044_s1 + $0x1008] sm:$0xff]  ;;  %1657 = vmatpush.msrb.mxu3 %v1188_v35  ;;  %v453_v12 = vld [vmem:[%s7044_s1 + $0x590] sm:$0xff] }
  0xd7   : > { %v916_v36 = vld [vmem:[%s7044_s1 + $0x1408] sm:$0xff]  ;;  %1590 = vmatpush.msrb.mxu0 %v788_v54  ;;  %v581_v13 = vld [vmem:[%s7044_s1 + $0x990] sm:$0xff] }
  0xd8   : > { %v1044_v37 = vld [vmem:[%s7044_s1 + $0x1808] sm:$0xff]  ;;  %1613 = vmatpush.msrb.mxu1 %v916_v36  ;;  %1591 = vmatmul.f32.vlgmr.msrb.gmra.mxu0 %v3744_v24  ;;  %v613_v24 = vld [vmem:[%s7044_s1 + $0xa90] sm:$0xff] }
  0xd9   : > { %v1180_v38 = vld [vmem:[%s7044_s1 + $0x1c48] sm:$0xff]  ;;  %1636 = vmatpush.msrb.mxu2 %v1044_v37  ;;  %1667 = vmatpush.msra.mxu0 %v397_v39  ;;  %v717_v14 = vld [vmem:[%s7044_s1 + $0xdd0] sm:$0xff] }
  0xda   : > { %1658 = vmatpush.msrb.mxu3 %v1180_v38  ;;  %v1172_v63 = vld [vmem:[%s7044_s1 + $0x1c08] sm:$0xff]  ;;  %1690 = vmatpush.msra.mxu1 %v525_v40  ;;  %v317_v16 = vld [vmem:[%s7044_s1 + $0x150] sm:$0xff] }
  0xdb   : > { %1713 = vmatpush.msra.mxu2 %v653_v41  ;;  %1668 = vmatpush.msra.mxu0 %v389_v42  ;;  %v445_v17 = vld [vmem:[%s7044_s1 + $0x550] sm:$0xff] }
  0xdc   : > { %1659 = vmatpush.msrb.mxu3 %v1172_v63  ;;  %1691 = vmatpush.msra.mxu1 %v517_v44  ;;  %v573_v18 = vld [vmem:[%s7044_s1 + $0x950] sm:$0xff] }
  0xdd   : > { %1714 = vmatpush.msra.mxu2 %v645_v4  ;;  %1669 = vmatpush.msra.mxu0 %v381_v5  ;;  %v709_v20 = vld [vmem:[%s7044_s1 + $0xd90] sm:$0xff] }
  0xde   : > { %1736 = vmatpush.msra.mxu3 %v781_v45  ;;  %1692 = vmatpush.msra.mxu1 %v509_v46  ;;  %v309_v23 = vld [vmem:[%s7044_s1 + $0x110] sm:$0xff] }
  0xdf   : > { %1715 = vmatpush.msra.mxu2 %v637_v47  ;;  %1670 = vmatpush.msra.mxu0 %v373_v10  ;;  %v437_v26 = vld [vmem:[%s7044_s1 + $0x510] sm:$0xff] }
  0xe0   : > { %1737 = vmatpush.msra.mxu3 %v773_v50  ;;  %1637 = vmatmul.f32.vlgmr.msrb.gmra.mxu2 %v3729_v19  ;;  %v757_v19 = vld [vmem:[%s7044_s1 + $0xf10] sm:$0xff] }
  0xe1   : > { %1693 = vmatpush.msra.mxu1 %v501_v51  ;;  %1716 = vmatpush.msra.mxu2 %v629_v52  ;;  %v565_v27 = vld [vmem:[%s7044_s1 + $0x910] sm:$0xff] }
  0xe2   : > { %1738 = vmatpush.msra.mxu3 %v765_v53  ;;  %1671 = vmatpush.msra.mxu0 %v365_v55  ;;  %v701_v43 = vld [vmem:[%s7044_s1 + $0xd50] sm:$0xff] }
  0xe3   : > { %1660 = vmatmul.f32.vlgmr.msrb.gmra.mxu3 %v3748_v25  ;;  %1694 = vmatpush.msra.mxu1 %v493_v56  ;;  %v349_v25 = vld [vmem:[%s7044_s1 + $0x250] sm:$0xff] }
  0xe4   : > { %1717 = vmatpush.msra.mxu2 %v621_v57  ;;  %1739 = vmatpush.msra.mxu3 %v757_v19  ;;  %v301_v28 = vld [vmem:[%s7044_s1 + $0xd0] sm:$0xff] }
  0xe5   : > { %1614 = vmatmul.f32.vlgmr.msrb.gmra.mxu1 %v3764_v30  ;;  %1672 = vmatpush.msra.mxu0 %v357_v58  ;;  %v341_v30 = vld [vmem:[%s7044_s1 + $0x210] sm:$0xff] }
  0xe6   : > { %1695 = vmatpush.msra.mxu1 %v485_v59  ;;  %1718 = vmatpush.msra.mxu2 %v613_v24  ;;  %v429_v31 = vld [vmem:[%s7044_s1 + $0x4d0] sm:$0xff] }
  0xe7   : > { %1740 = vmatpush.msra.mxu3 %v749_v60  ;;  %1673 = vmatpush.msra.mxu0 %v349_v25  ;;  %v557_v48 = vld [vmem:[%s7044_s1 + $0x8d0] sm:$0xff] }
  0xe8   : > { %1696 = vmatpush.msra.mxu1 %v477_v61  ;;  %1719 = vmatpush.msra.mxu2 %v605_v62  ;;  %v693_v32 = vld [vmem:[%s7044_s1 + $0xd10] sm:$0xff] }
  0xe9   : > { %1741 = vmatpush.msra.mxu3 %v741_v0  ;;  %1674 = vmatpush.msra.mxu0 %v341_v30  ;;  %v293_v49 = vld [vmem:[%s7044_s1 + $0x90] sm:$0xff] }
  0xea   : > { %1697 = vmatpush.msra.mxu1 %v469_v1  ;;  %1720 = vmatpush.msra.mxu2 %v597_v2  ;;  %v421_v33 = vld [vmem:[%s7044_s1 + $0x490] sm:$0xff] }
  0xeb   : > { %1742 = vmatpush.msra.mxu3 %v733_v3  ;;  %1675 = vmatpush.msra.mxu0 %v333_v6  ;;  %v549_v34 = vld [vmem:[%s7044_s1 + $0x890] sm:$0xff] }
  0xec   : > { %1698 = vmatpush.msra.mxu1 %v461_v7  ;;  %1721 = vmatpush.msra.mxu2 %v589_v8  ;;  %v685_v35 = vld [vmem:[%s7044_s1 + $0xcd0] sm:$0xff] }
  0xed   : > { %1743 = vmatpush.msra.mxu3 %v725_v9  ;;  %1676 = vmatpush.msra.mxu0 %v325_v11  ;;  %v285_v54 = vld [vmem:[%s7044_s1 + $0x50] sm:$0xff] }
  0xee   : > { %1699 = vmatpush.msra.mxu1 %v453_v12  ;;  %1722 = vmatpush.msra.mxu2 %v581_v13  ;;  %v413_v36 = vld [vmem:[%s7044_s1 + $0x450] sm:$0xff] }
  0xef   : > { %1744 = vmatpush.msra.mxu3 %v717_v14  ;;  %1677 = vmatpush.msra.mxu0 %v317_v16  ;;  %v541_v37 = vld [vmem:[%s7044_s1 + $0x850] sm:$0xff] }
  0xf0   : > { %1700 = vmatpush.msra.mxu1 %v445_v17  ;;  %1723 = vmatpush.msra.mxu2 %v573_v18  ;;  %v677_v38 = vld [vmem:[%s7044_s1 + $0xc90] sm:$0xff] }
  0xf1   : > { %1745 = vmatpush.msra.mxu3 %v709_v20  ;;  %1678 = vmatpush.msra.mxu0 %v309_v23  ;;  %v277_v39 = vld [vmem:[%s7044_s1 + $0x10] sm:$0xff] }
  0xf2   : > { %1701 = vmatpush.msra.mxu1 %v437_v26  ;;  %1724 = vmatpush.msra.mxu2 %v565_v27  ;;  %v405_v40 = vld [vmem:[%s7044_s1 + $0x410] sm:$0xff] }
  0xf3   : > { %1746 = vmatpush.msra.mxu3 %v701_v43  ;;  %1679 = vmatpush.msra.mxu0 %v301_v28  ;;  %v533_v41 = vld [vmem:[%s7044_s1 + $0x810] sm:$0xff] }
  0xf4   : > { %1702 = vmatpush.msra.mxu1 %v429_v31  ;;  %1725 = vmatpush.msra.mxu2 %v557_v48  ;;  %v669_v63 = vld [vmem:[%s7044_s1 + $0xc50] sm:$0xff] }
  0xf5   : > { %1747 = vmatpush.msra.mxu3 %v693_v32  ;;  %1680 = vmatpush.msra.mxu0 %v293_v49  ;;  %v909_v42 = vld [vmem:[%s7044_s1 + $0x13d0] sm:$0xff]  ;;  %v4474_v49 = vld [vmem:[%s3586_s30] sm:$0xff] }
  0xf6   : > { %1703 = vmatpush.msra.mxu1 %v421_v33  ;;  %1726 = vmatpush.msra.mxu2 %v549_v34  ;;  %v1037_v44 = vld [vmem:[%s7044_s1 + $0x17d0] sm:$0xff]  ;;  %v4481_v34 = vld [vmem:[%s3586_s30 + $0x18] sm:$0xff] }
  0xf7   : > { %1748 = vmatpush.msra.mxu3 %v685_v35  ;;  %1681 = vmatpush.msra.mxu0 %v285_v54  ;;  %v1165_v4 = vld [vmem:[%s7044_s1 + $0x1bd0] sm:$0xff] }
  0xf8   : > { %1704 = vmatpush.msra.mxu1 %v413_v36  ;;  %1727 = vmatpush.msra.mxu2 %v541_v37  ;;  %v901_v45 = vld [vmem:[%s7044_s1 + $0x1390] sm:$0xff] }
  0xf9   : > { %1749 = vmatpush.msra.mxu3 %v677_v38  ;;  %1640 = vmatmul.f32.gmra.mxu2 %v3889_v15  ;;  %v661_v15 = vld [vmem:[%s7044_s1 + $0xc10] sm:$0xff]  ;;  %v4497_v38 = vld [vmem:[%s3586_s30 + $0x8] sm:$0xff] }
  0xfa   : > { %1682 = vmatpush.msra.mxu0 %v277_v39  ;;  %1705 = vmatpush.msra.mxu1 %v405_v40  ;;  %v1029_v5 = vld [vmem:[%s7044_s1 + $0x1790] sm:$0xff] }
  0xfb   : > { %1728 = vmatpush.msra.mxu2 %v533_v41  ;;  %1750 = vmatpush.msra.mxu3 %v669_v63  ;;  %v1293_v46 = vld [vmem:[%s7044_s1 + $0x1fd0] sm:$0xff] }
  0xfc   : > { %1594 = vmatmul.f32.gmra.mxu0 %v3904_v21  ;;  %1663 = vmatmul.f32.gmra.mxu3 %v3908_v22  ;;  %v1157_v21 = vld [vmem:[%s7044_s1 + $0x1b90] sm:$0xff] }
  0xfd   : > { %1759 = vmatpush.msrb.mxu0 %v909_v42  ;;  %1782 = vmatpush.msrb.mxu1 %v1037_v44  ;;  %v893_v22 = vld [vmem:[%s7044_s1 + $0x1350] sm:$0xff] }
  0xfe   : > { %1805 = vmatpush.msrb.mxu2 %v1165_v4  ;;  %1751 = vmatpush.msra.mxu3 %v661_v15  ;;  %v1021_v47 = vld [vmem:[%s7044_s1 + $0x1750] sm:$0xff] }
  0xff   : > { %1617 = vmatmul.f32.gmra.mxu1 %v3924_v29  ;;  %1760 = vmatpush.msrb.mxu0 %v901_v45  ;;  %v1149_v50 = vld [vmem:[%s7044_s1 + $0x1b50] sm:$0xff] }
 0x100   : > { %1783 = vmatpush.msrb.mxu1 %v1029_v5  ;;  %v1285_v10 = vld [vmem:[%s7044_s1 + $0x1f90] sm:$0xff]  ;;  %1806 = vmatpush.msrb.mxu2 %v1157_v21  ;;  %v398_v5 = vld [vmem:[%s7044_s1 + $0x3d8] sm:$0xff] }
 0x101   : > { %1828 = vmatpush.msrb.mxu3 %v1293_v46  ;;  %v885_v29 = vld [vmem:[%s7044_s1 + $0x1310] sm:$0xff]  ;;  %1761 = vmatpush.msrb.mxu0 %v893_v22  ;;  %v526_v21 = vld [vmem:[%s7044_s1 + $0x7d8] sm:$0xff]  ;;  %v4538_v22 = vld [vmem:[%s3586_s30 + $0x40] sm:$0xff] }
 0x102   : > { %v1013_v51 = vld [vmem:[%s7044_s1 + $0x1710] sm:$0xff]  ;;  %1784 = vmatpush.msrb.mxu1 %v1021_v47  ;;  %1807 = vmatpush.msrb.mxu2 %v1149_v50  ;;  %v654_v46 = vld [vmem:[%s7044_s1 + $0xbd8] sm:$0xff] }
 0x103   : > { %v1141_v52 = vld [vmem:[%s7044_s1 + $0x1b10] sm:$0xff]  ;;  %1829 = vmatpush.msrb.mxu3 %v1285_v10  ;;  %1762 = vmatpush.msrb.mxu0 %v885_v29  ;;  %v4545_v50 = vld [vmem:[%s3586_s30 + $0x58] sm:$0xff] }
 0x104   : > { %v1277_v53 = vld [vmem:[%s7044_s1 + $0x1f50] sm:$0xff]  ;;  %1785 = vmatpush.msrb.mxu1 %v1013_v51  ;;  %1808 = vmatpush.msrb.mxu2 %v1141_v52  ;;  %v390_v10 = vld [vmem:[%s7044_s1 + $0x398] sm:$0xff] }
 0x105   : > { %v877_v55 = vld [vmem:[%s7044_s1 + $0x12d0] sm:$0xff]  ;;  %1830 = vmatpush.msrb.mxu3 %v1277_v53  ;;  %1683 = vmatmul.f32.vlgmr.msra.gmra.mxu0 %v4474_v49  ;;  %v518_v29 = vld [vmem:[%s7044_s1 + $0x798] sm:$0xff]  ;;  %v4561_v53 = vld [vmem:[%s3586_s30 + $0x48] sm:$0xff] }
 0x106   : > { %v1005_v56 = vld [vmem:[%s7044_s1 + $0x16d0] sm:$0xff]  ;;  %1763 = vmatpush.msrb.mxu0 %v877_v55  ;;  %1752 = vmatmul.f32.vlgmr.msra.gmra.mxu3 %v4481_v34  ;;  %v646_v51 = vld [vmem:[%s7044_s1 + $0xb98] sm:$0xff] }
 0x107   : > { %v1133_v57 = vld [vmem:[%s7044_s1 + $0x1ad0] sm:$0xff]  ;;  %1786 = vmatpush.msrb.mxu1 %v1005_v56  ;;  %v782_v52 = vld [vmem:[%s7044_s1 + $0xfd8] sm:$0xff] }
 0x108   : > { %v1269_v19 = vld [vmem:[%s7044_s1 + $0x1f10] sm:$0xff]  ;;  %1809 = vmatpush.msrb.mxu2 %v1133_v57  ;;  %1706 = vmatmul.f32.vlgmr.msra.gmra.mxu1 %v4497_v38  ;;  %v382_v55 = vld [vmem:[%s7044_s1 + $0x358] sm:$0xff] }
 0x109   : > { %v869_v58 = vld [vmem:[%s7044_s1 + $0x1290] sm:$0xff]  ;;  %1831 = vmatpush.msrb.mxu3 %v1269_v19  ;;  %v510_v56 = vld [vmem:[%s7044_s1 + $0x758] sm:$0xff] }
 0x10a   : > { %v997_v59 = vld [vmem:[%s7044_s1 + $0x1690] sm:$0xff]  ;;  %1764 = vmatpush.msrb.mxu0 %v869_v58  ;;  %v638_v57 = vld [vmem:[%s7044_s1 + $0xb58] sm:$0xff] }
 0x10b   : > { %v1125_v24 = vld [vmem:[%s7044_s1 + $0x1a90] sm:$0xff]  ;;  %1787 = vmatpush.msrb.mxu1 %v997_v59  ;;  %v774_v19 = vld [vmem:[%s7044_s1 + $0xf98] sm:$0xff] }
 0x10c   : > { %v1261_v60 = vld [vmem:[%s7044_s1 + $0x1ed0] sm:$0xff]  ;;  %1810 = vmatpush.msrb.mxu2 %v1125_v24  ;;  %v374_v58 = vld [vmem:[%s7044_s1 + $0x318] sm:$0xff] }
 0x10d   : > { %v861_v25 = vld [vmem:[%s7044_s1 + $0x1250] sm:$0xff]  ;;  %1832 = vmatpush.msrb.mxu3 %v1261_v60  ;;  %1686 = vmatmul.f32.gmra.mxu0 %v4538_v22  ;;  %v502_v59 = vld [vmem:[%s7044_s1 + $0x718] sm:$0xff] }
 0x10e   : > { %v989_v61 = vld [vmem:[%s7044_s1 + $0x1650] sm:$0xff]  ;;  %1765 = vmatpush.msrb.mxu0 %v861_v25  ;;  %1755 = vmatmul.f32.gmra.mxu3 %v4545_v50  ;;  %v630_v24 = vld [vmem:[%s7044_s1 + $0xb18] sm:$0xff] }
 0x10f   : > { %v1117_v62 = vld [vmem:[%s7044_s1 + $0x1a50] sm:$0xff]  ;;  %1788 = vmatpush.msrb.mxu1 %v989_v61  ;;  %v766_v60 = vld [vmem:[%s7044_s1 + $0xf58] sm:$0xff] }
 0x110   : > { %v1253_v0 = vld [vmem:[%s7044_s1 + $0x1e90] sm:$0xff]  ;;  %1811 = vmatpush.msrb.mxu2 %v1117_v62  ;;  %1709 = vmatmul.f32.gmra.mxu1 %v4561_v53  ;;  %v366_v61 = vld [vmem:[%s7044_s1 + $0x2d8] sm:$0xff] }
 0x111   : > { %v853_v30 = vld [vmem:[%s7044_s1 + $0x1210] sm:$0xff]  ;;  %1833 = vmatpush.msrb.mxu3 %v1253_v0  ;;  %v494_v62 = vld [vmem:[%s7044_s1 + $0x6d8] sm:$0xff] }
 0x112   : > { %v981_v1 = vld [vmem:[%s7044_s1 + $0x1610] sm:$0xff]  ;;  %1766 = vmatpush.msrb.mxu0 %v853_v30  ;;  %v622_v0 = vld [vmem:[%s7044_s1 + $0xad8] sm:$0xff]  ;;  %v4602_v30 = vld [vmem:[%s3586_s30 + $0x20] sm:$0xff] }
 0x113   : > { %v1109_v2 = vld [vmem:[%s7044_s1 + $0x1a10] sm:$0xff]  ;;  %1789 = vmatpush.msrb.mxu1 %v981_v1  ;;  %v758_v1 = vld [vmem:[%s7044_s1 + $0xf18] sm:$0xff] }
 0x114   : > { %v1245_v3 = vld [vmem:[%s7044_s1 + $0x1e50] sm:$0xff]  ;;  %1812 = vmatpush.msrb.mxu2 %v1109_v2  ;;  %v4609_v2 = vld [vmem:[%s3586_s30 + $0x38] sm:$0xff] }
 0x115   : > { %v845_v6 = vld [vmem:[%s7044_s1 + $0x11d0] sm:$0xff]  ;;  %1834 = vmatpush.msrb.mxu3 %v1245_v3  ;;  %v358_v3 = vld [vmem:[%s7044_s1 + $0x298] sm:$0xff] }
 0x116   : > { %v973_v7 = vld [vmem:[%s7044_s1 + $0x15d0] sm:$0xff]  ;;  %1767 = vmatpush.msrb.mxu0 %v845_v6  ;;  %v486_v6 = vld [vmem:[%s7044_s1 + $0x698] sm:$0xff] }
 0x117   : > { %v1101_v8 = vld [vmem:[%s7044_s1 + $0x19d0] sm:$0xff]  ;;  %1790 = vmatpush.msrb.mxu1 %v973_v7  ;;  %v614_v7 = vld [vmem:[%s7044_s1 + $0xa98] sm:$0xff] }
 0x118   : > { %v1237_v9 = vld [vmem:[%s7044_s1 + $0x1e10] sm:$0xff]  ;;  %1813 = vmatpush.msrb.mxu2 %v1101_v8  ;;  %v750_v8 = vld [vmem:[%s7044_s1 + $0xed8] sm:$0xff] }
 0x119   : > { %v837_v11 = vld [vmem:[%s7044_s1 + $0x1190] sm:$0xff]  ;;  %1835 = vmatpush.msrb.mxu3 %v1237_v9  ;;  %v4625_v9 = vld [vmem:[%s3586_s30 + $0x28] sm:$0xff] }
 0x11a   : > { %v965_v12 = vld [vmem:[%s7044_s1 + $0x1590] sm:$0xff]  ;;  %1768 = vmatpush.msrb.mxu0 %v837_v11  ;;  %v350_v11 = vld [vmem:[%s7044_s1 + $0x258] sm:$0xff] }
 0x11b   : > { %v1093_v13 = vld [vmem:[%s7044_s1 + $0x1990] sm:$0xff]  ;;  %1791 = vmatpush.msrb.mxu1 %v965_v12  ;;  %v478_v12 = vld [vmem:[%s7044_s1 + $0x658] sm:$0xff] }
 0x11c   : > { %v1229_v14 = vld [vmem:[%s7044_s1 + $0x1dd0] sm:$0xff]  ;;  %1814 = vmatpush.msrb.mxu2 %v1093_v13  ;;  %v606_v13 = vld [vmem:[%s7044_s1 + $0xa58] sm:$0xff] }
 0x11d   : > { %v829_v16 = vld [vmem:[%s7044_s1 + $0x1150] sm:$0xff]  ;;  %1836 = vmatpush.msrb.mxu3 %v1229_v14  ;;  %v742_v14 = vld [vmem:[%s7044_s1 + $0xe98] sm:$0xff] }
 0x11e   : > { %v957_v17 = vld [vmem:[%s7044_s1 + $0x1550] sm:$0xff]  ;;  %1769 = vmatpush.msrb.mxu0 %v829_v16  ;;  %v342_v16 = vld [vmem:[%s7044_s1 + $0x218] sm:$0xff] }
 0x11f   : > { %v1085_v18 = vld [vmem:[%s7044_s1 + $0x1950] sm:$0xff]  ;;  %1792 = vmatpush.msrb.mxu1 %v957_v17  ;;  %v470_v17 = vld [vmem:[%s7044_s1 + $0x618] sm:$0xff] }
 0x120   : > { %v1221_v20 = vld [vmem:[%s7044_s1 + $0x1d90] sm:$0xff]  ;;  %1815 = vmatpush.msrb.mxu2 %v1085_v18  ;;  %v598_v18 = vld [vmem:[%s7044_s1 + $0xa18] sm:$0xff] }
 0x121   : > { %v821_v23 = vld [vmem:[%s7044_s1 + $0x1110] sm:$0xff]  ;;  %1837 = vmatpush.msrb.mxu3 %v1221_v20  ;;  %v734_v20 = vld [vmem:[%s7044_s1 + $0xe58] sm:$0xff] }
 0x122   : > { %v949_v26 = vld [vmem:[%s7044_s1 + $0x1510] sm:$0xff]  ;;  %1770 = vmatpush.msrb.mxu0 %v821_v23  ;;  %v334_v23 = vld [vmem:[%s7044_s1 + $0x1d8] sm:$0xff] }
 0x123   : > { %v1077_v27 = vld [vmem:[%s7044_s1 + $0x1910] sm:$0xff]  ;;  %1793 = vmatpush.msrb.mxu1 %v949_v26  ;;  %v462_v26 = vld [vmem:[%s7044_s1 + $0x5d8] sm:$0xff] }
 0x124   : > { %v1213_v43 = vld [vmem:[%s7044_s1 + $0x1d50] sm:$0xff]  ;;  %1816 = vmatpush.msrb.mxu2 %v1077_v27  ;;  %v590_v27 = vld [vmem:[%s7044_s1 + $0x9d8] sm:$0xff] }
 0x125   : > { %v4461_v28 = vld [vmem:[%s3586_s30 + $0x10] sm:$0xff]  ;;  %1838 = vmatpush.msrb.mxu3 %v1213_v43  ;;  %v726_v43 = vld [vmem:[%s7044_s1 + $0xe18] sm:$0xff] }
 0x126   : > { %1729 = vmatmul.f32.vlgmr.msra.gmra.mxu2 %v4461_v28  ;;  %v813_v31 = vld [vmem:[%s7044_s1 + $0x10d0] sm:$0xff] }
 0x127   : > { %v941_v48 = vld [vmem:[%s7044_s1 + $0x14d0] sm:$0xff]  ;;  %1771 = vmatpush.msrb.mxu0 %v813_v31  ;;  %v326_v31 = vld [vmem:[%s7044_s1 + $0x198] sm:$0xff] }
 0x128   : > { %v1069_v32 = vld [vmem:[%s7044_s1 + $0x18d0] sm:$0xff]  ;;  %1794 = vmatpush.msrb.mxu1 %v941_v48  ;;  %v454_v48 = vld [vmem:[%s7044_s1 + $0x598] sm:$0xff] }
 0x129   : > { %v1205_v33 = vld [vmem:[%s7044_s1 + $0x1d10] sm:$0xff]  ;;  %1817 = vmatpush.msrb.mxu2 %v1069_v32  ;;  %v582_v32 = vld [vmem:[%s7044_s1 + $0x998] sm:$0xff] }
 0x12a   : > { %v805_v35 = vld [vmem:[%s7044_s1 + $0x1090] sm:$0xff]  ;;  %1839 = vmatpush.msrb.mxu3 %v1205_v33  ;;  %v718_v33 = vld [vmem:[%s7044_s1 + $0xdd8] sm:$0xff] }
 0x12b   : > { %v933_v54 = vld [vmem:[%s7044_s1 + $0x1490] sm:$0xff]  ;;  %1772 = vmatpush.msrb.mxu0 %v805_v35  ;;  %v318_v35 = vld [vmem:[%s7044_s1 + $0x158] sm:$0xff] }
 0x12c   : > { %v1061_v36 = vld [vmem:[%s7044_s1 + $0x1890] sm:$0xff]  ;;  %1795 = vmatpush.msrb.mxu1 %v933_v54  ;;  %v446_v54 = vld [vmem:[%s7044_s1 + $0x558] sm:$0xff] }
 0x12d   : > { %v1197_v37 = vld [vmem:[%s7044_s1 + $0x1cd0] sm:$0xff]  ;;  %1818 = vmatpush.msrb.mxu2 %v1061_v36  ;;  %v574_v36 = vld [vmem:[%s7044_s1 + $0x958] sm:$0xff] }
 0x12e   : > { %v797_v39 = vld [vmem:[%s7044_s1 + $0x1050] sm:$0xff]  ;;  %1840 = vmatpush.msrb.mxu3 %v1197_v37  ;;  %v710_v37 = vld [vmem:[%s7044_s1 + $0xd98] sm:$0xff] }
 0x12f   : > { %v925_v40 = vld [vmem:[%s7044_s1 + $0x1450] sm:$0xff]  ;;  %1773 = vmatpush.msrb.mxu0 %v797_v39  ;;  %v310_v39 = vld [vmem:[%s7044_s1 + $0x118] sm:$0xff] }
 0x130   : > { %v1053_v41 = vld [vmem:[%s7044_s1 + $0x1850] sm:$0xff]  ;;  %1796 = vmatpush.msrb.mxu1 %v925_v40  ;;  %v438_v40 = vld [vmem:[%s7044_s1 + $0x518] sm:$0xff] }
 0x131   : > { %v1189_v63 = vld [vmem:[%s7044_s1 + $0x1c90] sm:$0xff]  ;;  %1819 = vmatpush.msrb.mxu2 %v1053_v41  ;;  %v566_v41 = vld [vmem:[%s7044_s1 + $0x918] sm:$0xff] }
 0x132   : > { %v789_v42 = vld [vmem:[%s7044_s1 + $0x1010] sm:$0xff]  ;;  %1841 = vmatpush.msrb.mxu3 %v1189_v63  ;;  %v702_v63 = vld [vmem:[%s7044_s1 + $0xd58] sm:$0xff] }
 0x133   : > { %v917_v44 = vld [vmem:[%s7044_s1 + $0x1410] sm:$0xff]  ;;  %1774 = vmatpush.msrb.mxu0 %v789_v42  ;;  %v302_v42 = vld [vmem:[%s7044_s1 + $0xd8] sm:$0xff] }
 0x134   : > { %v1045_v4 = vld [vmem:[%s7044_s1 + $0x1810] sm:$0xff]  ;;  %1797 = vmatpush.msrb.mxu1 %v917_v44  ;;  %1775 = vmatmul.f32.vlgmr.msrb.gmra.mxu0 %v4602_v30  ;;  %v430_v44 = vld [vmem:[%s7044_s1 + $0x4d8] sm:$0xff] }
 0x135   : > { %v1181_v15 = vld [vmem:[%s7044_s1 + $0x1c50] sm:$0xff]  ;;  %1820 = vmatpush.msrb.mxu2 %v1045_v4  ;;  %1851 = vmatpush.msra.mxu0 %v398_v5  ;;  %v558_v4 = vld [vmem:[%s7044_s1 + $0x8d8] sm:$0xff] }
 0x136   : > { %v4525_v45 = vld [vmem:[%s3586_s30 + $0x50] sm:$0xff]  ;;  %1842 = vmatpush.msrb.mxu3 %v1181_v15  ;;  %1874 = vmatpush.msra.mxu1 %v526_v21  ;;  %v694_v15 = vld [vmem:[%s7044_s1 + $0xd18] sm:$0xff] }
 0x137   : > { %1732 = vmatmul.f32.gmra.mxu2 %v4525_v45  ;;  %v1173_v47 = vld [vmem:[%s7044_s1 + $0x1c10] sm:$0xff]  ;;  %1852 = vmatpush.msra.mxu0 %v390_v10  ;;  %v294_v5 = vld [vmem:[%s7044_s1 + $0x98] sm:$0xff] }
 0x138   : > { %1897 = vmatpush.msra.mxu2 %v654_v46  ;;  %1843 = vmatpush.msrb.mxu3 %v1173_v47  ;;  %v4589_v25 = vld [vmem:[%s3586_s30 + $0x30] sm:$0xff]  ;;  %v422_v21 = vld [vmem:[%s7044_s1 + $0x498] sm:$0xff] }
 0x139   : > { %1875 = vmatpush.msra.mxu1 %v518_v29  ;;  %1853 = vmatpush.msra.mxu0 %v382_v55  ;;  %v550_v46 = vld [vmem:[%s7044_s1 + $0x898] sm:$0xff] }
 0x13a   : > { %1898 = vmatpush.msra.mxu2 %v646_v51  ;;  %1920 = vmatpush.msra.mxu3 %v782_v52  ;;  %v686_v47 = vld [vmem:[%s7044_s1 + $0xcd8] sm:$0xff] }
 0x13b   : > { %1876 = vmatpush.msra.mxu1 %v510_v56  ;;  %1854 = vmatpush.msra.mxu0 %v374_v58  ;;  %v286_v10 = vld [vmem:[%s7044_s1 + $0x58] sm:$0xff]  ;;  %v4749_v58 = vld [vmem:[%s3586_s30 + $0x70] sm:$0xff] }
 0x13c   : > { %1899 = vmatpush.msra.mxu2 %v638_v57  ;;  %1921 = vmatpush.msra.mxu3 %v774_v19  ;;  %v414_v29 = vld [vmem:[%s7044_s1 + $0x458] sm:$0xff] }
 0x13d   : > { %1877 = vmatpush.msra.mxu1 %v502_v59  ;;  %1844 = vmatmul.f32.vlgmr.msrb.gmra.mxu3 %v4609_v2  ;;  %v542_v51 = vld [vmem:[%s7044_s1 + $0x858] sm:$0xff] }
 0x13e   : > { %1900 = vmatpush.msra.mxu2 %v630_v24  ;;  %1922 = vmatpush.msra.mxu3 %v766_v60  ;;  %v678_v52 = vld [vmem:[%s7044_s1 + $0xc98] sm:$0xff] }
 0x13f   : > { %1821 = vmatmul.f32.vlgmr.msrb.gmra.mxu2 %v4589_v25  ;;  %1855 = vmatpush.msra.mxu0 %v366_v61  ;;  %v278_v55 = vld [vmem:[%s7044_s1 + $0x18] sm:$0xff]  ;;  %v4762_v61 = vld [vmem:[%s3586_s30 + $0x60] sm:$0xff] }
 0x140   : > { %1878 = vmatpush.msra.mxu1 %v494_v62  ;;  %1901 = vmatpush.msra.mxu2 %v622_v0  ;;  %v406_v56 = vld [vmem:[%s7044_s1 + $0x418] sm:$0xff] }
 0x141   : > { %1923 = vmatpush.msra.mxu3 %v758_v1  ;;  %1798 = vmatmul.f32.vlgmr.msrb.gmra.mxu1 %v4625_v9  ;;  %v534_v57 = vld [vmem:[%s7044_s1 + $0x818] sm:$0xff] }
 0x142   : > { %1856 = vmatpush.msra.mxu0 %v358_v3  ;;  %1879 = vmatpush.msra.mxu1 %v486_v6  ;;  %v670_v19 = vld [vmem:[%s7044_s1 + $0xc58] sm:$0xff] }
 0x143   : > { %1902 = vmatpush.msra.mxu2 %v614_v7  ;;  %1924 = vmatpush.msra.mxu3 %v750_v8  ;;  %v910_v59 = vld [vmem:[%s7044_s1 + $0x13d8] sm:$0xff]  ;;  %v4785_v8 = vld [vmem:[%s3586_s30 + $0x68] sm:$0xff] }
 0x144   : > { %1857 = vmatpush.msra.mxu0 %v350_v11  ;;  %1880 = vmatpush.msra.mxu1 %v478_v12  ;;  %v1038_v24 = vld [vmem:[%s7044_s1 + $0x17d8] sm:$0xff] }
 0x145   : > { %1903 = vmatpush.msra.mxu2 %v606_v13  ;;  %1925 = vmatpush.msra.mxu3 %v742_v14  ;;  %v1166_v60 = vld [vmem:[%s7044_s1 + $0x1bd8] sm:$0xff] }
 0x146   : > { %1858 = vmatpush.msra.mxu0 %v342_v16  ;;  %1881 = vmatpush.msra.mxu1 %v470_v17  ;;  %v662_v62 = vld [vmem:[%s7044_s1 + $0xc18] sm:$0xff] }
 0x147   : > { %1904 = vmatpush.msra.mxu2 %v598_v18  ;;  %1926 = vmatpush.msra.mxu3 %v734_v20  ;;  %v4769_v0 = vld [vmem:[%s3586_s30 + $0x78] sm:$0xff] }
 0x148   : > { %1859 = vmatpush.msra.mxu0 %v334_v23  ;;  %1882 = vmatpush.msra.mxu1 %v462_v26  ;;  %v902_v1 = vld [vmem:[%s7044_s1 + $0x1398] sm:$0xff]  ;;  %v4812_v23 = vpop.f32.mrf.mxu0 }
 0x149   : > { %1905 = vmatpush.msra.mxu2 %v590_v27  ;;  %1927 = vmatpush.msra.mxu3 %v726_v43  ;;  %v1030_v3 = vld [vmem:[%s7044_s1 + $0x1798] sm:$0xff] }
 0x14a   : > { %1860 = vmatpush.msra.mxu0 %v326_v31  ;;  %1883 = vmatpush.msra.mxu1 %v454_v48  ;;  %v1158_v6 = vld [vmem:[%s7044_s1 + $0x1b98] sm:$0xff] }
 0x14b   : > { %1906 = vmatpush.msra.mxu2 %v582_v32  ;;  %1928 = vmatpush.msra.mxu3 %v718_v33  ;;  %v1294_v7 = vld [vmem:[%s7044_s1 + $0x1fd8] sm:$0xff]  ;;  %v4832_v33 = vpop.f32.mrf.mxu1 }
 0x14c   : > { %1861 = vmatpush.msra.mxu0 %v318_v35  ;;  %1884 = vmatpush.msra.mxu1 %v446_v54  ;;  %v894_v11 = vld [vmem:[%s7044_s1 + $0x1358] sm:$0xff] }
 0x14d   : > { %1907 = vmatpush.msra.mxu2 %v574_v36  ;;  %1929 = vmatpush.msra.mxu3 %v710_v37  ;;  %v1022_v12 = vld [vmem:[%s7044_s1 + $0x1758] sm:$0xff]  ;;  %v4840_v36 = vpop.f32.mrf.mxu2 }
 0x14e   : > { %1862 = vmatpush.msra.mxu0 %v310_v39  ;;  %1885 = vmatpush.msra.mxu1 %v438_v40  ;;  %v1150_v13 = vld [vmem:[%s7044_s1 + $0x1b58] sm:$0xff] }
 0x14f   : > { %1908 = vmatpush.msra.mxu2 %v566_v41  ;;  %1930 = vmatpush.msra.mxu3 %v702_v63  ;;  %v1286_v14 = vld [vmem:[%s7044_s1 + $0x1f98] sm:$0xff] }
 0x150   : > { %1863 = vmatpush.msra.mxu0 %v302_v42  ;;  %1886 = vmatpush.msra.mxu1 %v430_v44  ;;  %v886_v16 = vld [vmem:[%s7044_s1 + $0x1318] sm:$0xff]  ;;  %v4860_v44 = vpop.f32.mrf.mxu3 }
 0x151   : > { %1909 = vmatpush.msra.mxu2 %v558_v4  ;;  %1931 = vmatpush.msra.mxu3 %v694_v15  ;;  %v1014_v17 = vld [vmem:[%s7044_s1 + $0x1718] sm:$0xff] }
 0x152   : > { %1864 = vmatpush.msra.mxu0 %v294_v5  ;;  %1887 = vmatpush.msra.mxu1 %v422_v21  ;;  %v1142_v18 = vld [vmem:[%s7044_s1 + $0x1b18] sm:$0xff] }
 0x153   : > { %1910 = vmatpush.msra.mxu2 %v550_v46  ;;  %1932 = vmatpush.msra.mxu3 %v686_v47  ;;  %v1278_v20 = vld [vmem:[%s7044_s1 + $0x1f58] sm:$0xff] }
 0x154   : > { %1865 = vmatpush.msra.mxu0 %v286_v10  ;;  %1888 = vmatpush.msra.mxu1 %v414_v29  ;;  %v878_v26 = vld [vmem:[%s7044_s1 + $0x12d8] sm:$0xff]  ;;  %v4880_v10 = vpop.f32.mrf.mxu0 }
 0x155   : > { %1911 = vmatpush.msra.mxu2 %v542_v51  ;;  %1933 = vmatpush.msra.mxu3 %v678_v52  ;;  %v1006_v27 = vld [vmem:[%s7044_s1 + $0x16d8] sm:$0xff] }
 0x156   : > { %1824 = vmatmul.f32.gmra.mxu2 %v4749_v58  ;;  %1866 = vmatpush.msra.mxu0 %v278_v55  ;;  %v1134_v43 = vld [vmem:[%s7044_s1 + $0x1ad8] sm:$0xff] }
 0x157   : > { %1889 = vmatpush.msra.mxu1 %v406_v56  ;;  %1912 = vmatpush.msra.mxu2 %v534_v57  ;;  %v1270_v31 = vld [vmem:[%s7044_s1 + $0x1f18] sm:$0xff] }
 0x158   : > { %1934 = vmatpush.msra.mxu3 %v670_v19  ;;  %1778 = vmatmul.f32.gmra.mxu0 %v4762_v61  ;;  %v870_v48 = vld [vmem:[%s7044_s1 + $0x1298] sm:$0xff]  ;;  %v4900_v19 = vpop.f32.mrf.mxu1 }
 0x159   : > { %1847 = vmatmul.f32.gmra.mxu3 %v4769_v0  ;;  %1943 = vmatpush.msrb.mxu0 %v910_v59  ;;  %v998_v32 = vld [vmem:[%s7044_s1 + $0x1698] sm:$0xff] }
 0x15a   : > { %1966 = vmatpush.msrb.mxu1 %v1038_v24  ;;  %1989 = vmatpush.msrb.mxu2 %v1166_v60  ;;  %v1126_v35 = vld [vmem:[%s7044_s1 + $0x1a98] sm:$0xff]  ;;  %v4908_v60 = vpop.f32.mrf.mxu2 }
 0x15b   : > { %1935 = vmatpush.msra.mxu3 %v662_v62  ;;  %1801 = vmatmul.f32.gmra.mxu1 %v4785_v8  ;;  %v1262_v54 = vld [vmem:[%s7044_s1 + $0x1ed8] sm:$0xff] }
 0x15c   : > { %1944 = vmatpush.msrb.mxu0 %v902_v1  ;;  %1967 = vmatpush.msrb.mxu1 %v1030_v3  ;;  %v862_v37 = vld [vmem:[%s7044_s1 + $0x1258] sm:$0xff] }
 0x15d   : > { %1990 = vmatpush.msrb.mxu2 %v1158_v6  ;;  %2012 = vmatpush.msrb.mxu3 %v1294_v7  ;;  %v990_v39 = vld [vmem:[%s7044_s1 + $0x1658] sm:$0xff]  ;;  %v4922_v7 = vpop.f32.mrf.mxu3 }
 0x15e   : > { %1945 = vmatpush.msrb.mxu0 %v894_v11  ;;  %1968 = vmatpush.msrb.mxu1 %v1022_v12  ;;  %v1118_v40 = vld [vmem:[%s7044_s1 + $0x1a58] sm:$0xff] }
 0x15f   : > { %1991 = vmatpush.msrb.mxu2 %v1150_v13  ;;  %2013 = vmatpush.msrb.mxu3 %v1286_v14  ;;  %v1254_v41 = vld [vmem:[%s7044_s1 + $0x1e98] sm:$0xff]  ;;  %v4938_v14 = vpop.f32.mrf.mxu0 }
 0x160   : > { %1946 = vmatpush.msrb.mxu0 %v886_v16  ;;  %1969 = vmatpush.msrb.mxu1 %v1014_v17  ;;  %v854_v63 = vld [vmem:[%s7044_s1 + $0x1218] sm:$0xff] }
 0x161   : > { %1992 = vmatpush.msrb.mxu2 %v1142_v18  ;;  %2014 = vmatpush.msrb.mxu3 %v1278_v20  ;;  %v982_v42 = vld [vmem:[%s7044_s1 + $0x1618] sm:$0xff] }
 0x162   : > { %1947 = vmatpush.msrb.mxu0 %v878_v26  ;;  %1970 = vmatpush.msrb.mxu1 %v1006_v27  ;;  %v1110_v4 = vld [vmem:[%s7044_s1 + $0x1a18] sm:$0xff]  ;;  %v4960_v26 = vpop.f32.mrf.mxu1 }
 0x163   : > { %1993 = vmatpush.msrb.mxu2 %v1134_v43  ;;  %2015 = vmatpush.msrb.mxu3 %v1270_v31  ;;  %v1246_v15 = vld [vmem:[%s7044_s1 + $0x1e58] sm:$0xff]  ;;  %v4968_v43 = vpop.f32.mrf.mxu2 }
 0x164   : > { %1948 = vmatpush.msrb.mxu0 %v870_v48  ;;  %1971 = vmatpush.msrb.mxu1 %v998_v32  ;;  %v846_v5 = vld [vmem:[%s7044_s1 + $0x11d8] sm:$0xff] }
 0x165   : > { %1994 = vmatpush.msrb.mxu2 %v1126_v35  ;;  %2016 = vmatpush.msrb.mxu3 %v1262_v54  ;;  %v974_v21 = vld [vmem:[%s7044_s1 + $0x15d8] sm:$0xff]  ;;  %v4982_v54 = vpop.f32.mrf.mxu3 }
 0x166   : > { %1949 = vmatpush.msrb.mxu0 %v862_v37  ;;  %1972 = vmatpush.msrb.mxu1 %v990_v39  ;;  %v1102_v46 = vld [vmem:[%s7044_s1 + $0x19d8] sm:$0xff]  ;;  %v399_v37 = vld [vmem:[%s7044_s1 + $0x3e0] sm:$0xff] }
 0x167   : > { %1995 = vmatpush.msrb.mxu2 %v1118_v40  ;;  %2017 = vmatpush.msrb.mxu3 %v1254_v41  ;;  %v1238_v47 = vld [vmem:[%s7044_s1 + $0x1e18] sm:$0xff]  ;;  %v4988_v39 = vpop.f32.mrf.mxu0  ;;  %v527_v40 = vld [vmem:[%s7044_s1 + $0x7e0] sm:$0xff] }
 0x168   : > { %1950 = vmatpush.msrb.mxu0 %v854_v63  ;;  %1973 = vmatpush.msrb.mxu1 %v982_v42  ;;  %v838_v29 = vld [vmem:[%s7044_s1 + $0x1198] sm:$0xff]  ;;  %v655_v41 = vld [vmem:[%s7044_s1 + $0xbe0] sm:$0xff] }
 0x169   : > { %1996 = vmatpush.msrb.mxu2 %v1110_v4  ;;  %2018 = vmatpush.msrb.mxu3 %v1246_v15  ;;  %v966_v51 = vld [vmem:[%s7044_s1 + $0x1598] sm:$0xff]  ;;  %v391_v63 = vld [vmem:[%s7044_s1 + $0x3a0] sm:$0xff] }
 0x16a   : > { %1951 = vmatpush.msrb.mxu0 %v846_v5  ;;  %1974 = vmatpush.msrb.mxu1 %v974_v21  ;;  %v1094_v52 = vld [vmem:[%s7044_s1 + $0x1998] sm:$0xff]  ;;  %v519_v42 = vld [vmem:[%s7044_s1 + $0x7a0] sm:$0xff]  ;;  %v5007_v4 = vpop.f32.mrf.mxu1 }
 0x16b   : > { %v1230_v55 = vld [vmem:[%s7044_s1 + $0x1dd8] sm:$0xff]  ;;  %1997 = vmatpush.msrb.mxu2 %v1102_v46  ;;  %2019 = vmatpush.msrb.mxu3 %v1238_v47  ;;  %v5015_v15 = vpop.f32.mrf.mxu2  ;;  %v383_v5 = vld [vmem:[%s7044_s1 + $0x360] sm:$0xff] }
 0x16c   : > { %v830_v56 = vld [vmem:[%s7044_s1 + $0x1158] sm:$0xff]  ;;  %1952 = vmatpush.msrb.mxu0 %v838_v29  ;;  %1975 = vmatpush.msrb.mxu1 %v966_v51  ;;  %v511_v21 = vld [vmem:[%s7044_s1 + $0x760] sm:$0xff] }
 0x16d   : > { %v958_v57 = vld [vmem:[%s7044_s1 + $0x1558] sm:$0xff]  ;;  %1998 = vmatpush.msrb.mxu2 %v1094_v52  ;;  %2020 = vmatpush.msrb.mxu3 %v1230_v55  ;;  %v639_v46 = vld [vmem:[%s7044_s1 + $0xb60] sm:$0xff]  ;;  %v5033_v29 = vpop.f32.mrf.mxu3 }
 0x16e   : > { %v1086_v59 = vld [vmem:[%s7044_s1 + $0x1958] sm:$0xff]  ;;  %1953 = vmatpush.msrb.mxu0 %v830_v56  ;;  %1976 = vmatpush.msrb.mxu1 %v958_v57  ;;  %v775_v47 = vld [vmem:[%s7044_s1 + $0xfa0] sm:$0xff]  ;;  %7048 = vst [vmem:[#allocation2_spill] sm:$0xff] %v5033_v29 }
 0x16f   : > { %v1222_v24 = vld [vmem:[%s7044_s1 + $0x1d98] sm:$0xff]  ;;  %1999 = vmatpush.msrb.mxu2 %v1086_v59  ;;  %1867 = vmatmul.f32.vlgmr.msra.gmra.mxu0 %v4474_v49  ;;  %v503_v51 = vld [vmem:[%s7044_s1 + $0x720] sm:$0xff]  ;;  %v5041_v55 = vpop.f32.mrf.mxu0 }
 0x170   : > { %v822_v62 = vld [vmem:[%s7044_s1 + $0x1118] sm:$0xff]  ;;  %2021 = vmatpush.msrb.mxu3 %v1222_v24  ;;  %1913 = vmatmul.f32.vlgmr.msra.gmra.mxu2 %v4461_v28  ;;  %v631_v52 = vld [vmem:[%s7044_s1 + $0xb20] sm:$0xff] }
 0x171   : > { %v950_v1 = vld [vmem:[%s7044_s1 + $0x1518] sm:$0xff]  ;;  %1954 = vmatpush.msrb.mxu0 %v822_v62  ;;  %1936 = vmatmul.f32.vlgmr.msra.gmra.mxu3 %v4481_v34  ;;  %v767_v56 = vld [vmem:[%s7044_s1 + $0xf60] sm:$0xff] }
 0x172   : > { %v1078_v3 = vld [vmem:[%s7044_s1 + $0x1918] sm:$0xff]  ;;  %1977 = vmatpush.msrb.mxu1 %v950_v1  ;;  %v367_v57 = vld [vmem:[%s7044_s1 + $0x2e0] sm:$0xff]  ;;  %v5056_v62 = vpop.f32.mrf.mxu1 }
 0x173   : > { %v1214_v6 = vld [vmem:[%s7044_s1 + $0x1d58] sm:$0xff]  ;;  %2000 = vmatpush.msrb.mxu2 %v1078_v3  ;;  %1890 = vmatmul.f32.vlgmr.msra.gmra.mxu1 %v4497_v38  ;;  %v495_v59 = vld [vmem:[%s7044_s1 + $0x6e0] sm:$0xff]  ;;  %v5062_v1 = vpop.f32.mrf.mxu2 }
 0x174   : > { %v814_v11 = vld [vmem:[%s7044_s1 + $0x10d8] sm:$0xff]  ;;  %2022 = vmatpush.msrb.mxu3 %v1214_v6  ;;  %v623_v24 = vld [vmem:[%s7044_s1 + $0xae0] sm:$0xff] }
 0x175   : > { %v942_v12 = vld [vmem:[%s7044_s1 + $0x14d8] sm:$0xff]  ;;  %1955 = vmatpush.msrb.mxu0 %v814_v11  ;;  %v359_v3 = vld [vmem:[%s7044_s1 + $0x2a0] sm:$0xff] }
 0x176   : > { %v1070_v13 = vld [vmem:[%s7044_s1 + $0x18d8] sm:$0xff]  ;;  %1978 = vmatpush.msrb.mxu1 %v942_v12  ;;  %v487_v6 = vld [vmem:[%s7044_s1 + $0x6a0] sm:$0xff] }
 0x177   : > { %v1206_v28 = vld [vmem:[%s7044_s1 + $0x1d18] sm:$0xff]  ;;  %2001 = vmatpush.msrb.mxu2 %v1070_v13  ;;  %1870 = vmatmul.f32.gmra.mxu0 %v4538_v22  ;;  %v647_v22 = vld [vmem:[%s7044_s1 + $0xba0] sm:$0xff]  ;;  %v5084_v13 = vpop.f32.mrf.mxu3 }
 0x178   : > { %v806_v16 = vld [vmem:[%s7044_s1 + $0x1098] sm:$0xff]  ;;  %2023 = vmatpush.msrb.mxu3 %v1206_v28  ;;  %1916 = vmatmul.f32.gmra.mxu2 %v4525_v45  ;;  %v751_v11 = vld [vmem:[%s7044_s1 + $0xee0] sm:$0xff] }
 0x179   : > { %v934_v17 = vld [vmem:[%s7044_s1 + $0x1498] sm:$0xff]  ;;  %1956 = vmatpush.msrb.mxu0 %v806_v16  ;;  %1939 = vmatmul.f32.gmra.mxu3 %v4545_v50  ;;  %v783_v50 = vld [vmem:[%s7044_s1 + $0xfe0] sm:$0xff] }
 0x17a   : > { %v1062_v49 = vld [vmem:[%s7044_s1 + $0x1898] sm:$0xff]  ;;  %1979 = vmatpush.msrb.mxu1 %v934_v17  ;;  %v479_v12 = vld [vmem:[%s7044_s1 + $0x660] sm:$0xff] }
 0x17b   : > { %v1198_v18 = vld [vmem:[%s7044_s1 + $0x1cd8] sm:$0xff]  ;;  %2002 = vmatpush.msrb.mxu2 %v1062_v49  ;;  %1893 = vmatmul.f32.gmra.mxu1 %v4561_v53  ;;  %v375_v53 = vld [vmem:[%s7044_s1 + $0x320] sm:$0xff] }
 0x17c   : > { %v798_v34 = vld [vmem:[%s7044_s1 + $0x1058] sm:$0xff]  ;;  %2024 = vmatpush.msrb.mxu3 %v1198_v18  ;;  %v607_v28 = vld [vmem:[%s7044_s1 + $0xa60] sm:$0xff] }
 0x17d   : > { %v926_v20 = vld [vmem:[%s7044_s1 + $0x1458] sm:$0xff]  ;;  %1957 = vmatpush.msrb.mxu0 %v798_v34  ;;  %v343_v16 = vld [vmem:[%s7044_s1 + $0x220] sm:$0xff]  ;;  %v5104_v34 = vpop.f32.mrf.mxu0 }
 0x17e   : > { %v1054_v27 = vld [vmem:[%s7044_s1 + $0x1858] sm:$0xff]  ;;  %1980 = vmatpush.msrb.mxu1 %v926_v20  ;;  %v471_v17 = vld [vmem:[%s7044_s1 + $0x620] sm:$0xff] }
 0x17f   : > { %v1190_v38 = vld [vmem:[%s7044_s1 + $0x1c98] sm:$0xff]  ;;  %2003 = vmatpush.msrb.mxu2 %v1054_v27  ;;  %v599_v49 = vld [vmem:[%s7044_s1 + $0xa20] sm:$0xff] }
 0x180   : > { %v790_v31 = vld [vmem:[%s7044_s1 + $0x1018] sm:$0xff]  ;;  %2025 = vmatpush.msrb.mxu3 %v1190_v38  ;;  %v735_v18 = vld [vmem:[%s7044_s1 + $0xe60] sm:$0xff] }
 0x181   : > { %v918_v48 = vld [vmem:[%s7044_s1 + $0x1418] sm:$0xff]  ;;  %1958 = vmatpush.msrb.mxu0 %v790_v31  ;;  %v335_v20 = vld [vmem:[%s7044_s1 + $0x1e0] sm:$0xff] }
 0x182   : > { %v1046_v32 = vld [vmem:[%s7044_s1 + $0x1818] sm:$0xff]  ;;  %1981 = vmatpush.msrb.mxu1 %v918_v48  ;;  %1959 = vmatmul.f32.vlgmr.msrb.gmra.mxu0 %v4602_v30  ;;  %v615_v30 = vld [vmem:[%s7044_s1 + $0xaa0] sm:$0xff] }
 0x183   : > { %v1182_v35 = vld [vmem:[%s7044_s1 + $0x1c58] sm:$0xff]  ;;  %2004 = vmatpush.msrb.mxu2 %v1046_v32  ;;  %2035 = vmatpush.msra.mxu0 %v399_v37  ;;  %v463_v27 = vld [vmem:[%s7044_s1 + $0x5e0] sm:$0xff] }
 0x184   : > { %2026 = vmatpush.msrb.mxu3 %v1182_v35  ;;  %v1174_v45 = vld [vmem:[%s7044_s1 + $0x1c18] sm:$0xff]  ;;  %2058 = vmatpush.msra.mxu1 %v527_v40  ;;  %v591_v38 = vld [vmem:[%s7044_s1 + $0x9e0] sm:$0xff]  ;;  %v5124_v35 = vpop.f32.mrf.mxu1 }
 0x185   : > { %2081 = vmatpush.msra.mxu2 %v655_v41  ;;  %2036 = vmatpush.msra.mxu0 %v391_v63  ;;  %v727_v31 = vld [vmem:[%s7044_s1 + $0xe20] sm:$0xff]  ;;  %v5132_v41 = vpop.f32.mrf.mxu2  ;;  %v2810_v29 = vld [vmem:[%s7045_s2 + $0x78] sm:$0xff] }
 0x186   : > { %2027 = vmatpush.msrb.mxu3 %v1174_v45  ;;  %2059 = vmatpush.msra.mxu1 %v519_v42  ;;  %v327_v48 = vld [vmem:[%s7044_s1 + $0x1a0] sm:$0xff] }
 0x187   : > { %2082 = vmatpush.msra.mxu2 %v647_v22  ;;  %2037 = vmatpush.msra.mxu0 %v383_v5  ;;  %v455_v32 = vld [vmem:[%s7044_s1 + $0x5a0] sm:$0xff] }
 0x188   : > { %2104 = vmatpush.msra.mxu3 %v783_v50  ;;  %2060 = vmatpush.msra.mxu1 %v511_v21  ;;  %v583_v37 = vld [vmem:[%s7044_s1 + $0x9a0] sm:$0xff]  ;;  %v5152_v21 = vpop.f32.mrf.mxu3 }
 0x189   : > { %2083 = vmatpush.msra.mxu2 %v639_v46  ;;  %2038 = vmatpush.msra.mxu0 %v375_v53  ;;  %v719_v40 = vld [vmem:[%s7044_s1 + $0xde0] sm:$0xff] }
 0x18a   : > { %2105 = vmatpush.msra.mxu3 %v775_v47  ;;  %2005 = vmatmul.f32.vlgmr.msrb.gmra.mxu2 %v4589_v25  ;;  %v759_v25 = vld [vmem:[%s7044_s1 + $0xf20] sm:$0xff] }
 0x18b   : > { %2061 = vmatpush.msra.mxu1 %v503_v51  ;;  %2084 = vmatpush.msra.mxu2 %v631_v52  ;;  %v319_v45 = vld [vmem:[%s7044_s1 + $0x160] sm:$0xff] }
 0x18c   : > { %2106 = vmatpush.msra.mxu3 %v767_v56  ;;  %2039 = vmatpush.msra.mxu0 %v367_v57  ;;  %v447_v63 = vld [vmem:[%s7044_s1 + $0x560] sm:$0xff]  ;;  %v5172_v57 = vpop.f32.mrf.mxu0 }
 0x18d   : > { %2028 = vmatmul.f32.vlgmr.msrb.gmra.mxu3 %v4609_v2  ;;  %2062 = vmatpush.msra.mxu1 %v495_v59  ;;  %v351_v2 = vld [vmem:[%s7044_s1 + $0x260] sm:$0xff] }
 0x18e   : > { %2085 = vmatpush.msra.mxu2 %v623_v24  ;;  %2107 = vmatpush.msra.mxu3 %v759_v25  ;;  %v575_v42 = vld [vmem:[%s7044_s1 + $0x960] sm:$0xff] }
 0x18f   : > { %1982 = vmatmul.f32.vlgmr.msrb.gmra.mxu1 %v4625_v9  ;;  %2040 = vmatpush.msra.mxu0 %v359_v3  ;;  %v743_v9 = vld [vmem:[%s7044_s1 + $0xea0] sm:$0xff] }
 0x190   : > { %2063 = vmatpush.msra.mxu1 %v487_v6  ;;  %2086 = vmatpush.msra.mxu2 %v615_v30  ;;  %v711_v22 = vld [vmem:[%s7044_s1 + $0xda0] sm:$0xff] }
 0x191   : > { %2108 = vmatpush.msra.mxu3 %v751_v11  ;;  %2041 = vmatpush.msra.mxu0 %v351_v2  ;;  %v311_v50 = vld [vmem:[%s7044_s1 + $0x120] sm:$0xff]  ;;  %v5192_v11 = vpop.f32.mrf.mxu1 }
 0x192   : > { %2064 = vmatpush.msra.mxu1 %v479_v12  ;;  %2087 = vmatpush.msra.mxu2 %v607_v28  ;;  %v439_v5 = vld [vmem:[%s7044_s1 + $0x520] sm:$0xff]  ;;  %v5200_v28 = vpop.f32.mrf.mxu2 }
 0x193   : > { %2109 = vmatpush.msra.mxu3 %v743_v9  ;;  %2042 = vmatpush.msra.mxu0 %v343_v16  ;;  %v567_v46 = vld [vmem:[%s7044_s1 + $0x920] sm:$0xff] }
 0x194   : > { %2065 = vmatpush.msra.mxu1 %v471_v17  ;;  %2088 = vmatpush.msra.mxu2 %v599_v49  ;;  %v703_v47 = vld [vmem:[%s7044_s1 + $0xd60] sm:$0xff] }
 0x195   : > { %2110 = vmatpush.msra.mxu3 %v735_v18  ;;  %2043 = vmatpush.msra.mxu0 %v335_v20  ;;  %v303_v53 = vld [vmem:[%s7044_s1 + $0xe0] sm:$0xff]  ;;  %v5214_v18 = vpop.f32.mrf.mxu3 }
 0x196   : > { %2066 = vmatpush.msra.mxu1 %v463_v27  ;;  %2089 = vmatpush.msra.mxu2 %v591_v38  ;;  %v431_v51 = vld [vmem:[%s7044_s1 + $0x4e0] sm:$0xff] }
 0x197   : > { %2111 = vmatpush.msra.mxu3 %v727_v31  ;;  %2044 = vmatpush.msra.mxu0 %v327_v48  ;;  %v559_v52 = vld [vmem:[%s7044_s1 + $0x8e0] sm:$0xff]  ;;  %v5226_v31 = vpop.f32.mrf.mxu0 }
 0x198   : > { %2067 = vmatpush.msra.mxu1 %v455_v32  ;;  %2090 = vmatpush.msra.mxu2 %v583_v37  ;;  %v695_v56 = vld [vmem:[%s7044_s1 + $0xd20] sm:$0xff] }
 0x199   : > { %2112 = vmatpush.msra.mxu3 %v719_v40  ;;  %2045 = vmatpush.msra.mxu0 %v319_v45  ;;  %v295_v59 = vld [vmem:[%s7044_s1 + $0xa0] sm:$0xff] }
 0x19a   : > { %2068 = vmatpush.msra.mxu1 %v447_v63  ;;  %2091 = vmatpush.msra.mxu2 %v575_v42  ;;  %v423_v24 = vld [vmem:[%s7044_s1 + $0x4a0] sm:$0xff]  ;;  %v5245_v63 = vpop.f32.mrf.mxu1 }
 0x19b   : > { %2113 = vmatpush.msra.mxu3 %v711_v22  ;;  %2046 = vmatpush.msra.mxu0 %v311_v50  ;;  %v551_v25 = vld [vmem:[%s7044_s1 + $0x8a0] sm:$0xff]  ;;  %v5254_v50 = vpop.f32.mrf.mxu2 }
 0x19c   : > { %2069 = vmatpush.msra.mxu1 %v439_v5  ;;  %2092 = vmatpush.msra.mxu2 %v567_v46  ;;  %v687_v3 = vld [vmem:[%s7044_s1 + $0xce0] sm:$0xff] }
 0x19d   : > { %2114 = vmatpush.msra.mxu3 %v703_v47  ;;  %2047 = vmatpush.msra.mxu0 %v303_v53  ;;  %v287_v6 = vld [vmem:[%s7044_s1 + $0x60] sm:$0xff] }
 0x19e   : > { %2070 = vmatpush.msra.mxu1 %v431_v51  ;;  %2093 = vmatpush.msra.mxu2 %v559_v52  ;;  %v415_v30 = vld [vmem:[%s7044_s1 + $0x460] sm:$0xff] }
 0x19f   : > { %2115 = vmatpush.msra.mxu3 %v695_v56  ;;  %2048 = vmatpush.msra.mxu0 %v295_v59  ;;  %v543_v2 = vld [vmem:[%s7044_s1 + $0x860] sm:$0xff]  ;;  %v5274_v56 = vpop.f32.mrf.mxu3 }
 0x1a0   : > { %2071 = vmatpush.msra.mxu1 %v423_v24  ;;  %v679_v12 = vld [vmem:[%s7044_s1 + $0xca0] sm:$0xff]  ;;  %2094 = vmatpush.msra.mxu2 %v551_v25  ;;  %7049 = vst [vmem:[#allocation3_spill] sm:$0xff] %v5274_v56  ;;  %v1684_v25 = vpop.f32.mrf.mxu0 }
 0x1a1   : > { %2116 = vmatpush.msra.mxu3 %v687_v3  ;;  %v279_v9 = vld [vmem:[%s7044_s1 + $0x20] sm:$0xff]  ;;  %2049 = vmatpush.msra.mxu0 %v287_v6 }
 0x1a2   : > { %2072 = vmatpush.msra.mxu1 %v415_v30  ;;  %v407_v16 = vld [vmem:[%s7044_s1 + $0x420] sm:$0xff]  ;;  %2095 = vmatpush.msra.mxu2 %v543_v2 }
 0x1a3   : > { %v535_v17 = vld [vmem:[%s7044_s1 + $0x820] sm:$0xff]  ;;  %2117 = vmatpush.msra.mxu3 %v679_v12  ;;  %2008 = vmatmul.f32.gmra.mxu2 %v4749_v58 }
 0x1a4   : > { %v671_v49 = vld [vmem:[%s7044_s1 + $0xc60] sm:$0xff]  ;;  %2050 = vmatpush.msra.mxu0 %v279_v9  ;;  %2073 = vmatpush.msra.mxu1 %v407_v16  ;;  %v1707_v16 = vpop.f32.mrf.mxu1 }
 0x1a5   : > { %v911_v20 = vld [vmem:[%s7044_s1 + $0x13e0] sm:$0xff]  ;;  %2096 = vmatpush.msra.mxu2 %v535_v17  ;;  %2118 = vmatpush.msra.mxu3 %v671_v49 }
 0x1a6   : > { %v1039_v27 = vld [vmem:[%s7044_s1 + $0x17e0] sm:$0xff]  ;;  %1962 = vmatmul.f32.gmra.mxu0 %v4762_v61  ;;  %2031 = vmatmul.f32.gmra.mxu3 %v4769_v0 }
 0x1a7   : > { %v1167_v38 = vld [vmem:[%s7044_s1 + $0x1be0] sm:$0xff]  ;;  %2127 = vmatpush.msrb.mxu0 %v911_v20  ;;  %2150 = vmatpush.msrb.mxu1 %v1039_v27 }
 0x1a8   : > { %v663_v48 = vld [vmem:[%s7044_s1 + $0xc20] sm:$0xff]  ;;  %2173 = vmatpush.msrb.mxu2 %v1167_v38  ;;  %1985 = vmatmul.f32.gmra.mxu1 %v4785_v8 }
 0x1a9   : > { %v903_v32 = vld [vmem:[%s7044_s1 + $0x13a0] sm:$0xff]  ;;  %2119 = vmatpush.msra.mxu3 %v663_v48  ;;  %v1730_v20 = vpop.f32.mrf.mxu2 }
 0x1aa   : > { %v1031_v37 = vld [vmem:[%s7044_s1 + $0x17a0] sm:$0xff]  ;;  %2128 = vmatpush.msrb.mxu0 %v903_v32 }
 0x1ab   : > { %v1159_v40 = vld [vmem:[%s7044_s1 + $0x1ba0] sm:$0xff]  ;;  %2151 = vmatpush.msrb.mxu1 %v1031_v37 }
 0x1ac   : > { %v1295_v45 = vld [vmem:[%s7044_s1 + $0x1fe0] sm:$0xff]  ;;  %2174 = vmatpush.msrb.mxu2 %v1159_v40 }
 0x1ad   : > { %v895_v42 = vld [vmem:[%s7044_s1 + $0x1360] sm:$0xff]  ;;  %2196 = vmatpush.msrb.mxu3 %v1295_v45  ;;  %v1753_v45 = vpop.f32.mrf.mxu3 }
 0x1ae   : > { %v1023_v22 = vld [vmem:[%s7044_s1 + $0x1760] sm:$0xff]  ;;  %2129 = vmatpush.msrb.mxu0 %v895_v42 }
 0x1af   : > { %v1151_v5 = vld [vmem:[%s7044_s1 + $0x1b60] sm:$0xff]  ;;  %2152 = vmatpush.msrb.mxu1 %v1023_v22 }
 0x1b0   : > { %v1287_v46 = vld [vmem:[%s7044_s1 + $0x1fa0] sm:$0xff]  ;;  %2175 = vmatpush.msrb.mxu2 %v1151_v5 }
 0x1b1   : > { %v887_v47 = vld [vmem:[%s7044_s1 + $0x1320] sm:$0xff]  ;;  %2197 = vmatpush.msrb.mxu3 %v1287_v46  ;;  %v1708_v46 = vadd.f32 %v1707_v16, %v1684_v25 }
 0x1b2   : > { %v1015_v53 = vld [vmem:[%s7044_s1 + $0x1720] sm:$0xff]  ;;  %2130 = vmatpush.msrb.mxu0 %v887_v47 }
 0x1b3   : > { %v1143_v51 = vld [vmem:[%s7044_s1 + $0x1b20] sm:$0xff]  ;;  %2153 = vmatpush.msrb.mxu1 %v1015_v53  ;;  %v5336_v53 = vpop.f32.mrf.mxu0 }
 0x1b4   : > { %v1279_v52 = vld [vmem:[%s7044_s1 + $0x1f60] sm:$0xff]  ;;  %2176 = vmatpush.msrb.mxu2 %v1143_v51  ;;  %v5339_v51 = vld [vmem:[%s3586_s30 + $0x10] sm:$0xff] }
 0x1b5   : > { %v879_v59 = vld [vmem:[%s7044_s1 + $0x12e0] sm:$0xff]  ;;  %2198 = vmatpush.msrb.mxu3 %v1279_v52  ;;  %2097 = vmatmul.f32.vlgmr.msra.gmra.mxu2 %v5339_v51 }
 0x1b6   : > { %v1007_v24 = vld [vmem:[%s7044_s1 + $0x16e0] sm:$0xff]  ;;  %2131 = vmatpush.msrb.mxu0 %v879_v59 }
 0x1b7   : > { %v1135_v3 = vld [vmem:[%s7044_s1 + $0x1ae0] sm:$0xff]  ;;  %2154 = vmatpush.msrb.mxu1 %v1007_v24 }
 0x1b8   : > { %v1271_v6 = vld [vmem:[%s7044_s1 + $0x1f20] sm:$0xff]  ;;  %2177 = vmatpush.msrb.mxu2 %v1135_v3 }
 0x1b9   : > { %v871_v30 = vld [vmem:[%s7044_s1 + $0x12a0] sm:$0xff]  ;;  %2199 = vmatpush.msrb.mxu3 %v1271_v6  ;;  %v1731_v6 = vadd.f32 %v1730_v20, %v1708_v46  ;;  %v5379_v20 = vld [vmem:[%s3586_s30 + $0x8] sm:$0xff] }
 0x1ba   : > { %v999_v2 = vld [vmem:[%s7044_s1 + $0x16a0] sm:$0xff]  ;;  %2132 = vmatpush.msrb.mxu0 %v871_v30  ;;  %v5358_v30 = vpop.f32.mrf.mxu1  ;;  %v5370_v16 = vpop.f32.mrf.mxu2  ;;  %2074 = vmatmul.f32.vlgmr.msra.gmra.mxu1 %v5379_v20 }
 0x1bb   : > { %v1127_v12 = vld [vmem:[%s7044_s1 + $0x1aa0] sm:$0xff]  ;;  %2155 = vmatpush.msrb.mxu1 %v999_v2  ;;  %v5361_v2 = vld [vmem:[%s3586_s30 + $0x18] sm:$0xff]  ;;  %v1776_v46 = vpop.f32.mrf.mxu0 }
 0x1bc   : > { %v1263_v9 = vld [vmem:[%s7044_s1 + $0x1ee0] sm:$0xff]  ;;  %2178 = vmatpush.msrb.mxu2 %v1127_v12  ;;  %2120 = vmatmul.f32.vlgmr.msra.gmra.mxu3 %v5361_v2 }
 0x1bd   : > { %v863_v17 = vld [vmem:[%s7044_s1 + $0x1260] sm:$0xff]  ;;  %2200 = vmatpush.msrb.mxu3 %v1263_v9 }
 0x1be   : > { %v991_v49 = vld [vmem:[%s7044_s1 + $0x1660] sm:$0xff]  ;;  %2133 = vmatpush.msrb.mxu0 %v863_v17 }
 0x1bf   : > { %v1119_v27 = vld [vmem:[%s7044_s1 + $0x1a60] sm:$0xff]  ;;  %2156 = vmatpush.msrb.mxu1 %v991_v49 }
 0x1c0   : > { %v1255_v38 = vld [vmem:[%s7044_s1 + $0x1ea0] sm:$0xff]  ;;  %2179 = vmatpush.msrb.mxu2 %v1119_v27 }
 0x1c1   : > { %v855_v48 = vld [vmem:[%s7044_s1 + $0x1220] sm:$0xff]  ;;  %2201 = vmatpush.msrb.mxu3 %v1255_v38 }
 0x1c2   : > { %v983_v32 = vld [vmem:[%s7044_s1 + $0x1620] sm:$0xff]  ;;  %2134 = vmatpush.msrb.mxu0 %v855_v48 }
 0x1c3   : > { %v1111_v37 = vld [vmem:[%s7044_s1 + $0x1a20] sm:$0xff]  ;;  %2157 = vmatpush.msrb.mxu1 %v983_v32 }
 0x1c4   : > { %v1247_v40 = vld [vmem:[%s7044_s1 + $0x1e60] sm:$0xff]  ;;  %2180 = vmatpush.msrb.mxu2 %v1111_v37  ;;  %v1754_v37 = vadd.f32 %v1753_v45, %v1731_v6 }
 0x1c5   : > { %v847_v42 = vld [vmem:[%s7044_s1 + $0x11e0] sm:$0xff]  ;;  %2202 = vmatpush.msrb.mxu3 %v1247_v40  ;;  %v5394_v40 = vpop.f32.mrf.mxu3 }
 0x1c6   : > { %v975_v22 = vld [vmem:[%s7044_s1 + $0x15e0] sm:$0xff]  ;;  %2135 = vmatpush.msrb.mxu0 %v847_v42 }
 0x1c7   : > { %v1103_v5 = vld [vmem:[%s7044_s1 + $0x19e0] sm:$0xff]  ;;  %2158 = vmatpush.msrb.mxu1 %v975_v22 }
 0x1c8   : > { %v1239_v47 = vld [vmem:[%s7044_s1 + $0x1e20] sm:$0xff]  ;;  %2181 = vmatpush.msrb.mxu2 %v1103_v5 }
 0x1c9   : > { %v839_v52 = vld [vmem:[%s7044_s1 + $0x11a0] sm:$0xff]  ;;  %2203 = vmatpush.msrb.mxu3 %v1239_v47  ;;  %v5409_v47 = vld [vmem:[%s3586_s30 + $0x50] sm:$0xff] }
 0x1ca   : > { %v967_v59 = vld [vmem:[%s7044_s1 + $0x15a0] sm:$0xff]  ;;  %2136 = vmatpush.msrb.mxu0 %v839_v52  ;;  %2100 = vmatmul.f32.gmra.mxu2 %v5409_v47 }
 0x1cb   : > { %v1095_v24 = vld [vmem:[%s7044_s1 + $0x19a0] sm:$0xff]  ;;  %2159 = vmatpush.msrb.mxu1 %v967_v59  ;;  %v1777_v59 = vadd.f32 %v1776_v46, %v1754_v37 }
 0x1cc   : > { %v5352_v25 = vld [vmem:[%s3586_s30] sm:$0xff]  ;;  %2182 = vmatpush.msrb.mxu2 %v1095_v24 }
 0x1cd   : > { %2051 = vmatmul.f32.vlgmr.msra.gmra.mxu0 %v5352_v25  ;;  %v1231_v3 = vld [vmem:[%s7044_s1 + $0x1de0] sm:$0xff] }
 0x1ce   : > { %v831_v12 = vld [vmem:[%s7044_s1 + $0x1160] sm:$0xff]  ;;  %2204 = vmatpush.msrb.mxu3 %v1231_v3 }
 0x1cf   : > { %v959_v9 = vld [vmem:[%s7044_s1 + $0x1560] sm:$0xff]  ;;  %2137 = vmatpush.msrb.mxu0 %v831_v12 }
 0x1d0   : > { %v1087_v17 = vld [vmem:[%s7044_s1 + $0x1960] sm:$0xff]  ;;  %2160 = vmatpush.msrb.mxu1 %v959_v9  ;;  %v1799_v9 = vpop.f32.mrf.mxu1 }
 0x1d1   : > { %v1223_v49 = vld [vmem:[%s7044_s1 + $0x1da0] sm:$0xff]  ;;  %2183 = vmatpush.msrb.mxu2 %v1087_v17  ;;  %v5429_v17 = vld [vmem:[%s3586_s30 + $0x58] sm:$0xff] }
 0x1d2   : > { %v823_v27 = vld [vmem:[%s7044_s1 + $0x1120] sm:$0xff]  ;;  %2205 = vmatpush.msrb.mxu3 %v1223_v49 }
 0x1d3   : > { %v951_v38 = vld [vmem:[%s7044_s1 + $0x1520] sm:$0xff]  ;;  %2138 = vmatpush.msrb.mxu0 %v823_v27  ;;  %2123 = vmatmul.f32.gmra.mxu3 %v5429_v17 }
 0x1d4   : > { %v1079_v48 = vld [vmem:[%s7044_s1 + $0x1920] sm:$0xff]  ;;  %2161 = vmatpush.msrb.mxu1 %v951_v38  ;;  %v1800_v38 = vadd.f32 %v1799_v9, %v1777_v59  ;;  %v1845_v59 = vpop.f32.mrf.mxu3  ;;  %v656_v9 = vld [vmem:[%s7044_s1 + $0xbe8] sm:$0xff] }
 0x1d5   : > { %v1215_v32 = vld [vmem:[%s7044_s1 + $0x1d60] sm:$0xff]  ;;  %2184 = vmatpush.msrb.mxu2 %v1079_v48  ;;  %v1822_v48 = vpop.f32.mrf.mxu2 }
 0x1d6   : > { %v815_v42 = vld [vmem:[%s7044_s1 + $0x10e0] sm:$0xff]  ;;  %2206 = vmatpush.msrb.mxu3 %v1215_v32 }
 0x1d7   : > { %v943_v22 = vld [vmem:[%s7044_s1 + $0x14e0] sm:$0xff]  ;;  %2139 = vmatpush.msrb.mxu0 %v815_v42  ;;  %v5445_v42 = vld [vmem:[%s3586_s30 + $0x48] sm:$0xff] }
 0x1d8   : > { %v1071_v5 = vld [vmem:[%s7044_s1 + $0x18e0] sm:$0xff]  ;;  %2162 = vmatpush.msrb.mxu1 %v943_v22 }
 0x1d9   : > { %v1207_v45 = vld [vmem:[%s7044_s1 + $0x1d20] sm:$0xff]  ;;  %2185 = vmatpush.msrb.mxu2 %v1071_v5  ;;  %2077 = vmatmul.f32.gmra.mxu1 %v5445_v42 }
 0x1da   : > { %v807_v52 = vld [vmem:[%s7044_s1 + $0x10a0] sm:$0xff]  ;;  %2207 = vmatpush.msrb.mxu3 %v1207_v45  ;;  %v1823_v45 = vadd.f32 %v1822_v48, %v1800_v38  ;;  %v392_v38 = vld [vmem:[%s7044_s1 + $0x3a8] sm:$0xff] }
 0x1db   : > { %v935_v24 = vld [vmem:[%s7044_s1 + $0x14a0] sm:$0xff]  ;;  %2140 = vmatpush.msrb.mxu0 %v807_v52  ;;  %v520_v48 = vld [vmem:[%s7044_s1 + $0x7a8] sm:$0xff] }
 0x1dc   : > { %v1063_v3 = vld [vmem:[%s7044_s1 + $0x18a0] sm:$0xff]  ;;  %2163 = vmatpush.msrb.mxu1 %v935_v24  ;;  %v400_v24 = vld [vmem:[%s7044_s1 + $0x3e8] sm:$0xff] }
 0x1dd   : > { %v5422_v6 = vld [vmem:[%s3586_s30 + $0x40] sm:$0xff]  ;;  %2186 = vmatpush.msrb.mxu2 %v1063_v3  ;;  %v5463_v3 = vadd.f32 %v1845_v59, %v1823_v45  ;;  %v384_v45 = vld [vmem:[%s7044_s1 + $0x368] sm:$0xff] }
 0x1de   : > { %2054 = vmatmul.f32.gmra.mxu0 %v5422_v6  ;;  %v1199_v12 = vld [vmem:[%s7044_s1 + $0x1ce0] sm:$0xff]  ;;  %v640_v59 = vld [vmem:[%s7044_s1 + $0xb68] sm:$0xff] }
 0x1df   : > { %v799_v49 = vld [vmem:[%s7044_s1 + $0x1060] sm:$0xff]  ;;  %2208 = vmatpush.msrb.mxu3 %v1199_v12  ;;  %7050 = vst [vmem:[#allocation4_spill] sm:$0xff] %v5463_v3  ;;  %v528_v12 = vld [vmem:[%s7044_s1 + $0x7e8] sm:$0xff]  ;;  %v994_v3 = vld [vmem:[%s7044_s1 + $0x1678] sm:$0xff] }
 0x1e0   : > { %v927_v27 = vld [vmem:[%s7044_s1 + $0x1460] sm:$0xff]  ;;  %2141 = vmatpush.msrb.mxu0 %v799_v49 }
 0x1e1   : > { %v1055_v32 = vld [vmem:[%s7044_s1 + $0x1860] sm:$0xff]  ;;  %2164 = vmatpush.msrb.mxu1 %v927_v27  ;;  %v5475_v27 = vld [vmem:[%s3586_s30 + $0x30] sm:$0xff] }
 0x1e2   : > { %v1191_v37 = vld [vmem:[%s7044_s1 + $0x1ca0] sm:$0xff]  ;;  %2187 = vmatpush.msrb.mxu2 %v1055_v32  ;;  %v648_v32 = vld [vmem:[%s7044_s1 + $0xba8] sm:$0xff] }
 0x1e3   : > { %v791_v22 = vld [vmem:[%s7044_s1 + $0x1020] sm:$0xff]  ;;  %2209 = vmatpush.msrb.mxu3 %v1191_v37 }
 0x1e4   : > { %v919_v5 = vld [vmem:[%s7044_s1 + $0x1420] sm:$0xff]  ;;  %2142 = vmatpush.msrb.mxu0 %v791_v22  ;;  %v784_v22 = vld [vmem:[%s7044_s1 + $0xfe8] sm:$0xff] }
 0x1e5   : > { %v1047_v46 = vld [vmem:[%s7044_s1 + $0x1820] sm:$0xff]  ;;  %2165 = vmatpush.msrb.mxu1 %v919_v5  ;;  %v5495_v5 = vld [vmem:[%s3586_s30 + $0x38] sm:$0xff] }
 0x1e6   : > { %v1183_v52 = vld [vmem:[%s7044_s1 + $0x1c60] sm:$0xff]  ;;  %2188 = vmatpush.msrb.mxu2 %v1047_v46  ;;  %2219 = vmatpush.msra.mxu0 %v400_v24  ;;  %v512_v46 = vld [vmem:[%s7044_s1 + $0x768] sm:$0xff] }
 0x1e7   : > { %2210 = vmatpush.msrb.mxu3 %v1183_v52  ;;  %v1175_v49 = vld [vmem:[%s7044_s1 + $0x1c20] sm:$0xff]  ;;  %2189 = vmatmul.f32.vlgmr.msrb.gmra.mxu2 %v5475_v27  ;;  %v1711_v52 = vadd.f32 %v5358_v30, %v5336_v53  ;;  %v776_v24 = vld [vmem:[%s7044_s1 + $0xfa8] sm:$0xff] }
 0x1e8   : > { %2242 = vmatpush.msra.mxu1 %v528_v12  ;;  %2265 = vmatpush.msra.mxu2 %v656_v9  ;;  %v5488_v37 = vld [vmem:[%s3586_s30 + $0x20] sm:$0xff]  ;;  %v5513_v12 = vld [vmem:[%s3586_s30 + $0x28] sm:$0xff] }
 0x1e9   : > { %2211 = vmatpush.msrb.mxu3 %v1175_v49  ;;  %2143 = vmatmul.f32.vlgmr.msrb.gmra.mxu0 %v5488_v37  ;;  %v376_v9 = vld [vmem:[%s7044_s1 + $0x328] sm:$0xff] }
 0x1ea   : > { %2212 = vmatmul.f32.vlgmr.msrb.gmra.mxu3 %v5495_v5  ;;  %2220 = vmatpush.msra.mxu0 %v392_v38  ;;  %v504_v53 = vld [vmem:[%s7044_s1 + $0x728] sm:$0xff] }
 0x1eb   : > { %2243 = vmatpush.msra.mxu1 %v520_v48  ;;  %2266 = vmatpush.msra.mxu2 %v648_v32  ;;  %v632_v30 = vld [vmem:[%s7044_s1 + $0xb28] sm:$0xff]  ;;  %v1734_v48 = vadd.f32 %v5370_v16, %v1711_v52 }
 0x1ec   : > { %2288 = vmatpush.msra.mxu3 %v784_v22  ;;  %2166 = vmatmul.f32.vlgmr.msrb.gmra.mxu1 %v5513_v12  ;;  %v768_v49 = vld [vmem:[%s7044_s1 + $0xf68] sm:$0xff] }
 0x1ed   : > { %2221 = vmatpush.msra.mxu0 %v384_v45  ;;  %2244 = vmatpush.msra.mxu1 %v512_v46  ;;  %v368_v38 = vld [vmem:[%s7044_s1 + $0x2e8] sm:$0xff] }
 0x1ee   : > { %2267 = vmatpush.msra.mxu2 %v640_v59  ;;  %2289 = vmatpush.msra.mxu3 %v776_v24  ;;  %v496_v32 = vld [vmem:[%s7044_s1 + $0x6e8] sm:$0xff]  ;;  %v1757_v59 = vadd.f32 %v5394_v40, %v1734_v48 }
 0x1ef   : > { %2222 = vmatpush.msra.mxu0 %v376_v9  ;;  %2245 = vmatpush.msra.mxu1 %v504_v53  ;;  %v624_v22 = vld [vmem:[%s7044_s1 + $0xae8] sm:$0xff] }
 0x1f0   : > { %2268 = vmatpush.msra.mxu2 %v632_v30  ;;  %2290 = vmatpush.msra.mxu3 %v768_v49  ;;  %v760_v45 = vld [vmem:[%s7044_s1 + $0xf28] sm:$0xff]  ;;  %v1779_v30 = vpop.f32.mrf.mxu0 }
 0x1f1   : > { %2192 = vmatmul.f32.gmra.mxu2 %v4749_v58  ;;  %2223 = vmatpush.msra.mxu0 %v368_v38  ;;  %v360_v16 = vld [vmem:[%s7044_s1 + $0x2a8] sm:$0xff] }
 0x1f2   : > { %2246 = vmatpush.msra.mxu1 %v496_v32  ;;  %2269 = vmatpush.msra.mxu2 %v624_v22  ;;  %v488_v46 = vld [vmem:[%s7044_s1 + $0x6a8] sm:$0xff] }
 0x1f3   : > { %v616_v52 = vld [vmem:[%s7044_s1 + $0xaa8] sm:$0xff]  ;;  %2291 = vmatpush.msra.mxu3 %v760_v45  ;;  %2146 = vmatmul.f32.gmra.mxu0 %v4762_v61 }
 0x1f4   : > { %v752_v58 = vld [vmem:[%s7044_s1 + $0xee8] sm:$0xff]  ;;  %2215 = vmatmul.f32.gmra.mxu3 %v4769_v0  ;;  %2224 = vmatpush.msra.mxu0 %v360_v16  ;;  %v1802_v16 = vpop.f32.mrf.mxu1 }
 0x1f5   : > { %v352_v24 = vld [vmem:[%s7044_s1 + $0x268] sm:$0xff]  ;;  %2247 = vmatpush.msra.mxu1 %v488_v46  ;;  %2270 = vmatpush.msra.mxu2 %v616_v52 }
 0x1f6   : > { %v480_v9 = vld [vmem:[%s7044_s1 + $0x668] sm:$0xff]  ;;  %2292 = vmatpush.msra.mxu3 %v752_v58  ;;  %2169 = vmatmul.f32.gmra.mxu1 %v4785_v8  ;;  %v1780_v8 = vadd.f32 %v1779_v30, %v1757_v59  ;;  %v1825_v58 = vpop.f32.mrf.mxu2 }
 0x1f7   : > { %v608_v61 = vld [vmem:[%s7044_s1 + $0xa68] sm:$0xff]  ;;  %2225 = vmatpush.msra.mxu0 %v352_v24  ;;  %2248 = vmatpush.msra.mxu1 %v480_v9 }
 0x1f8   : > { %v744_v40 = vld [vmem:[%s7044_s1 + $0xea8] sm:$0xff]  ;;  %2271 = vmatpush.msra.mxu2 %v608_v61  ;;  %v1803_v59 = vadd.f32 %v1802_v16, %v1780_v8 }
 0x1f9   : > { %v344_v0 = vld [vmem:[%s7044_s1 + $0x228] sm:$0xff]  ;;  %2293 = vmatpush.msra.mxu3 %v744_v40 }
 0x1fa   : > { %v472_v53 = vld [vmem:[%s7044_s1 + $0x628] sm:$0xff]  ;;  %2226 = vmatpush.msra.mxu0 %v344_v0  ;;  %v1826_v0 = vadd.f32 %v1825_v58, %v1803_v59 }
 0x1fb   : > { %v600_v49 = vld [vmem:[%s7044_s1 + $0xa28] sm:$0xff]  ;;  %2249 = vmatpush.msra.mxu1 %v472_v53 }
 0x1fc   : > { %v736_v38 = vld [vmem:[%s7044_s1 + $0xe68] sm:$0xff]  ;;  %2272 = vmatpush.msra.mxu2 %v600_v49  ;;  %v1848_v49 = vpop.f32.mrf.mxu3 }
 0x1fd   : > { %v336_v48 = vld [vmem:[%s7044_s1 + $0x1e8] sm:$0xff]  ;;  %2294 = vmatpush.msra.mxu3 %v736_v38 }
 0x1fe   : > { %v464_v32 = vld [vmem:[%s7044_s1 + $0x5e8] sm:$0xff]  ;;  %2227 = vmatpush.msra.mxu0 %v336_v48  ;;  %v5624_v48 = vadd.f32 %v1848_v49, %v1826_v0 }
 0x1ff   : > { %v592_v22 = vld [vmem:[%s7044_s1 + $0x9e8] sm:$0xff]  ;;  %2250 = vmatpush.msra.mxu1 %v464_v32 }
 0x200   : > { %v728_v45 = vld [vmem:[%s7044_s1 + $0xe28] sm:$0xff]  ;;  %2273 = vmatpush.msra.mxu2 %v592_v22  ;;  %7051 = vst [vmem:[#allocation5_spill] sm:$0xff] %v5624_v48  ;;  %v1002_v48 = vld [vmem:[%s7044_s1 + $0x16b8] sm:$0xff] }
 0x201   : > { %v328_v46 = vld [vmem:[%s7044_s1 + $0x1a8] sm:$0xff]  ;;  %2295 = vmatpush.msra.mxu3 %v728_v45 }
 0x202   : > { %v456_v52 = vld [vmem:[%s7044_s1 + $0x5a8] sm:$0xff]  ;;  %2228 = vmatpush.msra.mxu0 %v328_v46 }
 0x203   : > { %v584_v24 = vld [vmem:[%s7044_s1 + $0x9a8] sm:$0xff]  ;;  %2251 = vmatpush.msra.mxu1 %v456_v52 }
 0x204   : > { %v720_v9 = vld [vmem:[%s7044_s1 + $0xde8] sm:$0xff]  ;;  %2274 = vmatpush.msra.mxu2 %v584_v24 }
 0x205   : > { %v320_v61 = vld [vmem:[%s7044_s1 + $0x168] sm:$0xff]  ;;  %2296 = vmatpush.msra.mxu3 %v720_v9 }
 0x206   : > { %v448_v40 = vld [vmem:[%s7044_s1 + $0x568] sm:$0xff]  ;;  %2229 = vmatpush.msra.mxu0 %v320_v61 }
 0x207   : > { %v576_v53 = vld [vmem:[%s7044_s1 + $0x968] sm:$0xff]  ;;  %2252 = vmatpush.msra.mxu1 %v448_v40 }
 0x208   : > { %v712_v30 = vld [vmem:[%s7044_s1 + $0xda8] sm:$0xff]  ;;  %2275 = vmatpush.msra.mxu2 %v576_v53 }
 0x209   : > { %v312_v38 = vld [vmem:[%s7044_s1 + $0x128] sm:$0xff]  ;;  %2297 = vmatpush.msra.mxu3 %v712_v30 }
 0x20a   : > { %v440_v8 = vld [vmem:[%s7044_s1 + $0x528] sm:$0xff]  ;;  %2230 = vmatpush.msra.mxu0 %v312_v38 }
 0x20b   : > { %v568_v32 = vld [vmem:[%s7044_s1 + $0x928] sm:$0xff]  ;;  %2253 = vmatpush.msra.mxu1 %v440_v8 }
 0x20c   : > { %v704_v22 = vld [vmem:[%s7044_s1 + $0xd68] sm:$0xff]  ;;  %2276 = vmatpush.msra.mxu2 %v568_v32 }
 0x20d   : > { %v304_v45 = vld [vmem:[%s7044_s1 + $0xe8] sm:$0xff]  ;;  %2298 = vmatpush.msra.mxu3 %v704_v22 }
 0x20e   : > { %v432_v16 = vld [vmem:[%s7044_s1 + $0x4e8] sm:$0xff]  ;;  %2231 = vmatpush.msra.mxu0 %v304_v45 }
 0x20f   : > { %v560_v46 = vld [vmem:[%s7044_s1 + $0x8e8] sm:$0xff]  ;;  %2254 = vmatpush.msra.mxu1 %v432_v16 }
 0x210   : > { %v696_v52 = vld [vmem:[%s7044_s1 + $0xd28] sm:$0xff]  ;;  %2277 = vmatpush.msra.mxu2 %v560_v46 }
 0x211   : > { %v296_v59 = vld [vmem:[%s7044_s1 + $0xa8] sm:$0xff]  ;;  %2299 = vmatpush.msra.mxu3 %v696_v52 }
 0x212   : > { %v424_v58 = vld [vmem:[%s7044_s1 + $0x4a8] sm:$0xff]  ;;  %2232 = vmatpush.msra.mxu0 %v296_v59 }
 0x213   : > { %v552_v24 = vld [vmem:[%s7044_s1 + $0x8a8] sm:$0xff]  ;;  %2255 = vmatpush.msra.mxu1 %v424_v58 }
 0x214   : > { %v688_v9 = vld [vmem:[%s7044_s1 + $0xce8] sm:$0xff]  ;;  %2278 = vmatpush.msra.mxu2 %v552_v24 }
 0x215   : > { %v288_v61 = vld [vmem:[%s7044_s1 + $0x68] sm:$0xff]  ;;  %2300 = vmatpush.msra.mxu3 %v688_v9 }
 0x216   : > { %v416_v40 = vld [vmem:[%s7044_s1 + $0x468] sm:$0xff]  ;;  %2233 = vmatpush.msra.mxu0 %v288_v61 }
 0x217   : > { %v544_v0 = vld [vmem:[%s7044_s1 + $0x868] sm:$0xff]  ;;  %2256 = vmatpush.msra.mxu1 %v416_v40 }
 0x218   : > { %v680_v53 = vld [vmem:[%s7044_s1 + $0xca8] sm:$0xff]  ;;  %2279 = vmatpush.msra.mxu2 %v544_v0 }
 0x219   : > { %v280_v30 = vld [vmem:[%s7044_s1 + $0x28] sm:$0xff]  ;;  %2301 = vmatpush.msra.mxu3 %v680_v53 }
 0x21a   : > { %v408_v49 = vld [vmem:[%s7044_s1 + $0x428] sm:$0xff]  ;;  %2234 = vmatpush.msra.mxu0 %v280_v30 }
 0x21b   : > { %v536_v38 = vld [vmem:[%s7044_s1 + $0x828] sm:$0xff]  ;;  %2257 = vmatpush.msra.mxu1 %v408_v49  ;;  %2235 = vmatmul.f32.vlgmr.msra.gmra.mxu0 %v5352_v25 }
 0x21c   : > { %v672_v8 = vld [vmem:[%s7044_s1 + $0xc68] sm:$0xff]  ;;  %2280 = vmatpush.msra.mxu2 %v536_v38  ;;  %2258 = vmatmul.f32.vlgmr.msra.gmra.mxu1 %v5379_v20 }
 0x21d   : > { %v912_v32 = vld [vmem:[%s7044_s1 + $0x13e8] sm:$0xff]  ;;  %2302 = vmatpush.msra.mxu3 %v672_v8  ;;  %2281 = vmatmul.f32.vlgmr.msra.gmra.mxu2 %v5339_v51 }
 0x21e   : > { %v1040_v22 = vld [vmem:[%s7044_s1 + $0x17e8] sm:$0xff]  ;;  %2311 = vmatpush.msrb.mxu0 %v912_v32  ;;  %v1868_v32 = vpop.f32.mrf.mxu0 }
 0x21f   : > { %v1168_v45 = vld [vmem:[%s7044_s1 + $0x1be8] sm:$0xff]  ;;  %2334 = vmatpush.msrb.mxu1 %v1040_v22 }
 0x220   : > { %v664_v16 = vld [vmem:[%s7044_s1 + $0xc28] sm:$0xff]  ;;  %2357 = vmatpush.msrb.mxu2 %v1168_v45 }
 0x221   : > { %v904_v46 = vld [vmem:[%s7044_s1 + $0x13a8] sm:$0xff]  ;;  %2303 = vmatpush.msra.mxu3 %v664_v16 }
 0x222   : > { %v1032_v52 = vld [vmem:[%s7044_s1 + $0x17a8] sm:$0xff]  ;;  %2312 = vmatpush.msrb.mxu0 %v904_v46  ;;  %2304 = vmatmul.f32.vlgmr.msra.gmra.mxu3 %v5361_v2 }
 0x223   : > { %v1160_v59 = vld [vmem:[%s7044_s1 + $0x1ba8] sm:$0xff]  ;;  %2335 = vmatpush.msrb.mxu1 %v1032_v52  ;;  %2238 = vmatmul.f32.gmra.mxu0 %v5422_v6 }
 0x224   : > { %v1296_v58 = vld [vmem:[%s7044_s1 + $0x1fe8] sm:$0xff]  ;;  %2358 = vmatpush.msrb.mxu2 %v1160_v59  ;;  %2261 = vmatmul.f32.gmra.mxu1 %v5445_v42 }
 0x225   : > { %v896_v24 = vld [vmem:[%s7044_s1 + $0x1368] sm:$0xff]  ;;  %2380 = vmatpush.msrb.mxu3 %v1296_v58  ;;  %v1891_v58 = vpop.f32.mrf.mxu1  ;;  %2284 = vmatmul.f32.gmra.mxu2 %v5409_v47 }
 0x226   : > { %v1024_v9 = vld [vmem:[%s7044_s1 + $0x1768] sm:$0xff]  ;;  %2313 = vmatpush.msrb.mxu0 %v896_v24 }
 0x227   : > { %v1152_v61 = vld [vmem:[%s7044_s1 + $0x1b68] sm:$0xff]  ;;  %2336 = vmatpush.msrb.mxu1 %v1024_v9 }
 0x228   : > { %v1288_v40 = vld [vmem:[%s7044_s1 + $0x1fa8] sm:$0xff]  ;;  %2359 = vmatpush.msrb.mxu2 %v1152_v61  ;;  %v1892_v61 = vadd.f32 %v1891_v58, %v1868_v32  ;;  %v1871_v58 = vpop.f32.mrf.mxu0 }
 0x229   : > { %v888_v0 = vld [vmem:[%s7044_s1 + $0x1328] sm:$0xff]  ;;  %2381 = vmatpush.msrb.mxu3 %v1288_v40  ;;  %v1914_v40 = vpop.f32.mrf.mxu2 }
 0x22a   : > { %v1016_v53 = vld [vmem:[%s7044_s1 + $0x1728] sm:$0xff]  ;;  %2314 = vmatpush.msrb.mxu0 %v888_v0  ;;  %2307 = vmatmul.f32.gmra.mxu3 %v5429_v17 }
 0x22b   : > { %v1144_v30 = vld [vmem:[%s7044_s1 + $0x1b28] sm:$0xff]  ;;  %2337 = vmatpush.msrb.mxu1 %v1016_v53 }
 0x22c   : > { %v1280_v49 = vld [vmem:[%s7044_s1 + $0x1f68] sm:$0xff]  ;;  %2360 = vmatpush.msrb.mxu2 %v1144_v30 }
 0x22d   : > { %v880_v38 = vld [vmem:[%s7044_s1 + $0x12e8] sm:$0xff]  ;;  %2382 = vmatpush.msrb.mxu3 %v1280_v49 }
 0x22e   : > { %v1008_v8 = vld [vmem:[%s7044_s1 + $0x16e8] sm:$0xff]  ;;  %2315 = vmatpush.msrb.mxu0 %v880_v38  ;;  %v1915_v38 = vadd.f32 %v1914_v40, %v1892_v61  ;;  %v1894_v40 = vpop.f32.mrf.mxu1 }
 0x22f   : > { %v1136_v22 = vld [vmem:[%s7044_s1 + $0x1ae8] sm:$0xff]  ;;  %2338 = vmatpush.msrb.mxu1 %v1008_v8 }
 0x230   : > { %v1272_v45 = vld [vmem:[%s7044_s1 + $0x1f28] sm:$0xff]  ;;  %2361 = vmatpush.msrb.mxu2 %v1136_v22  ;;  %v1937_v22 = vpop.f32.mrf.mxu3 }
 0x231   : > { %v872_v16 = vld [vmem:[%s7044_s1 + $0x12a8] sm:$0xff]  ;;  %2383 = vmatpush.msrb.mxu3 %v1272_v45 }
 0x232   : > { %v1000_v46 = vld [vmem:[%s7044_s1 + $0x16a8] sm:$0xff]  ;;  %2316 = vmatpush.msrb.mxu0 %v872_v16  ;;  %v1938_v16 = vadd.f32 %v1937_v22, %v1915_v38 }
 0x233   : > { %v1128_v52 = vld [vmem:[%s7044_s1 + $0x1aa8] sm:$0xff]  ;;  %2339 = vmatpush.msrb.mxu1 %v1000_v46 }
 0x234   : > { %v1264_v59 = vld [vmem:[%s7044_s1 + $0x1ee8] sm:$0xff]  ;;  %2362 = vmatpush.msrb.mxu2 %v1128_v52 }
 0x235   : > { %v864_v24 = vld [vmem:[%s7044_s1 + $0x1268] sm:$0xff]  ;;  %2384 = vmatpush.msrb.mxu3 %v1264_v59 }
 0x236   : > { %v992_v9 = vld [vmem:[%s7044_s1 + $0x1668] sm:$0xff]  ;;  %2317 = vmatpush.msrb.mxu0 %v864_v24 }
 0x237   : > { %v1120_v0 = vld [vmem:[%s7044_s1 + $0x1a68] sm:$0xff]  ;;  %2340 = vmatpush.msrb.mxu1 %v992_v9 }
 0x238   : > { %v1256_v53 = vld [vmem:[%s7044_s1 + $0x1ea8] sm:$0xff]  ;;  %2363 = vmatpush.msrb.mxu2 %v1120_v0  ;;  %v1940_v20 = vpop.f32.mrf.mxu3 }
 0x239   : > { %v856_v30 = vld [vmem:[%s7044_s1 + $0x1228] sm:$0xff]  ;;  %2385 = vmatpush.msrb.mxu3 %v1256_v53 }
 0x23a   : > { %v984_v49 = vld [vmem:[%s7044_s1 + $0x1628] sm:$0xff]  ;;  %2318 = vmatpush.msrb.mxu0 %v856_v30  ;;  %v1895_v30 = vadd.f32 %v1894_v40, %v1871_v58 }
 0x23b   : > { %v1112_v8 = vld [vmem:[%s7044_s1 + $0x1a28] sm:$0xff]  ;;  %2341 = vmatpush.msrb.mxu1 %v984_v49  ;;  %v1917_v49 = vpop.f32.mrf.mxu2 }
 0x23c   : > { %v1248_v32 = vld [vmem:[%s7044_s1 + $0x1e68] sm:$0xff]  ;;  %2364 = vmatpush.msrb.mxu2 %v1112_v8 }
 0x23d   : > { %v848_v45 = vld [vmem:[%s7044_s1 + $0x11e8] sm:$0xff]  ;;  %2386 = vmatpush.msrb.mxu3 %v1248_v32  ;;  %v1918_v32 = vadd.f32 %v1917_v49, %v1895_v30 }
 0x23e   : > { %v976_v46 = vld [vmem:[%s7044_s1 + $0x15e8] sm:$0xff]  ;;  %2319 = vmatpush.msrb.mxu0 %v848_v45 }
 0x23f   : > { %v1104_v52 = vld [vmem:[%s7044_s1 + $0x19e8] sm:$0xff]  ;;  %2342 = vmatpush.msrb.mxu1 %v976_v46 }
 0x240   : > { %v1240_v59 = vld [vmem:[%s7044_s1 + $0x1e28] sm:$0xff]  ;;  %2365 = vmatpush.msrb.mxu2 %v1104_v52  ;;  %v5831_v52 = vadd.f32 %v1940_v20, %v1918_v32  ;;  %v2029_v42 = vpop.f32.mrf.mxu3 }
 0x241   : > { %v840_v24 = vld [vmem:[%s7044_s1 + $0x11a8] sm:$0xff]  ;;  %2387 = vmatpush.msrb.mxu3 %v1240_v59 }
 0x242   : > { %v968_v9 = vld [vmem:[%s7044_s1 + $0x15a8] sm:$0xff]  ;;  %2320 = vmatpush.msrb.mxu0 %v840_v24 }
 0x243   : > { %v1096_v61 = vld [vmem:[%s7044_s1 + $0x19a8] sm:$0xff]  ;;  %2343 = vmatpush.msrb.mxu1 %v968_v9  ;;  %v1960_v9 = vpop.f32.mrf.mxu0 }
 0x244   : > { %v1232_v51 = vld [vmem:[%s7044_s1 + $0x1de8] sm:$0xff]  ;;  %2366 = vmatpush.msrb.mxu2 %v1096_v61 }
 0x245   : > { %v832_v0 = vld [vmem:[%s7044_s1 + $0x1168] sm:$0xff]  ;;  %2388 = vmatpush.msrb.mxu3 %v1232_v51  ;;  %v1961_v51 = vadd.f32 %v1960_v9, %v1938_v16  ;;  %v521_v9 = vld [vmem:[%s7044_s1 + $0x7b0] sm:$0xff] }
 0x246   : > { %v960_v53 = vld [vmem:[%s7044_s1 + $0x1568] sm:$0xff]  ;;  %2321 = vmatpush.msrb.mxu0 %v832_v0 }
 0x247   : > { %v1088_v25 = vld [vmem:[%s7044_s1 + $0x1968] sm:$0xff]  ;;  %2344 = vmatpush.msrb.mxu1 %v960_v53  ;;  %v1983_v53 = vpop.f32.mrf.mxu1 }
 0x248   : > { %v1224_v2 = vld [vmem:[%s7044_s1 + $0x1da8] sm:$0xff]  ;;  %2367 = vmatpush.msrb.mxu2 %v1088_v25  ;;  %v1984_v49 = vadd.f32 %v1983_v53, %v1961_v51  ;;  %v2006_v25 = vpop.f32.mrf.mxu2  ;;  %v385_v51 = vld [vmem:[%s7044_s1 + $0x370] sm:$0xff] }
 0x249   : > { %v824_v38 = vld [vmem:[%s7044_s1 + $0x1128] sm:$0xff]  ;;  %2389 = vmatpush.msrb.mxu3 %v1224_v2  ;;  %v633_v53 = vld [vmem:[%s7044_s1 + $0xb30] sm:$0xff] }
 0x24a   : > { %v952_v8 = vld [vmem:[%s7044_s1 + $0x1528] sm:$0xff]  ;;  %2322 = vmatpush.msrb.mxu0 %v824_v38 }
 0x24b   : > { %v1080_v22 = vld [vmem:[%s7044_s1 + $0x1928] sm:$0xff]  ;;  %2345 = vmatpush.msrb.mxu1 %v952_v8  ;;  %v2007_v8 = vadd.f32 %v2006_v25, %v1984_v49  ;;  %v625_v49 = vld [vmem:[%s7044_s1 + $0xaf0] sm:$0xff] }
 0x24c   : > { %v1216_v45 = vld [vmem:[%s7044_s1 + $0x1d68] sm:$0xff]  ;;  %2368 = vmatpush.msrb.mxu2 %v1080_v22  ;;  %v761_v25 = vld [vmem:[%s7044_s1 + $0xf30] sm:$0xff] }
 0x24d   : > { %v816_v46 = vld [vmem:[%s7044_s1 + $0x10e8] sm:$0xff]  ;;  %2390 = vmatpush.msrb.mxu3 %v1216_v45  ;;  %v401_v45 = vld [vmem:[%s7044_s1 + $0x3f0] sm:$0xff]  ;;  %v5885_v20 = vadd.f32 %v2029_v42, %v2007_v8  ;;  %v5962_v8 = vld [vmem:[%s3586_s30 + $0x60] sm:$0xff] }
 0x24e   : > { %v944_v59 = vld [vmem:[%s7044_s1 + $0x14e8] sm:$0xff]  ;;  %2323 = vmatpush.msrb.mxu0 %v816_v46  ;;  %v529_v46 = vld [vmem:[%s7044_s1 + $0x7f0] sm:$0xff] }
 0x24f   : > { %v1072_v58 = vld [vmem:[%s7044_s1 + $0x18e8] sm:$0xff]  ;;  %2346 = vmatpush.msrb.mxu1 %v944_v59  ;;  %7052 = vst [vmem:[#allocation6_spill] sm:$0xff] %v5885_v20  ;;  %v657_v59 = vld [vmem:[%s7044_s1 + $0xbf0] sm:$0xff]  ;;  %v1010_v20 = vld [vmem:[%s7044_s1 + $0x16f8] sm:$0xff] }
 0x250   : > { %v1208_v24 = vld [vmem:[%s7044_s1 + $0x1d28] sm:$0xff]  ;;  %2369 = vmatpush.msrb.mxu2 %v1072_v58  ;;  %v353_v42 = vld [vmem:[%s7044_s1 + $0x270] sm:$0xff] }
 0x251   : > { %v808_v61 = vld [vmem:[%s7044_s1 + $0x10a8] sm:$0xff]  ;;  %2391 = vmatpush.msrb.mxu3 %v1208_v24  ;;  %v393_v24 = vld [vmem:[%s7044_s1 + $0x3b0] sm:$0xff] }
 0x252   : > { %v936_v40 = vld [vmem:[%s7044_s1 + $0x14a8] sm:$0xff]  ;;  %2324 = vmatpush.msrb.mxu0 %v808_v61  ;;  %v649_v61 = vld [vmem:[%s7044_s1 + $0xbb0] sm:$0xff] }
 0x253   : > { %v1064_v0 = vld [vmem:[%s7044_s1 + $0x18a8] sm:$0xff]  ;;  %2347 = vmatpush.msrb.mxu1 %v936_v40  ;;  %v513_v40 = vld [vmem:[%s7044_s1 + $0x770] sm:$0xff] }
 0x254   : > { %v1200_v47 = vld [vmem:[%s7044_s1 + $0x1ce8] sm:$0xff]  ;;  %2370 = vmatpush.msrb.mxu2 %v1064_v0  ;;  %v777_v0 = vld [vmem:[%s7044_s1 + $0xfb0] sm:$0xff] }
 0x255   : > { %v800_v16 = vld [vmem:[%s7044_s1 + $0x1068] sm:$0xff]  ;;  %2392 = vmatpush.msrb.mxu3 %v1200_v47  ;;  %v505_v47 = vld [vmem:[%s7044_s1 + $0x730] sm:$0xff] }
 0x256   : > { %v928_v30 = vld [vmem:[%s7044_s1 + $0x1468] sm:$0xff]  ;;  %2325 = vmatpush.msrb.mxu0 %v800_v16  ;;  %v769_v16 = vld [vmem:[%s7044_s1 + $0xf70] sm:$0xff] }
 0x257   : > { %v1056_v6 = vld [vmem:[%s7044_s1 + $0x1868] sm:$0xff]  ;;  %2348 = vmatpush.msrb.mxu1 %v928_v30  ;;  %v497_v30 = vld [vmem:[%s7044_s1 + $0x6f0] sm:$0xff] }
 0x258   : > { %v1192_v17 = vld [vmem:[%s7044_s1 + $0x1ca8] sm:$0xff]  ;;  %2371 = vmatpush.msrb.mxu2 %v1056_v6  ;;  %v5949_v6 = vld [vmem:[%s3586_s30 + $0x70] sm:$0xff] }
 0x259   : > { %v792_v2 = vld [vmem:[%s7044_s1 + $0x1028] sm:$0xff]  ;;  %2393 = vmatpush.msrb.mxu3 %v1192_v17  ;;  %v361_v17 = vld [vmem:[%s7044_s1 + $0x2b0] sm:$0xff] }
 0x25a   : > { %v920_v38 = vld [vmem:[%s7044_s1 + $0x1428] sm:$0xff]  ;;  %2326 = vmatpush.msrb.mxu0 %v792_v2  ;;  %v489_v2 = vld [vmem:[%s7044_s1 + $0x6b0] sm:$0xff] }
 0x25b   : > { %v1048_v32 = vld [vmem:[%s7044_s1 + $0x1828] sm:$0xff]  ;;  %2349 = vmatpush.msrb.mxu1 %v920_v38  ;;  %2327 = vmatmul.f32.vlgmr.msrb.gmra.mxu0 %v5488_v37  ;;  %v641_v37 = vld [vmem:[%s7044_s1 + $0xb70] sm:$0xff] }
 0x25c   : > { %v1184_v22 = vld [vmem:[%s7044_s1 + $0x1c68] sm:$0xff]  ;;  %2372 = vmatpush.msrb.mxu2 %v1048_v32  ;;  %2403 = vmatpush.msra.mxu0 %v401_v45  ;;  %v617_v38 = vld [vmem:[%s7044_s1 + $0xab0] sm:$0xff] }
 0x25d   : > { %2394 = vmatpush.msrb.mxu3 %v1184_v22  ;;  %v1176_v58 = vld [vmem:[%s7044_s1 + $0x1c28] sm:$0xff]  ;;  %2373 = vmatmul.f32.vlgmr.msrb.gmra.mxu2 %v5475_v27  ;;  %v785_v27 = vld [vmem:[%s7044_s1 + $0xff0] sm:$0xff]  ;;  %v5969_v22 = vld [vmem:[%s3586_s30 + $0x78] sm:$0xff] }
 0x25e   : > { %2426 = vmatpush.msra.mxu1 %v529_v46  ;;  %2449 = vmatpush.msra.mxu2 %v657_v59  ;;  %v753_v32 = vld [vmem:[%s7044_s1 + $0xef0] sm:$0xff] }
 0x25f   : > { %2395 = vmatpush.msrb.mxu3 %v1176_v58  ;;  %2404 = vmatpush.msra.mxu0 %v393_v24  ;;  %v481_v45 = vld [vmem:[%s7044_s1 + $0x670] sm:$0xff]  ;;  %v5985_v58 = vld [vmem:[%s3586_s30 + $0x68] sm:$0xff] }
 0x260   : > { %2396 = vmatmul.f32.vlgmr.msrb.gmra.mxu3 %v5495_v5  ;;  %2427 = vmatpush.msra.mxu1 %v521_v9  ;;  %v377_v5 = vld [vmem:[%s7044_s1 + $0x330] sm:$0xff] }
 0x261   : > { %2450 = vmatpush.msra.mxu2 %v649_v61  ;;  %2472 = vmatpush.msra.mxu3 %v785_v27  ;;  %v609_v46 = vld [vmem:[%s7044_s1 + $0xa70] sm:$0xff]  ;;  %v1963_v61 = vpop.f32.mrf.mxu0 }
 0x262   : > { %2350 = vmatmul.f32.vlgmr.msrb.gmra.mxu1 %v5513_v12  ;;  %2405 = vmatpush.msra.mxu0 %v385_v51  ;;  %v369_v12 = vld [vmem:[%s7044_s1 + $0x2f0] sm:$0xff] }
 0x263   : > { %2428 = vmatpush.msra.mxu1 %v513_v40  ;;  %2451 = vmatpush.msra.mxu2 %v641_v37  ;;  %v745_v59 = vld [vmem:[%s7044_s1 + $0xeb0] sm:$0xff]  ;;  %v1964_v40 = vadd.f32 %v1963_v61, %v5831_v52 }
 0x264   : > { %2473 = vmatpush.msra.mxu3 %v777_v0  ;;  %2406 = vmatpush.msra.mxu0 %v377_v5  ;;  %v345_v24 = vld [vmem:[%s7044_s1 + $0x230] sm:$0xff] }
 0x265   : > { %2429 = vmatpush.msra.mxu1 %v505_v47  ;;  %2452 = vmatpush.msra.mxu2 %v633_v53  ;;  %v473_v9 = vld [vmem:[%s7044_s1 + $0x630] sm:$0xff]  ;;  %v1986_v47 = vpop.f32.mrf.mxu1 }
 0x266   : > { %2474 = vmatpush.msra.mxu3 %v769_v16  ;;  %2376 = vmatmul.f32.gmra.mxu2 %v5949_v6  ;;  %v601_v27 = vld [vmem:[%s7044_s1 + $0xa30] sm:$0xff] }
 0x267   : > { %2407 = vmatpush.msra.mxu0 %v369_v12  ;;  %2430 = vmatpush.msra.mxu1 %v497_v30  ;;  %v737_v51 = vld [vmem:[%s7044_s1 + $0xe70] sm:$0xff]  ;;  %v1987_v12 = vadd.f32 %v1986_v47, %v1964_v40  ;;  %v2009_v30 = vpop.f32.mrf.mxu2 }
 0x268   : > { %2453 = vmatpush.msra.mxu2 %v625_v49  ;;  %2475 = vmatpush.msra.mxu3 %v761_v25  ;;  %v337_v37 = vld [vmem:[%s7044_s1 + $0x1f0] sm:$0xff] }
 0x269   : > { %2330 = vmatmul.f32.gmra.mxu0 %v5962_v8  ;;  %2399 = vmatmul.f32.gmra.mxu3 %v5969_v22  ;;  %v465_v0 = vld [vmem:[%s7044_s1 + $0x5f0] sm:$0xff] }
 0x26a   : > { %2408 = vmatpush.msra.mxu0 %v361_v17  ;;  %2431 = vmatpush.msra.mxu1 %v489_v2  ;;  %v593_v5 = vld [vmem:[%s7044_s1 + $0x9f0] sm:$0xff] }
 0x26b   : > { %2454 = vmatpush.msra.mxu2 %v617_v38  ;;  %2476 = vmatpush.msra.mxu3 %v753_v32  ;;  %v729_v52 = vld [vmem:[%s7044_s1 + $0xe30] sm:$0xff]  ;;  %v2010_v38 = vadd.f32 %v2009_v30, %v1987_v12 }
 0x26c   : > { %2353 = vmatmul.f32.gmra.mxu1 %v5985_v58  ;;  %2409 = vmatpush.msra.mxu0 %v353_v42  ;;  %v329_v53 = vld [vmem:[%s7044_s1 + $0x1b0] sm:$0xff] }
 0x26d   : > { %2432 = vmatpush.msra.mxu1 %v481_v45  ;;  %2455 = vmatpush.msra.mxu2 %v609_v46  ;;  %v457_v16 = vld [vmem:[%s7044_s1 + $0x5b0] sm:$0xff]  ;;  %v2032_v45 = vpop.f32.mrf.mxu3 }
 0x26e   : > { %2477 = vmatpush.msra.mxu3 %v745_v59  ;;  %2410 = vmatpush.msra.mxu0 %v345_v24  ;;  %v585_v49 = vld [vmem:[%s7044_s1 + $0x9b0] sm:$0xff]  ;;  %v6043_v24 = vadd.f32 %v2032_v45, %v2010_v38 }
 0x26f   : > { %2433 = vmatpush.msra.mxu1 %v473_v9  ;;  %2456 = vmatpush.msra.mxu2 %v601_v27  ;;  %v721_v25 = vld [vmem:[%s7044_s1 + $0xdf0] sm:$0xff] }
 0x270   : > { %2478 = vmatpush.msra.mxu3 %v737_v51  ;;  %2411 = vmatpush.msra.mxu0 %v337_v37  ;;  %v321_v17 = vld [vmem:[%s7044_s1 + $0x170] sm:$0xff]  ;;  %7053 = vst [vmem:[#allocation7_spill] sm:$0xff] %v6043_v24  ;;  %v1018_v24 = vld [vmem:[%s7044_s1 + $0x1738] sm:$0xff] }
 0x271   : > { %2434 = vmatpush.msra.mxu1 %v465_v0  ;;  %2457 = vmatpush.msra.mxu2 %v593_v5  ;;  %v449_v2 = vld [vmem:[%s7044_s1 + $0x570] sm:$0xff] }
 0x272   : > { %2479 = vmatpush.msra.mxu3 %v729_v52  ;;  %2412 = vmatpush.msra.mxu0 %v329_v53  ;;  %v577_v32 = vld [vmem:[%s7044_s1 + $0x970] sm:$0xff] }
 0x273   : > { %2435 = vmatpush.msra.mxu1 %v457_v16  ;;  %v713_v42 = vld [vmem:[%s7044_s1 + $0xdb0] sm:$0xff]  ;;  %2458 = vmatpush.msra.mxu2 %v585_v49 }
 0x274   : > { %2480 = vmatpush.msra.mxu3 %v721_v25  ;;  %v313_v46 = vld [vmem:[%s7044_s1 + $0x130] sm:$0xff]  ;;  %2413 = vmatpush.msra.mxu0 %v321_v17 }
 0x275   : > { %v441_v59 = vld [vmem:[%s7044_s1 + $0x530] sm:$0xff]  ;;  %2436 = vmatpush.msra.mxu1 %v449_v2  ;;  %2459 = vmatpush.msra.mxu2 %v577_v32 }
 0x276   : > { %v569_v9 = vld [vmem:[%s7044_s1 + $0x930] sm:$0xff]  ;;  %2481 = vmatpush.msra.mxu3 %v713_v42  ;;  %2414 = vmatpush.msra.mxu0 %v313_v46 }
 0x277   : > { %v705_v61 = vld [vmem:[%s7044_s1 + $0xd70] sm:$0xff]  ;;  %2437 = vmatpush.msra.mxu1 %v441_v59  ;;  %2460 = vmatpush.msra.mxu2 %v569_v9 }
 0x278   : > { %v305_v27 = vld [vmem:[%s7044_s1 + $0xf0] sm:$0xff]  ;;  %2482 = vmatpush.msra.mxu3 %v705_v61 }
 0x279   : > { %v433_v51 = vld [vmem:[%s7044_s1 + $0x4f0] sm:$0xff]  ;;  %2415 = vmatpush.msra.mxu0 %v305_v27 }
 0x27a   : > { %v561_v40 = vld [vmem:[%s7044_s1 + $0x8f0] sm:$0xff]  ;;  %2438 = vmatpush.msra.mxu1 %v433_v51 }
 0x27b   : > { %v697_v37 = vld [vmem:[%s7044_s1 + $0xd30] sm:$0xff]  ;;  %2461 = vmatpush.msra.mxu2 %v561_v40 }
 0x27c   : > { %v297_v0 = vld [vmem:[%s7044_s1 + $0xb0] sm:$0xff]  ;;  %2483 = vmatpush.msra.mxu3 %v697_v37 }
 0x27d   : > { %v425_v5 = vld [vmem:[%s7044_s1 + $0x4b0] sm:$0xff]  ;;  %2416 = vmatpush.msra.mxu0 %v297_v0 }
 0x27e   : > { %v553_v52 = vld [vmem:[%s7044_s1 + $0x8b0] sm:$0xff]  ;;  %2439 = vmatpush.msra.mxu1 %v425_v5 }
 0x27f   : > { %v689_v47 = vld [vmem:[%s7044_s1 + $0xcf0] sm:$0xff]  ;;  %2462 = vmatpush.msra.mxu2 %v553_v52 }
 0x280   : > { %v289_v53 = vld [vmem:[%s7044_s1 + $0x70] sm:$0xff]  ;;  %2484 = vmatpush.msra.mxu3 %v689_v47 }
 0x281   : > { %v417_v16 = vld [vmem:[%s7044_s1 + $0x470] sm:$0xff]  ;;  %2417 = vmatpush.msra.mxu0 %v289_v53 }
 0x282   : > { %v545_v12 = vld [vmem:[%s7044_s1 + $0x870] sm:$0xff]  ;;  %2440 = vmatpush.msra.mxu1 %v417_v16 }
 0x283   : > { %v681_v30 = vld [vmem:[%s7044_s1 + $0xcb0] sm:$0xff]  ;;  %2463 = vmatpush.msra.mxu2 %v545_v12 }
 0x284   : > { %v281_v49 = vld [vmem:[%s7044_s1 + $0x30] sm:$0xff]  ;;  %2485 = vmatpush.msra.mxu3 %v681_v30 }
 0x285   : > { %v409_v25 = vld [vmem:[%s7044_s1 + $0x430] sm:$0xff]  ;;  %2418 = vmatpush.msra.mxu0 %v281_v49 }
 0x286   : > { %v537_v17 = vld [vmem:[%s7044_s1 + $0x830] sm:$0xff]  ;;  %2441 = vmatpush.msra.mxu1 %v409_v25 }
 0x287   : > { %v673_v2 = vld [vmem:[%s7044_s1 + $0xc70] sm:$0xff]  ;;  %2464 = vmatpush.msra.mxu2 %v537_v17 }
 0x288   : > { %v913_v38 = vld [vmem:[%s7044_s1 + $0x13f0] sm:$0xff]  ;;  %2486 = vmatpush.msra.mxu3 %v673_v2 }
 0x289   : > { %v1041_v32 = vld [vmem:[%s7044_s1 + $0x17f0] sm:$0xff]  ;;  %2495 = vmatpush.msrb.mxu0 %v913_v38 }
 0x28a   : > { %v1169_v42 = vld [vmem:[%s7044_s1 + $0x1bf0] sm:$0xff]  ;;  %2518 = vmatpush.msrb.mxu1 %v1041_v32 }
 0x28b   : > { %v665_v45 = vld [vmem:[%s7044_s1 + $0xc30] sm:$0xff]  ;;  %2541 = vmatpush.msrb.mxu2 %v1169_v42 }
 0x28c   : > { %v905_v46 = vld [vmem:[%s7044_s1 + $0x13b0] sm:$0xff]  ;;  %2487 = vmatpush.msra.mxu3 %v665_v45 }
 0x28d   : > { %v1033_v59 = vld [vmem:[%s7044_s1 + $0x17b0] sm:$0xff]  ;;  %2496 = vmatpush.msrb.mxu0 %v905_v46 }
 0x28e   : > { %v1161_v9 = vld [vmem:[%s7044_s1 + $0x1bb0] sm:$0xff]  ;;  %2519 = vmatpush.msrb.mxu1 %v1033_v59 }
 0x28f   : > { %v1297_v61 = vld [vmem:[%s7044_s1 + $0x1ff0] sm:$0xff]  ;;  %2542 = vmatpush.msrb.mxu2 %v1161_v9 }
 0x290   : > { %v897_v27 = vld [vmem:[%s7044_s1 + $0x1370] sm:$0xff]  ;;  %2564 = vmatpush.msrb.mxu3 %v1297_v61 }
 0x291   : > { %v1025_v51 = vld [vmem:[%s7044_s1 + $0x1770] sm:$0xff]  ;;  %2497 = vmatpush.msrb.mxu0 %v897_v27 }
 0x292   : > { %v1153_v40 = vld [vmem:[%s7044_s1 + $0x1b70] sm:$0xff]  ;;  %2520 = vmatpush.msrb.mxu1 %v1025_v51 }
 0x293   : > { %v1289_v37 = vld [vmem:[%s7044_s1 + $0x1fb0] sm:$0xff]  ;;  %2543 = vmatpush.msrb.mxu2 %v1153_v40 }
 0x294   : > { %v889_v0 = vld [vmem:[%s7044_s1 + $0x1330] sm:$0xff]  ;;  %2565 = vmatpush.msrb.mxu3 %v1289_v37 }
 0x295   : > { %v1017_v5 = vld [vmem:[%s7044_s1 + $0x1730] sm:$0xff]  ;;  %2498 = vmatpush.msrb.mxu0 %v889_v0 }
 0x296   : > { %v1145_v52 = vld [vmem:[%s7044_s1 + $0x1b30] sm:$0xff]  ;;  %2521 = vmatpush.msrb.mxu1 %v1017_v5 }
 0x297   : > { %v1281_v47 = vld [vmem:[%s7044_s1 + $0x1f70] sm:$0xff]  ;;  %2544 = vmatpush.msrb.mxu2 %v1145_v52 }
 0x298   : > { %v881_v53 = vld [vmem:[%s7044_s1 + $0x12f0] sm:$0xff]  ;;  %2566 = vmatpush.msrb.mxu3 %v1281_v47 }
 0x299   : > { %v1009_v16 = vld [vmem:[%s7044_s1 + $0x16f0] sm:$0xff]  ;;  %2499 = vmatpush.msrb.mxu0 %v881_v53  ;;  %v6221_v53 = vld [vmem:[%s3586_s30] sm:$0xff] }
 0x29a   : > { %v1137_v12 = vld [vmem:[%s7044_s1 + $0x1af0] sm:$0xff]  ;;  %2522 = vmatpush.msrb.mxu1 %v1009_v16  ;;  %2419 = vmatmul.f32.vlgmr.msra.gmra.mxu0 %v6221_v53 }
 0x29b   : > { %v1273_v30 = vld [vmem:[%s7044_s1 + $0x1f30] sm:$0xff]  ;;  %2545 = vmatpush.msrb.mxu2 %v1137_v12  ;;  %v6228_v12 = vld [vmem:[%s3586_s30 + $0x18] sm:$0xff] }
 0x29c   : > { %v873_v49 = vld [vmem:[%s7044_s1 + $0x12b0] sm:$0xff]  ;;  %2567 = vmatpush.msrb.mxu3 %v1273_v30 }
 0x29d   : > { %v1001_v25 = vld [vmem:[%s7044_s1 + $0x16b0] sm:$0xff]  ;;  %2500 = vmatpush.msrb.mxu0 %v873_v49  ;;  %2488 = vmatmul.f32.vlgmr.msra.gmra.mxu3 %v6228_v12 }
 0x29e   : > { %v1129_v17 = vld [vmem:[%s7044_s1 + $0x1ab0] sm:$0xff]  ;;  %2523 = vmatpush.msrb.mxu1 %v1001_v25 }
 0x29f   : > { %v1265_v2 = vld [vmem:[%s7044_s1 + $0x1ef0] sm:$0xff]  ;;  %2546 = vmatpush.msrb.mxu2 %v1129_v17 }
 0x2a0   : > { %v865_v38 = vld [vmem:[%s7044_s1 + $0x1270] sm:$0xff]  ;;  %2568 = vmatpush.msrb.mxu3 %v1265_v2  ;;  %v6244_v2 = vld [vmem:[%s3586_s30 + $0x8] sm:$0xff] }
 0x2a1   : > { %v993_v32 = vld [vmem:[%s7044_s1 + $0x1670] sm:$0xff]  ;;  %2501 = vmatpush.msrb.mxu0 %v865_v38  ;;  %2442 = vmatmul.f32.vlgmr.msra.gmra.mxu1 %v6244_v2 }
 0x2a2   : > { %v1121_v42 = vld [vmem:[%s7044_s1 + $0x1a70] sm:$0xff]  ;;  %2524 = vmatpush.msrb.mxu1 %v993_v32 }
 0x2a3   : > { %v1257_v45 = vld [vmem:[%s7044_s1 + $0x1eb0] sm:$0xff]  ;;  %2547 = vmatpush.msrb.mxu2 %v1121_v42 }
 0x2a4   : > { %v857_v46 = vld [vmem:[%s7044_s1 + $0x1230] sm:$0xff]  ;;  %2569 = vmatpush.msrb.mxu3 %v1257_v45 }
 0x2a5   : > { %v985_v59 = vld [vmem:[%s7044_s1 + $0x1630] sm:$0xff]  ;;  %2502 = vmatpush.msrb.mxu0 %v857_v46 }
 0x2a6   : > { %v1113_v9 = vld [vmem:[%s7044_s1 + $0x1a30] sm:$0xff]  ;;  %2525 = vmatpush.msrb.mxu1 %v985_v59 }
 0x2a7   : > { %v1249_v61 = vld [vmem:[%s7044_s1 + $0x1e70] sm:$0xff]  ;;  %2548 = vmatpush.msrb.mxu2 %v1113_v9 }
 0x2a8   : > { %v849_v27 = vld [vmem:[%s7044_s1 + $0x11f0] sm:$0xff]  ;;  %2570 = vmatpush.msrb.mxu3 %v1249_v61 }
 0x2a9   : > { %v977_v51 = vld [vmem:[%s7044_s1 + $0x15f0] sm:$0xff]  ;;  %2503 = vmatpush.msrb.mxu0 %v849_v27 }
 0x2aa   : > { %v1105_v40 = vld [vmem:[%s7044_s1 + $0x19f0] sm:$0xff]  ;;  %2526 = vmatpush.msrb.mxu1 %v977_v51 }
 0x2ab   : > { %v1241_v37 = vld [vmem:[%s7044_s1 + $0x1e30] sm:$0xff]  ;;  %2549 = vmatpush.msrb.mxu2 %v1105_v40 }
 0x2ac   : > { %v6208_v0 = vld [vmem:[%s3586_s30 + $0x10] sm:$0xff]  ;;  %2571 = vmatpush.msrb.mxu3 %v1241_v37 }
 0x2ad   : > { %2465 = vmatmul.f32.vlgmr.msra.gmra.mxu2 %v6208_v0  ;;  %v841_v5 = vld [vmem:[%s7044_s1 + $0x11b0] sm:$0xff] }
 0x2ae   : > { %v969_v52 = vld [vmem:[%s7044_s1 + $0x15b0] sm:$0xff]  ;;  %2504 = vmatpush.msrb.mxu0 %v841_v5  ;;  %v6285_v5 = vld [vmem:[%s3586_s30 + $0x40] sm:$0xff] }
 0x2af   : > { %v1097_v47 = vld [vmem:[%s7044_s1 + $0x19b0] sm:$0xff]  ;;  %2527 = vmatpush.msrb.mxu1 %v969_v52  ;;  %2422 = vmatmul.f32.gmra.mxu0 %v6285_v5 }
 0x2b0   : > { %v1233_v16 = vld [vmem:[%s7044_s1 + $0x1df0] sm:$0xff]  ;;  %2550 = vmatpush.msrb.mxu2 %v1097_v47  ;;  %v6292_v47 = vld [vmem:[%s3586_s30 + $0x58] sm:$0xff] }
 0x2b1   : > { %v833_v30 = vld [vmem:[%s7044_s1 + $0x1170] sm:$0xff]  ;;  %2572 = vmatpush.msrb.mxu3 %v1233_v16 }
 0x2b2   : > { %v961_v49 = vld [vmem:[%s7044_s1 + $0x1570] sm:$0xff]  ;;  %2505 = vmatpush.msrb.mxu0 %v833_v30  ;;  %2491 = vmatmul.f32.gmra.mxu3 %v6292_v47 }
 0x2b3   : > { %v1089_v25 = vld [vmem:[%s7044_s1 + $0x1970] sm:$0xff]  ;;  %2528 = vmatpush.msrb.mxu1 %v961_v49 }
 0x2b4   : > { %v1225_v17 = vld [vmem:[%s7044_s1 + $0x1db0] sm:$0xff]  ;;  %2551 = vmatpush.msrb.mxu2 %v1089_v25 }
 0x2b5   : > { %v825_v38 = vld [vmem:[%s7044_s1 + $0x1130] sm:$0xff]  ;;  %2573 = vmatpush.msrb.mxu3 %v1225_v17  ;;  %v6308_v17 = vld [vmem:[%s3586_s30 + $0x48] sm:$0xff] }
 0x2b6   : > { %v953_v32 = vld [vmem:[%s7044_s1 + $0x1530] sm:$0xff]  ;;  %2506 = vmatpush.msrb.mxu0 %v825_v38  ;;  %2445 = vmatmul.f32.gmra.mxu1 %v6308_v17 }
 0x2b7   : > { %v1081_v42 = vld [vmem:[%s7044_s1 + $0x1930] sm:$0xff]  ;;  %2529 = vmatpush.msrb.mxu1 %v953_v32 }
 0x2b8   : > { %v1217_v45 = vld [vmem:[%s7044_s1 + $0x1d70] sm:$0xff]  ;;  %2552 = vmatpush.msrb.mxu2 %v1081_v42 }
 0x2b9   : > { %v817_v46 = vld [vmem:[%s7044_s1 + $0x10f0] sm:$0xff]  ;;  %2574 = vmatpush.msrb.mxu3 %v1217_v45 }
 0x2ba   : > { %v945_v59 = vld [vmem:[%s7044_s1 + $0x14f0] sm:$0xff]  ;;  %2507 = vmatpush.msrb.mxu0 %v817_v46  ;;  %v402_v46 = vld [vmem:[%s7044_s1 + $0x3f8] sm:$0xff] }
 0x2bb   : > { %v1073_v9 = vld [vmem:[%s7044_s1 + $0x18f0] sm:$0xff]  ;;  %2530 = vmatpush.msrb.mxu1 %v945_v59  ;;  %v530_v59 = vld [vmem:[%s7044_s1 + $0x7f8] sm:$0xff] }
 0x2bc   : > { %v1209_v61 = vld [vmem:[%s7044_s1 + $0x1d30] sm:$0xff]  ;;  %2553 = vmatpush.msrb.mxu2 %v1073_v9  ;;  %v658_v9 = vld [vmem:[%s7044_s1 + $0xbf8] sm:$0xff] }
 0x2bd   : > { %v6272_v27 = vld [vmem:[%s3586_s30 + $0x50] sm:$0xff]  ;;  %2575 = vmatpush.msrb.mxu3 %v1209_v61 }
 0x2be   : > { %2468 = vmatmul.f32.gmra.mxu2 %v6272_v27  ;;  %v809_v51 = vld [vmem:[%s7044_s1 + $0x10b0] sm:$0xff] }
 0x2bf   : > { %v937_v40 = vld [vmem:[%s7044_s1 + $0x14b0] sm:$0xff]  ;;  %2508 = vmatpush.msrb.mxu0 %v809_v51 }
 0x2c0   : > { %v1065_v37 = vld [vmem:[%s7044_s1 + $0x18b0] sm:$0xff]  ;;  %2531 = vmatpush.msrb.mxu1 %v937_v40  ;;  %v394_v40 = vld [vmem:[%s7044_s1 + $0x3b8] sm:$0xff] }
 0x2c1   : > { %v1201_v52 = vld [vmem:[%s7044_s1 + $0x1cf0] sm:$0xff]  ;;  %2554 = vmatpush.msrb.mxu2 %v1065_v37  ;;  %v522_v37 = vld [vmem:[%s7044_s1 + $0x7b8] sm:$0xff] }
 0x2c2   : > { %v801_v16 = vld [vmem:[%s7044_s1 + $0x1070] sm:$0xff]  ;;  %2576 = vmatpush.msrb.mxu3 %v1201_v52  ;;  %v650_v52 = vld [vmem:[%s7044_s1 + $0xbb8] sm:$0xff] }
 0x2c3   : > { %v929_v30 = vld [vmem:[%s7044_s1 + $0x1470] sm:$0xff]  ;;  %2509 = vmatpush.msrb.mxu0 %v801_v16  ;;  %v6349_v16 = vld [vmem:[%s3586_s30 + $0x20] sm:$0xff] }
 0x2c4   : > { %v1057_v49 = vld [vmem:[%s7044_s1 + $0x1870] sm:$0xff]  ;;  %2532 = vmatpush.msrb.mxu1 %v929_v30  ;;  %v786_v30 = vld [vmem:[%s7044_s1 + $0xff8] sm:$0xff] }
 0x2c5   : > { %v1193_v25 = vld [vmem:[%s7044_s1 + $0x1cb0] sm:$0xff]  ;;  %2555 = vmatpush.msrb.mxu2 %v1057_v49  ;;  %v6356_v49 = vld [vmem:[%s3586_s30 + $0x38] sm:$0xff] }
 0x2c6   : > { %v793_v38 = vld [vmem:[%s7044_s1 + $0x1030] sm:$0xff]  ;;  %2577 = vmatpush.msrb.mxu3 %v1193_v25  ;;  %v386_v25 = vld [vmem:[%s7044_s1 + $0x378] sm:$0xff] }
 0x2c7   : > { %v921_v32 = vld [vmem:[%s7044_s1 + $0x1430] sm:$0xff]  ;;  %2510 = vmatpush.msrb.mxu0 %v793_v38  ;;  %v514_v38 = vld [vmem:[%s7044_s1 + $0x778] sm:$0xff] }
 0x2c8   : > { %v1049_v42 = vld [vmem:[%s7044_s1 + $0x1830] sm:$0xff]  ;;  %2533 = vmatpush.msrb.mxu1 %v921_v32  ;;  %2511 = vmatmul.f32.vlgmr.msrb.gmra.mxu0 %v6349_v16  ;;  %v642_v32 = vld [vmem:[%s7044_s1 + $0xb78] sm:$0xff] }
 0x2c9   : > { %v1185_v45 = vld [vmem:[%s7044_s1 + $0x1c70] sm:$0xff]  ;;  %2556 = vmatpush.msrb.mxu2 %v1049_v42  ;;  %2587 = vmatpush.msra.mxu0 %v402_v46  ;;  %v778_v42 = vld [vmem:[%s7044_s1 + $0xfb8] sm:$0xff] }
 0x2ca   : > { %2578 = vmatpush.msrb.mxu3 %v1185_v45  ;;  %v1177_v61 = vld [vmem:[%s7044_s1 + $0x1c30] sm:$0xff]  ;;  %2610 = vmatpush.msra.mxu1 %v530_v59  ;;  %v6372_v45 = vld [vmem:[%s3586_s30 + $0x28] sm:$0xff]  ;;  %v378_v46 = vld [vmem:[%s7044_s1 + $0x338] sm:$0xff] }
 0x2cb   : > { %v6336_v51 = vld [vmem:[%s3586_s30 + $0x30] sm:$0xff]  ;;  %2633 = vmatpush.msra.mxu2 %v658_v9  ;;  %2588 = vmatpush.msra.mxu0 %v394_v40  ;;  %v506_v59 = vld [vmem:[%s7044_s1 + $0x738] sm:$0xff] }
 0x2cc   : > { %2557 = vmatmul.f32.vlgmr.msrb.gmra.mxu2 %v6336_v51  ;;  %2579 = vmatpush.msrb.mxu3 %v1177_v61  ;;  %v634_v9 = vld [vmem:[%s7044_s1 + $0xb38] sm:$0xff] }
 0x2cd   : > { %2580 = vmatmul.f32.vlgmr.msrb.gmra.mxu3 %v6356_v49  ;;  %2611 = vmatpush.msra.mxu1 %v522_v37  ;;  %v770_v61 = vld [vmem:[%s7044_s1 + $0xf78] sm:$0xff] }
 0x2ce   : > { %2634 = vmatpush.msra.mxu2 %v650_v52  ;;  %2656 = vmatpush.msra.mxu3 %v786_v30  ;;  %v370_v40 = vld [vmem:[%s7044_s1 + $0x2f8] sm:$0xff] }
 0x2cf   : > { %2534 = vmatmul.f32.vlgmr.msrb.gmra.mxu1 %v6372_v45  ;;  %2589 = vmatpush.msra.mxu0 %v386_v25  ;;  %v498_v37 = vld [vmem:[%s7044_s1 + $0x6f8] sm:$0xff] }
 0x2d0   : > { %2612 = vmatpush.msra.mxu1 %v514_v38  ;;  %2635 = vmatpush.msra.mxu2 %v642_v32  ;;  %v626_v52 = vld [vmem:[%s7044_s1 + $0xaf8] sm:$0xff] }
 0x2d1   : > { %2657 = vmatpush.msra.mxu3 %v778_v42  ;;  %2590 = vmatpush.msra.mxu0 %v378_v46  ;;  %v762_v30 = vld [vmem:[%s7044_s1 + $0xf38] sm:$0xff] }
 0x2d2   : > { %2613 = vmatpush.msra.mxu1 %v506_v59  ;;  %2636 = vmatpush.msra.mxu2 %v634_v9  ;;  %v362_v25 = vld [vmem:[%s7044_s1 + $0x2b8] sm:$0xff] }
 0x2d3   : > { %2658 = vmatpush.msra.mxu3 %v770_v61  ;;  %2591 = vmatpush.msra.mxu0 %v370_v40  ;;  %v490_v38 = vld [vmem:[%s7044_s1 + $0x6b8] sm:$0xff] }
 0x2d4   : > { %2560 = vmatmul.f32.gmra.mxu2 %v5949_v6  ;;  %2614 = vmatpush.msra.mxu1 %v498_v37  ;;  %v618_v32 = vld [vmem:[%s7044_s1 + $0xab8] sm:$0xff] }
 0x2d5   : > { %2637 = vmatpush.msra.mxu2 %v626_v52  ;;  %2659 = vmatpush.msra.mxu3 %v762_v30  ;;  %v754_v6 = vld [vmem:[%s7044_s1 + $0xef8] sm:$0xff] }
 0x2d6   : > { %2514 = vmatmul.f32.gmra.mxu0 %v5962_v8  ;;  %2583 = vmatmul.f32.gmra.mxu3 %v5969_v22  ;;  %v354_v42 = vld [vmem:[%s7044_s1 + $0x278] sm:$0xff] }
 0x2d7   : > { %2592 = vmatpush.msra.mxu0 %v362_v25  ;;  %v482_v46 = vld [vmem:[%s7044_s1 + $0x678] sm:$0xff]  ;;  %2615 = vmatpush.msra.mxu1 %v490_v38 }
 0x2d8   : > { %2638 = vmatpush.msra.mxu2 %v618_v32  ;;  %v610_v8 = vld [vmem:[%s7044_s1 + $0xa78] sm:$0xff]  ;;  %2660 = vmatpush.msra.mxu3 %v754_v6  ;;  %v6457_v32 = vpop.f32.mrf.mxu0 }
 0x2d9   : > { %v746_v59 = vld [vmem:[%s7044_s1 + $0xeb8] sm:$0xff]  ;;  %2537 = vmatmul.f32.gmra.mxu1 %v5985_v58  ;;  %2593 = vmatpush.msra.mxu0 %v354_v42 }
 0x2da   : > { %v346_v22 = vld [vmem:[%s7044_s1 + $0x238] sm:$0xff]  ;;  %2616 = vmatpush.msra.mxu1 %v482_v46  ;;  %2639 = vmatpush.msra.mxu2 %v610_v8 }
 0x2db   : > { %v474_v9 = vld [vmem:[%s7044_s1 + $0x638] sm:$0xff]  ;;  %2661 = vmatpush.msra.mxu3 %v746_v59  ;;  %2594 = vmatpush.msra.mxu0 %v346_v22 }
 0x2dc   : > { %v602_v61 = vld [vmem:[%s7044_s1 + $0xa38] sm:$0xff]  ;;  %2617 = vmatpush.msra.mxu1 %v474_v9 }
 0x2dd   : > { %v738_v40 = vld [vmem:[%s7044_s1 + $0xe78] sm:$0xff]  ;;  %2640 = vmatpush.msra.mxu2 %v602_v61 }
 0x2de   : > { %v338_v58 = vld [vmem:[%s7044_s1 + $0x1f8] sm:$0xff]  ;;  %2662 = vmatpush.msra.mxu3 %v738_v40  ;;  %v6483_v40 = vpop.f32.mrf.mxu1 }
 0x2df   : > { %v466_v37 = vld [vmem:[%s7044_s1 + $0x5f8] sm:$0xff]  ;;  %2595 = vmatpush.msra.mxu0 %v338_v58 }
 0x2e0   : > { %v594_v52 = vld [vmem:[%s7044_s1 + $0x9f8] sm:$0xff]  ;;  %2618 = vmatpush.msra.mxu1 %v466_v37 }
 0x2e1   : > { %v730_v30 = vld [vmem:[%s7044_s1 + $0xe38] sm:$0xff]  ;;  %2641 = vmatpush.msra.mxu2 %v594_v52 }
 0x2e2   : > { %v330_v25 = vld [vmem:[%s7044_s1 + $0x1b8] sm:$0xff]  ;;  %2663 = vmatpush.msra.mxu3 %v730_v30 }
 0x2e3   : > { %v458_v38 = vld [vmem:[%s7044_s1 + $0x5b8] sm:$0xff]  ;;  %2596 = vmatpush.msra.mxu0 %v330_v25 }
 0x2e4   : > { %v586_v6 = vld [vmem:[%s7044_s1 + $0x9b8] sm:$0xff]  ;;  %2619 = vmatpush.msra.mxu1 %v458_v38 }
 0x2e5   : > { %v722_v42 = vld [vmem:[%s7044_s1 + $0xdf8] sm:$0xff]  ;;  %2642 = vmatpush.msra.mxu2 %v586_v6 }
 0x2e6   : > { %v322_v46 = vld [vmem:[%s7044_s1 + $0x178] sm:$0xff]  ;;  %2664 = vmatpush.msra.mxu3 %v722_v42 }
 0x2e7   : > { %v450_v8 = vld [vmem:[%s7044_s1 + $0x578] sm:$0xff]  ;;  %2597 = vmatpush.msra.mxu0 %v322_v46  ;;  %v6509_v46 = vpop.f32.mrf.mxu2 }
 0x2e8   : > { %v578_v59 = vld [vmem:[%s7044_s1 + $0x978] sm:$0xff]  ;;  %2620 = vmatpush.msra.mxu1 %v450_v8 }
 0x2e9   : > { %v714_v22 = vld [vmem:[%s7044_s1 + $0xdb8] sm:$0xff]  ;;  %2643 = vmatpush.msra.mxu2 %v578_v59 }
 0x2ea   : > { %v314_v9 = vld [vmem:[%s7044_s1 + $0x138] sm:$0xff]  ;;  %2665 = vmatpush.msra.mxu3 %v714_v22 }
 0x2eb   : > { %v442_v61 = vld [vmem:[%s7044_s1 + $0x538] sm:$0xff]  ;;  %2598 = vmatpush.msra.mxu0 %v314_v9 }
 0x2ec   : > { %v570_v58 = vld [vmem:[%s7044_s1 + $0x938] sm:$0xff]  ;;  %2621 = vmatpush.msra.mxu1 %v442_v61  ;;  %v6523_v61 = vpop.f32.mrf.mxu0 }
 0x2ed   : > { %v706_v37 = vld [vmem:[%s7044_s1 + $0xd78] sm:$0xff]  ;;  %2644 = vmatpush.msra.mxu2 %v570_v58 }
 0x2ee   : > { %v306_v52 = vld [vmem:[%s7044_s1 + $0xf8] sm:$0xff]  ;;  %2666 = vmatpush.msra.mxu3 %v706_v37 }
 0x2ef   : > { %v434_v30 = vld [vmem:[%s7044_s1 + $0x4f8] sm:$0xff]  ;;  %2599 = vmatpush.msra.mxu0 %v306_v52 }
 0x2f0   : > { %v562_v25 = vld [vmem:[%s7044_s1 + $0x8f8] sm:$0xff]  ;;  %2622 = vmatpush.msra.mxu1 %v434_v30 }
 0x2f1   : > { %v698_v38 = vld [vmem:[%s7044_s1 + $0xd38] sm:$0xff]  ;;  %2645 = vmatpush.msra.mxu2 %v562_v25  ;;  %v6537_v25 = vpop.f32.mrf.mxu3 }
 0x2f2   : > { %v298_v6 = vld [vmem:[%s7044_s1 + $0xb8] sm:$0xff]  ;;  %2667 = vmatpush.msra.mxu3 %v698_v38 }
 0x2f3   : > { %v426_v42 = vld [vmem:[%s7044_s1 + $0x4b8] sm:$0xff]  ;;  %2600 = vmatpush.msra.mxu0 %v298_v6 }
 0x2f4   : > { %v554_v8 = vld [vmem:[%s7044_s1 + $0x8b8] sm:$0xff]  ;;  %2623 = vmatpush.msra.mxu1 %v426_v42 }
 0x2f5   : > { %v690_v59 = vld [vmem:[%s7044_s1 + $0xcf8] sm:$0xff]  ;;  %2646 = vmatpush.msra.mxu2 %v554_v8 }
 0x2f6   : > { %v290_v22 = vld [vmem:[%s7044_s1 + $0x78] sm:$0xff]  ;;  %2668 = vmatpush.msra.mxu3 %v690_v59  ;;  %v6551_v59 = vpop.f32.mrf.mxu1 }
 0x2f7   : > { %v418_v9 = vld [vmem:[%s7044_s1 + $0x478] sm:$0xff]  ;;  %2601 = vmatpush.msra.mxu0 %v290_v22 }
 0x2f8   : > { %v546_v58 = vld [vmem:[%s7044_s1 + $0x878] sm:$0xff]  ;;  %2624 = vmatpush.msra.mxu1 %v418_v9 }
 0x2f9   : > { %v682_v37 = vld [vmem:[%s7044_s1 + $0xcb8] sm:$0xff]  ;;  %2647 = vmatpush.msra.mxu2 %v546_v58 }
 0x2fa   : > { %v282_v52 = vld [vmem:[%s7044_s1 + $0x38] sm:$0xff]  ;;  %2669 = vmatpush.msra.mxu3 %v682_v37 }
 0x2fb   : > { %v410_v30 = vld [vmem:[%s7044_s1 + $0x438] sm:$0xff]  ;;  %2602 = vmatpush.msra.mxu0 %v282_v52 }
 0x2fc   : > { %v538_v38 = vld [vmem:[%s7044_s1 + $0x838] sm:$0xff]  ;;  %2625 = vmatpush.msra.mxu1 %v410_v30  ;;  %2603 = vmatmul.f32.vlgmr.msra.gmra.mxu0 %v6221_v53 }
 0x2fd   : > { %v674_v6 = vld [vmem:[%s7044_s1 + $0xc78] sm:$0xff]  ;;  %2648 = vmatpush.msra.mxu2 %v538_v38  ;;  %2626 = vmatmul.f32.vlgmr.msra.gmra.mxu1 %v6244_v2 }
 0x2fe   : > { %v914_v42 = vld [vmem:[%s7044_s1 + $0x13f8] sm:$0xff]  ;;  %2670 = vmatpush.msra.mxu3 %v674_v6  ;;  %2649 = vmatmul.f32.vlgmr.msra.gmra.mxu2 %v6208_v0 }
 0x2ff   : > { %v1042_v8 = vld [vmem:[%s7044_s1 + $0x17f8] sm:$0xff]  ;;  %2679 = vmatpush.msrb.mxu0 %v914_v42  ;;  %v6577_v42 = vpop.f32.mrf.mxu2 }
 0x300   : > { %v1170_v22 = vld [vmem:[%s7044_s1 + $0x1bf8] sm:$0xff]  ;;  %2702 = vmatpush.msrb.mxu1 %v1042_v8 }
 0x301   : > { %v666_v9 = vld [vmem:[%s7044_s1 + $0xc38] sm:$0xff]  ;;  %2725 = vmatpush.msrb.mxu2 %v1170_v22 }
 0x302   : > { %v906_v58 = vld [vmem:[%s7044_s1 + $0x13b8] sm:$0xff]  ;;  %2671 = vmatpush.msra.mxu3 %v666_v9 }
 0x303   : > { %v1034_v37 = vld [vmem:[%s7044_s1 + $0x17b8] sm:$0xff]  ;;  %2680 = vmatpush.msrb.mxu0 %v906_v58  ;;  %v6591_v58 = vpop.f32.mrf.mxu0  ;;  %2672 = vmatmul.f32.vlgmr.msra.gmra.mxu3 %v6228_v12 }
 0x304   : > { %v1162_v52 = vld [vmem:[%s7044_s1 + $0x1bb8] sm:$0xff]  ;;  %2703 = vmatpush.msrb.mxu1 %v1034_v37  ;;  %2606 = vmatmul.f32.gmra.mxu0 %v6285_v5 }
 0x305   : > { %v1298_v30 = vld [vmem:[%s7044_s1 + $0x1ff8] sm:$0xff]  ;;  %2726 = vmatpush.msrb.mxu2 %v1162_v52  ;;  %2629 = vmatmul.f32.gmra.mxu1 %v6308_v17 }
 0x306   : > { %v898_v38 = vld [vmem:[%s7044_s1 + $0x1378] sm:$0xff]  ;;  %2748 = vmatpush.msrb.mxu3 %v1298_v30  ;;  %2652 = vmatmul.f32.gmra.mxu2 %v6272_v27 }
 0x307   : > { %v1026_v6 = vld [vmem:[%s7044_s1 + $0x1778] sm:$0xff]  ;;  %2681 = vmatpush.msrb.mxu0 %v898_v38  ;;  %v6605_v38 = vpop.f32.mrf.mxu3 }
 0x308   : > { %v1154_v8 = vld [vmem:[%s7044_s1 + $0x1b78] sm:$0xff]  ;;  %2704 = vmatpush.msrb.mxu1 %v1026_v6 }
 0x309   : > { %v1290_v22 = vld [vmem:[%s7044_s1 + $0x1fb8] sm:$0xff]  ;;  %2727 = vmatpush.msrb.mxu2 %v1154_v8 }
 0x30a   : > { %v890_v9 = vld [vmem:[%s7044_s1 + $0x1338] sm:$0xff]  ;;  %2749 = vmatpush.msrb.mxu3 %v1290_v22  ;;  %2705 = vmatpush.msrb.mxu1 %v1018_v24 }
 0x30b   : > { %v1146_v37 = vld [vmem:[%s7044_s1 + $0x1b38] sm:$0xff]  ;;  %2682 = vmatpush.msrb.mxu0 %v890_v9  ;;  %v6619_v9 = vpop.f32.mrf.mxu1  ;;  %2675 = vmatmul.f32.gmra.mxu3 %v6292_v47 }
 0x30c   : > { %v1282_v52 = vld [vmem:[%s7044_s1 + $0x1f78] sm:$0xff]  ;;  %2728 = vmatpush.msrb.mxu2 %v1146_v37  ;;  %2706 = vmatpush.msrb.mxu1 %v1010_v20 }
 0x30d   : > { %v882_v30 = vld [vmem:[%s7044_s1 + $0x12f8] sm:$0xff]  ;;  %2750 = vmatpush.msrb.mxu3 %v1282_v52 }
 0x30e   : > { %v1138_v6 = vld [vmem:[%s7044_s1 + $0x1af8] sm:$0xff]  ;;  %2683 = vmatpush.msrb.mxu0 %v882_v30  ;;  %2707 = vmatpush.msrb.mxu1 %v1002_v48 }
 0x30f   : > { %v1274_v8 = vld [vmem:[%s7044_s1 + $0x1f38] sm:$0xff]  ;;  %2729 = vmatpush.msrb.mxu2 %v1138_v6 }
 0x310   : > { %v874_v22 = vld [vmem:[%s7044_s1 + $0x12b8] sm:$0xff]  ;;  %2751 = vmatpush.msrb.mxu3 %v1274_v8  ;;  %v6642_v8 = vpop.f32.mrf.mxu2  ;;  %2708 = vmatpush.msrb.mxu1 %v994_v3 }
 0x311   : > { %v1130_v24 = vld [vmem:[%s7044_s1 + $0x1ab8] sm:$0xff]  ;;  %2684 = vmatpush.msrb.mxu0 %v874_v22 }
 0x312   : > { %v1266_v37 = vld [vmem:[%s7044_s1 + $0x1ef8] sm:$0xff]  ;;  %2730 = vmatpush.msrb.mxu2 %v1130_v24 }
 0x313   : > { %v866_v52 = vld [vmem:[%s7044_s1 + $0x1278] sm:$0xff]  ;;  %2752 = vmatpush.msrb.mxu3 %v1266_v37  ;;  %v6653_v37 = vpop.f32.mrf.mxu0 }
 0x314   : > { %v1122_v20 = vld [vmem:[%s7044_s1 + $0x1a78] sm:$0xff]  ;;  %2685 = vmatpush.msrb.mxu0 %v866_v52 }
 0x315   : > { %v1258_v30 = vld [vmem:[%s7044_s1 + $0x1eb8] sm:$0xff]  ;;  %2731 = vmatpush.msrb.mxu2 %v1122_v20 }
 0x316   : > { %v858_v6 = vld [vmem:[%s7044_s1 + $0x1238] sm:$0xff]  ;;  %2753 = vmatpush.msrb.mxu3 %v1258_v30  ;;  %v6665_v30 = vpop.f32.mrf.mxu3 }
 0x317   : > { %v986_v48 = vld [vmem:[%s7044_s1 + $0x1638] sm:$0xff]  ;;  %2686 = vmatpush.msrb.mxu0 %v858_v6 }
 0x318   : > { %v1114_v22 = vld [vmem:[%s7044_s1 + $0x1a38] sm:$0xff]  ;;  %2709 = vmatpush.msrb.mxu1 %v986_v48 }
 0x319   : > { %v1250_v24 = vld [vmem:[%s7044_s1 + $0x1e78] sm:$0xff]  ;;  %2732 = vmatpush.msrb.mxu2 %v1114_v22  ;;  %v6678_v22 = vpop.f32.mrf.mxu1 }
 0x31a   : > { %v850_v3 = vld [vmem:[%s7044_s1 + $0x11f8] sm:$0xff]  ;;  %2754 = vmatpush.msrb.mxu3 %v1250_v24 }
 0x31b   : > { %v978_v52 = vld [vmem:[%s7044_s1 + $0x15f8] sm:$0xff]  ;;  %2687 = vmatpush.msrb.mxu0 %v850_v3  ;;  %v2236_v56 = vpop.f32.mrf.mxu0 }
 0x31c   : > { %v1106_v20 = vld [vmem:[%s7044_s1 + $0x19f8] sm:$0xff]  ;;  %2710 = vmatpush.msrb.mxu1 %v978_v52 }
 0x31d   : > { %v1242_v0 = vld [vmem:[%s7044_s1 + $0x1e38] sm:$0xff]  ;;  %2733 = vmatpush.msrb.mxu2 %v1106_v20 }
 0x31e   : > { %v842_v6 = vld [vmem:[%s7044_s1 + $0x11b8] sm:$0xff]  ;;  %2755 = vmatpush.msrb.mxu3 %v1242_v0  ;;  %v6702_v0 = vpop.f32.mrf.mxu2 }
 0x31f   : > { %v970_v48 = vld [vmem:[%s7044_s1 + $0x15b8] sm:$0xff]  ;;  %2688 = vmatpush.msrb.mxu0 %v842_v6 }
 0x320   : > { %v1098_v53 = vld [vmem:[%s7044_s1 + $0x19b8] sm:$0xff]  ;;  %2711 = vmatpush.msrb.mxu1 %v970_v48 }
 0x321   : > { %v1234_v12 = vld [vmem:[%s7044_s1 + $0x1df8] sm:$0xff]  ;;  %2734 = vmatpush.msrb.mxu2 %v1098_v53 }
 0x322   : > { %v834_v24 = vld [vmem:[%s7044_s1 + $0x1178] sm:$0xff]  ;;  %2756 = vmatpush.msrb.mxu3 %v1234_v12 }
 0x323   : > { %v962_v3 = vld [vmem:[%s7044_s1 + $0x1578] sm:$0xff]  ;;  %2689 = vmatpush.msrb.mxu0 %v834_v24 }
 0x324   : > { %v1090_v52 = vld [vmem:[%s7044_s1 + $0x1978] sm:$0xff]  ;;  %2712 = vmatpush.msrb.mxu1 %v962_v3 }
 0x325   : > { %v1226_v20 = vld [vmem:[%s7044_s1 + $0x1db8] sm:$0xff]  ;;  %2735 = vmatpush.msrb.mxu2 %v1090_v52  ;;  %v6723_v52 = vpop.f32.mrf.mxu3 }
 0x326   : > { %v826_v2 = vld [vmem:[%s7044_s1 + $0x1138] sm:$0xff]  ;;  %2757 = vmatpush.msrb.mxu3 %v1226_v20  ;;  %7054 = vst [vmem:[#allocation8_spill] sm:$0xff] %v6723_v52  ;;  %v2259_v20 = vpop.f32.mrf.mxu1 }
 0x327   : > { %v954_v6 = vld [vmem:[%s7044_s1 + $0x1538] sm:$0xff]  ;;  %2690 = vmatpush.msrb.mxu0 %v826_v2  ;;  %v2260_v52 = vadd.f32 %v2259_v20, %v2236_v56  ;;  %v1524_v56 = vadd.f32 %v5056_v62, %v5041_v55 }
 0x328   : > { %v1082_v48 = vld [vmem:[%s7044_s1 + $0x1938] sm:$0xff]  ;;  %2713 = vmatpush.msrb.mxu1 %v954_v6 }
 0x329   : > { %v1218_v53 = vld [vmem:[%s7044_s1 + $0x1d78] sm:$0xff]  ;;  %2736 = vmatpush.msrb.mxu2 %v1082_v48 }
 0x32a   : > { %v818_v12 = vld [vmem:[%s7044_s1 + $0x10f8] sm:$0xff]  ;;  %2758 = vmatpush.msrb.mxu3 %v1218_v53 }
 0x32b   : > { %v946_v24 = vld [vmem:[%s7044_s1 + $0x14f8] sm:$0xff]  ;;  %2691 = vmatpush.msrb.mxu0 %v818_v12  ;;  %v2282_v12 = vpop.f32.mrf.mxu2 }
 0x32c   : > { %v1074_v3 = vld [vmem:[%s7044_s1 + $0x18f8] sm:$0xff]  ;;  %2714 = vmatpush.msrb.mxu1 %v946_v24 }
 0x32d   : > { %v1210_v27 = vld [vmem:[%s7044_s1 + $0x1d38] sm:$0xff]  ;;  %2737 = vmatpush.msrb.mxu2 %v1074_v3 }
 0x32e   : > { %v810_v2 = vld [vmem:[%s7044_s1 + $0x10b8] sm:$0xff]  ;;  %2759 = vmatpush.msrb.mxu3 %v1210_v27 }
 0x32f   : > { %v938_v6 = vld [vmem:[%s7044_s1 + $0x14b8] sm:$0xff]  ;;  %2692 = vmatpush.msrb.mxu0 %v810_v2  ;;  %v2239_v2 = vpop.f32.mrf.mxu0 }
 0x330   : > { %v1066_v5 = vld [vmem:[%s7044_s1 + $0x18b8] sm:$0xff]  ;;  %2715 = vmatpush.msrb.mxu1 %v938_v6 }
 0x331   : > { %v1202_v48 = vld [vmem:[%s7044_s1 + $0x1cf8] sm:$0xff]  ;;  %2738 = vmatpush.msrb.mxu2 %v1066_v5 }
 0x332   : > { %v802_v47 = vld [vmem:[%s7044_s1 + $0x1078] sm:$0xff]  ;;  %2760 = vmatpush.msrb.mxu3 %v1202_v48  ;;  %v2305_v48 = vpop.f32.mrf.mxu3 }
 0x333   : > { %v930_v53 = vld [vmem:[%s7044_s1 + $0x1478] sm:$0xff]  ;;  %2693 = vmatpush.msrb.mxu0 %v802_v47  ;;  %v2285_v62 = vpop.f32.mrf.mxu2 }
 0x334   : > { %v1058_v24 = vld [vmem:[%s7044_s1 + $0x1878] sm:$0xff]  ;;  %2716 = vmatpush.msrb.mxu1 %v930_v53  ;;  %v2076_v53 = vadd.f32 %v6483_v40, %v6457_v32  ;;  %v2825_v32 = vld [vmem:[%s7045_s2 + $0xf0] sm:$0xff]  ;;  %v2079_v40 = vadd.f32 %v6551_v59, %v6523_v61  ;;  %v3194_v61 = vld [vmem:[%s3586_s30 + $0x60] sm:$0xff]  ;;  %v1343_v59 = vadd.f32 %v4900_v19, %v4880_v10 }
 0x335   : > { %v1194_v3 = vld [vmem:[%s7044_s1 + $0x1cb8] sm:$0xff]  ;;  %2739 = vmatpush.msrb.mxu2 %v1058_v24 }
 0x336   : > { %v794_v17 = vld [vmem:[%s7044_s1 + $0x1038] sm:$0xff]  ;;  %2761 = vmatpush.msrb.mxu3 %v1194_v3  ;;  %v1340_v3 = vadd.f32 %v4832_v33, %v4812_v23  ;;  %v2808_v23 = vld [vmem:[%s7045_s2 + $0x68] sm:$0xff]  ;;  %v2099_v33 = vadd.f32 %v6509_v46, %v2076_v53  ;;  %v2102_v19 = vadd.f32 %v6577_v42, %v2079_v40 }
 0x337   : > { %v922_v27 = vld [vmem:[%s7044_s1 + $0x1438] sm:$0xff]  ;;  %2694 = vmatpush.msrb.mxu0 %v794_v17  ;;  %v2262_v17 = vpop.f32.mrf.mxu1  ;;  %v2328_v46 = vpop.f32.mrf.mxu0  ;;  %v2820_v42 = vld [vmem:[%s7045_s2 + $0xc8] sm:$0xff] }
 0x338   : > { %v1050_v6 = vld [vmem:[%s7044_s1 + $0x1838] sm:$0xff]  ;;  %2717 = vmatpush.msrb.mxu1 %v922_v27  ;;  %2695 = vmatmul.f32.vlgmr.msrb.gmra.mxu0 %v6349_v16  ;;  %v2809_v27 = vld [vmem:[%s7045_s2 + $0x70] sm:$0xff]  ;;  %v1363_v55 = vadd.f32 %v4840_v36, %v1340_v3  ;;  %v2807_v16 = vld [vmem:[%s7045_s2 + $0x60] sm:$0xff] }
 0x339   : > { %v1186_v5 = vld [vmem:[%s7044_s1 + $0x1c78] sm:$0xff]  ;;  %2740 = vmatpush.msrb.mxu2 %v1050_v6  ;;  %2859 = vmatpush.msra.mxu0 %v2810_v29  ;;  %v2824_v29 = vld [vmem:[%s7045_s2 + $0xe8] sm:$0xff] }
 0x33a   : > { %v2826_v47 = vld [vmem:[%s7045_s2 + $0xf8] sm:$0xff]  ;;  %2762 = vmatpush.msrb.mxu3 %v1186_v5  ;;  %2741 = vmatmul.f32.vlgmr.msrb.gmra.mxu2 %v6336_v51  ;;  %v2283_v51 = vadd.f32 %v2282_v12, %v2260_v52  ;;  %v2122_v52 = vadd.f32 %v6537_v25, %v2099_v33  ;;  %v2263_v12 = vadd.f32 %v2262_v17, %v2239_v2  ;;  %v2308_v5 = vpop.f32.mrf.mxu3  ;;  %v3195_v2 = vld [vmem:[%s3586_s30 + $0x70] sm:$0xff]  ;;  %v3196_v3 = vld [vmem:[%s3586_s30 + $0x68] sm:$0xff] }
 0x33b   : > { %v1178_v24 = vld [vmem:[%s7044_s1 + $0x1c38] sm:$0xff]  ;;  %2882 = vmatpush.msra.mxu1 %v2826_v47  ;;  %2860 = vmatpush.msra.mxu0 %v2809_v27  ;;  %v1386_v6 = vadd.f32 %v4860_v44, %v1363_v55  ;;  %v1527_v25 = vadd.f32 %v5124_v35, %v5104_v34  ;;  %v2805_v44 = vld [vmem:[%s7045_s2 + $0x50] sm:$0xff]  ;;  %v2804_v27 = vld [vmem:[%s7045_s2 + $0x48] sm:$0xff]  ;;  %v2374_v55 = vpop.f32.mrf.mxu2 }
 0x33c   : > { %2763 = vmatpush.msrb.mxu3 %v1178_v24  ;;  %2718 = vmatmul.f32.vlgmr.msrb.gmra.mxu1 %v6372_v45  ;;  %v1547_v45 = vadd.f32 %v5062_v1, %v1524_v56  ;;  %v2806_v36 = vld [vmem:[%s7045_s2 + $0x58] sm:$0xff]  ;;  %v2306_v20 = vadd.f32 %v2305_v48, %v2283_v51  ;;  %v2821_v48 = vld [vmem:[%s7045_s2 + $0xd0] sm:$0xff]  ;;  %v2145_v35 = vadd.f32 %v6591_v58, %v2122_v52  ;;  %v2840_v58 = vld [vmem:[%s7045_s2 + $0x168] sm:$0xff] }
 0x33d   : > { %2764 = vmatmul.f32.vlgmr.msrb.gmra.mxu3 %v6356_v49  ;;  %2883 = vmatpush.msra.mxu1 %v2825_v32  ;;  %v2823_v49 = vld [vmem:[%s7045_s2 + $0xe0] sm:$0xff]  ;;  %v2822_v1 = vld [vmem:[%s7045_s2 + $0xd8] sm:$0xff]  ;;  %v2841_v34 = vld [vmem:[%s7045_s2 + $0x170] sm:$0xff]  ;;  %v2286_v53 = vadd.f32 %v2285_v62, %v2263_v12  ;;  %v1366_v56 = vadd.f32 %v4908_v60, %v1343_v59  ;;  %v1409_v32 = vadd.f32 %v4938_v14, %v1386_v6 }
 0x33e   : > { %2861 = vmatpush.msra.mxu0 %v2808_v23  ;;  %v1570_v47 = vadd.f32 %v5084_v13, %v1547_v45  ;;  %v2842_v10 = vld [vmem:[%s7045_s2 + $0x178] sm:$0xff]  ;;  %v2329_v24 = vadd.f32 %v2328_v46, %v2306_v20  ;;  %v1550_v23 = vadd.f32 %v5132_v41, %v1527_v25  ;;  %v2803_v51 = vld [vmem:[%s7045_s2 + $0x40] sm:$0xff]  ;;  %v2125_v14 = vadd.f32 %v6605_v38, %v2102_v19  ;;  %v2801_v52 = vld [vmem:[%s7045_s2 + $0x30] sm:$0xff] }
 0x33f   : > { %2884 = vmatpush.msra.mxu1 %v2824_v29  ;;  %v2351_v13 = vpop.f32.mrf.mxu1  ;;  %2905 = vmatpush.msra.mxu2 %v2842_v10  ;;  %v3197_v17 = vld [vmem:[%s3586_s30 + $0x78] sm:$0xff]  ;;  %v2819_v29 = vld [vmem:[%s7045_s2 + $0xc0] sm:$0xff]  ;;  %v2168_v41 = vadd.f32 %v6619_v9, %v2145_v35  ;;  %v1389_v9 = vadd.f32 %v4922_v7, %v1366_v56  ;;  %v1432_v40 = vadd.f32 %v4960_v26, %v1409_v32  ;;  %v2817_v20 = vld [vmem:[%s7045_s2 + $0xb0] sm:$0xff] }
 0x340   : > { %2862 = vmatpush.msra.mxu0 %v2807_v16  ;;  %v1593_v33 = vadd.f32 %v5172_v57, %v1570_v47  ;;  %v2839_v60 = vld [vmem:[%s7045_s2 + $0x160] sm:$0xff]  ;;  %v2309_v57 = vadd.f32 %v2308_v5, %v2286_v53  ;;  %v2352_v62 = vadd.f32 %v2351_v13, %v2329_v24  ;;  %v2802_v16 = vld [vmem:[%s7045_s2 + $0x38] sm:$0xff]  ;;  %v1573_v46 = vadd.f32 %v5152_v21, %v1550_v23  ;;  %v2837_v7 = vld [vmem:[%s7045_s2 + $0x150] sm:$0xff] }
 0x341   : > { %2885 = vmatpush.msra.mxu1 %v2823_v49  ;;  %2698 = vmatmul.f32.gmra.mxu0 %v3194_v61  ;;  %v2818_v45 = vld [vmem:[%s7045_s2 + $0xb8] sm:$0xff]  ;;  %v2331_v49 = vpop.f32.mrf.mxu0  ;;  %v2191_v26 = vadd.f32 %v6642_v8, %v2168_v41  ;;  %v2148_v21 = vadd.f32 %v6653_v37, %v2125_v14  ;;  %v2800_v6 = vld [vmem:[%s7045_s2 + $0x28] sm:$0xff]  ;;  %v1455_v37 = vadd.f32 %v4968_v43, %v1432_v40  ;;  %v2835_v43 = vld [vmem:[%s7045_s2 + $0x140] sm:$0xff] }
 0x342   : > { %2744 = vmatmul.f32.gmra.mxu2 %v3195_v2  ;;  %2863 = vmatpush.msra.mxu0 %v2806_v36  ;;  %v2838_v38 = vld [vmem:[%s7045_s2 + $0x158] sm:$0xff]  ;;  %v1616_v36 = vadd.f32 %v5192_v11, %v1593_v33  ;;  %v2397_v12 = vpop.f32.mrf.mxu3  ;;  %v2375_v11 = vadd.f32 %v2374_v55, %v2352_v62  ;;  %v2816_v5 = vld [vmem:[%s7045_s2 + $0xa8] sm:$0xff]  ;;  %v1412_v59 = vadd.f32 %v4988_v39, %v1389_v9  ;;  %v2799_v2 = vld [vmem:[%s7045_s2 + $0x20] sm:$0xff] }
 0x343   : > { %2886 = vmatpush.msra.mxu1 %v2822_v1  ;;  %2906 = vmatpush.msra.mxu2 %v2841_v34  ;;  %v2332_v1 = vadd.f32 %v2331_v49, %v2309_v57  ;;  %v2836_v8 = vld [vmem:[%s7045_s2 + $0x148] sm:$0xff]  ;;  %v1596_v25 = vadd.f32 %v5226_v31, %v1573_v46  ;;  %v2214_v39 = vadd.f32 %v6665_v30, %v2191_v26  ;;  %v2798_v10 = vld [vmem:[%s7045_s2 + $0x18] sm:$0xff]  ;;  %v2377_v13 = vpop.f32.mrf.mxu2  ;;  %v2797_v24 = vld [vmem:[%s7045_s2 + $0x10] sm:$0xff] }
 0x344   : > { %2721 = vmatmul.f32.gmra.mxu1 %v3196_v3  ;;  %2864 = vmatpush.msra.mxu0 %v2805_v44  ;;  %v1639_v47 = vadd.f32 %v5200_v28, %v1616_v36  ;;  %v2815_v44 = vld [vmem:[%s7045_s2 + $0xa0] sm:$0xff]  ;;  %v2171_v28 = vadd.f32 %v6678_v22, %v2148_v21  ;;  %v2398_v31 = vadd.f32 %v2397_v12, %v2375_v11  ;;  %v2814_v19 = vld [vmem:[%s7045_s2 + $0x98] sm:$0xff]  ;;  %v2813_v3 = vld [vmem:[%s7045_s2 + $0x90] sm:$0xff] }
 0x345   : > { %2767 = vmatmul.f32.gmra.mxu3 %v3197_v17  ;;  %2887 = vmatpush.msra.mxu1 %v2821_v48  ;;  %v2834_v30 = vld [vmem:[%s7045_s2 + $0x138] sm:$0xff]  ;;  %v1478_v22 = vadd.f32 %v4982_v54, %v1455_v37  ;;  %v1435_v34 = vadd.f32 %v5007_v4, %v1412_v59  ;;  %v1619_v53 = vadd.f32 %v5245_v63, %v1596_v25  ;;  %v2833_v54 = vld [vmem:[%s7045_s2 + $0x130] sm:$0xff]  ;;  %v2832_v56 = vld [vmem:[%s7045_s2 + $0x128] sm:$0xff] }
 0x346   : > { %2865 = vmatpush.msra.mxu0 %v2804_v27  ;;  %2907 = vmatpush.msra.mxu2 %v2840_v58  ;;  %v1662_v35 = vadd.f32 %v5214_v18, %v1639_v47  ;;  %v2779_v4 = vmul.f32 %v2214_v39, %v2214_v39  ;;  %v2194_v18 = vadd.f32 %v6702_v0, %v2171_v28  ;;  %v2796_v27 = vld [vmem:[%s7045_s2 + $0x8] sm:$0xff]  ;;  %v2830_v40 = vld [vmem:[%s7045_s2 + $0x118] sm:$0xff]  ;;  %v2829_v46 = vld [vmem:[%s7045_s2 + $0x110] sm:$0xff] }
 0x347   : > { %2888 = vmatpush.msra.mxu1 %v2820_v42  ;;  %v2354_v61 = vpop.f32.mrf.mxu1  ;;  %v2780_v17 = vmul.f32 %v2398_v31, %v2398_v31  ;;  %v2812_v42 = vld [vmem:[%s7045_s2 + $0x88] sm:$0xff]  ;;  %v2771_v32 = vmul.f32 %v1478_v22, %v1478_v22  ;;  %v1458_v0 = vadd.f32 %v5015_v15, %v1435_v34  ;;  %v1642_v33 = vadd.f32 %v5254_v50, %v1619_v53  ;;  %v2831_v15 = vld [vmem:[%s7045_s2 + $0x120] sm:$0xff] }
 0x348   : > { %2866 = vmatpush.msra.mxu0 %v2803_v51  ;;  %2908 = vmatpush.msra.mxu2 %v2839_v60  ;;  %v2355_v48 = vadd.f32 %v2354_v61, %v2332_v1  ;;  %v2772_v23 = vmul.f32 %v1662_v35, %v1662_v35  ;;  %v2795_v51 = vld [vmem:[%s7045_s2] sm:$0xff]  ;;  %v7055_v60 = vld [vmem:[#allocation8_spill] sm:$0xff] }
 0x349   : > { %2889 = vmatpush.msra.mxu1 %v2819_v29  ;;  %v2811_v29 = vld [vmem:[%s7045_s2 + $0x80] sm:$0xff]  ;;  %v2787_v55 = vadd.f32 %v2779_v4, %v2771_v32  ;;  %v2217_v14 = vadd.f32 %v7055_v60, %v2194_v18  ;;  %v2420_v9 = vpop.f32.mrf.mxu0 }
 0x34a   : > { %2867 = vmatpush.msra.mxu0 %v2802_v16  ;;  %2909 = vmatpush.msra.mxu2 %v2838_v38  ;;  %v2378_v63 = vadd.f32 %v2377_v13, %v2355_v48  ;;  %v2400_v58 = vpop.f32.mrf.mxu3  ;;  %v2788_v41 = vadd.f32 %v2780_v17, %v2772_v23  ;;  %v7056_v50 = vld [vmem:[#allocation2_spill] sm:$0xff]  ;;  %v7057_v16 = vld [vmem:[#allocation3_spill] sm:$0xff] }
 0x34b   : > { %2890 = vmatpush.msra.mxu1 %v2818_v45  ;;  %v1481_v62 = vadd.f32 %v7056_v50, %v1458_v0  ;;  %v1665_v45 = vadd.f32 %v7057_v16, %v1642_v33  ;;  %v2783_v49 = vmul.f32 %v2217_v14, %v2217_v14  ;;  %v2466_v21 = vpop.f32.mrf.mxu2  ;;  %v2827_v11 = vld [vmem:[%s7045_s2 + $0x100] sm:$0xff]  ;;  %v2857_v0 = vld [vmem:[%s7045_s2 + $0x1f0] sm:$0xff]  ;;  %v2856_v23 = vld [vmem:[%s7045_s2 + $0x1e8] sm:$0xff] }
 0x34c   : > { %2868 = vmatpush.msra.mxu0 %v2801_v52  ;;  %2910 = vmatpush.msra.mxu2 %v2837_v7  ;;  %v2401_v57 = vadd.f32 %v2400_v58, %v2378_v63  ;;  %v2855_v33 = vld [vmem:[%s7045_s2 + $0x1e0] sm:$0xff]  ;;  %v2850_v14 = vld [vmem:[%s7045_s2 + $0x1b8] sm:$0xff] }
 0x34d   : > { %2891 = vmatpush.msra.mxu1 %v2817_v20  ;;  %v2775_v36 = vmul.f32 %v1481_v62, %v1481_v62  ;;  %v2776_v52 = vmul.f32 %v1665_v45, %v1665_v45  ;;  %v2828_v20 = vld [vmem:[%s7045_s2 + $0x108] sm:$0xff]  ;;  %v2851_v60 = vld [vmem:[%s7045_s2 + $0x1c0] sm:$0xff]  ;;  %v2846_v50 = vld [vmem:[%s7045_s2 + $0x198] sm:$0xff] }
 0x34e   : > { %2869 = vmatpush.msra.mxu0 %v2800_v6  ;;  %2911 = vmatpush.msra.mxu2 %v2836_v8  ;;  %v2784_v38 = vmul.f32 %v2401_v57, %v2401_v57  ;;  %v2848_v57 = vld [vmem:[%s7045_s2 + $0x1a8] sm:$0xff]  ;;  %v2845_v62 = vld [vmem:[%s7045_s2 + $0x190] sm:$0xff] }
 0x34f   : > { %2892 = vmatpush.msra.mxu1 %v2816_v5  ;;  %v2443_v12 = vpop.f32.mrf.mxu1  ;;  %v2791_v7 = vadd.f32 %v2783_v49, %v2775_v36  ;;  %v2844_v45 = vld [vmem:[%s7045_s2 + $0x188] sm:$0xff] }
 0x350   : > { %2870 = vmatpush.msra.mxu0 %v2799_v2  ;;  %2912 = vmatpush.msra.mxu2 %v2835_v43  ;;  %v2792_v26 = vadd.f32 %v2784_v38, %v2776_v52  ;;  %v2444_v6 = vadd.f32 %v2443_v12, %v2420_v9  ;;  %v2843_v38 = vld [vmem:[%s7045_s2 + $0x180] sm:$0xff] }
 0x351   : > { %2893 = vmatpush.msra.mxu1 %v2815_v44  ;;  %v2423_v5 = vpop.f32.mrf.mxu0 }
 0x352   : > { %2871 = vmatpush.msra.mxu0 %v2798_v10  ;;  %2913 = vmatpush.msra.mxu2 %v2834_v30  ;;  %v2489_v1 = vpop.f32.mrf.mxu3  ;;  %v2467_v61 = vadd.f32 %v2466_v21, %v2444_v6  ;;  %v7058_v30 = vld [vmem:[#allocation4_spill] sm:$0xff] }
 0x353   : > { %2894 = vmatpush.msra.mxu1 %v2814_v19  ;;  %v2469_v37 = vpop.f32.mrf.mxu2  ;;  %v2773_v22 = vmul.f32 %v7058_v30, %v7058_v30 }
 0x354   : > { %2872 = vmatpush.msra.mxu0 %v2797_v24  ;;  %2914 = vmatpush.msra.mxu2 %v2833_v54  ;;  %v2490_v59 = vadd.f32 %v2489_v1, %v2467_v61 }
 0x355   : > { %2895 = vmatpush.msra.mxu1 %v2813_v3 }
 0x356   : > { %2873 = vmatpush.msra.mxu0 %v2796_v27  ;;  %2915 = vmatpush.msra.mxu2 %v2832_v56  ;;  %v2858_v27 = vld [vmem:[%s7045_s2 + $0x1f8] sm:$0xff] }
 0x357   : > { %2896 = vmatpush.msra.mxu1 %v2812_v42  ;;  %v2446_v8 = vpop.f32.mrf.mxu1  ;;  %2928 = vmatpush.msra.mxu3 %v2858_v27  ;;  %v7059_v42 = vld [vmem:[#allocation5_spill] sm:$0xff] }
 0x358   : > { %2874 = vmatpush.msra.mxu0 %v2795_v51  ;;  %2916 = vmatpush.msra.mxu2 %v2831_v15  ;;  %v2447_v25 = vadd.f32 %v2446_v8, %v2423_v5  ;;  %v2777_v58 = vmul.f32 %v7059_v42, %v7059_v42  ;;  %v2854_v51 = vld [vmem:[%s7045_s2 + $0x1d8] sm:$0xff]  ;;  %v2847_v15 = vld [vmem:[%s7045_s2 + $0x1a0] sm:$0xff] }
 0x359   : > { %2897 = vmatpush.msra.mxu1 %v2811_v29  ;;  %2875 = vmatmul.f32.vlgmr.msra.gmra.mxu0 %v2787_v55  ;;  %v2512_v2 = vpop.f32.mrf.mxu0  ;;  %v2853_v29 = vld [vmem:[%s7045_s2 + $0x1d0] sm:$0xff]  ;;  %v2852_v55 = vld [vmem:[%s7045_s2 + $0x1c8] sm:$0xff] }
 0x35a   : > { %2898 = vmatmul.f32.vlgmr.msra.gmra.mxu1 %v2788_v41  ;;  %2917 = vmatpush.msra.mxu2 %v2830_v40  ;;  %v2492_v47 = vpop.f32.mrf.mxu3  ;;  %v2513_v44 = vadd.f32 %v2512_v2, %v2490_v59  ;;  %v2470_v43 = vadd.f32 %v2469_v37, %v2447_v25  ;;  %v2849_v41 = vld [vmem:[%s7045_s2 + $0x1b0] sm:$0xff] }
 0x35b   : > { %v2558_v31 = vpop.f32.mrf.mxu2  ;;  %2929 = vmatpush.msra.mxu3 %v2857_v0 }
 0x35c   : > { %2918 = vmatpush.msra.mxu2 %v2829_v46  ;;  %v2493_v10 = vadd.f32 %v2492_v47, %v2470_v43 }
 0x35d   : > { %2930 = vmatpush.msra.mxu3 %v2856_v23 }
 0x35e   : > { %2919 = vmatpush.msra.mxu2 %v2828_v20 }
 0x35f   : > { %v2535_v39 = vpop.f32.mrf.mxu1  ;;  %2931 = vmatpush.msra.mxu3 %v2855_v33 }
 0x360   : > { %2920 = vmatpush.msra.mxu2 %v2827_v11  ;;  %v2536_v28 = vadd.f32 %v2535_v39, %v2513_v44  ;;  %v7060_v39 = vld [vmem:[#allocation6_spill] sm:$0xff] }
 0x361   : > { %2878 = vmatmul.f32.gmra.mxu0 %v2791_v7  ;;  %v2515_v35 = vpop.f32.mrf.mxu0  ;;  %2932 = vmatpush.msra.mxu3 %v2854_v51 }
 0x362   : > { %2901 = vmatmul.f32.gmra.mxu1 %v2792_v26  ;;  %v2559_v48 = vadd.f32 %v2558_v31, %v2536_v28  ;;  %v2581_v19 = vpop.f32.mrf.mxu3  ;;  %v2516_v53 = vadd.f32 %v2515_v35, %v2493_v10  ;;  %v2774_v28 = vmul.f32 %v7060_v39, %v7060_v39 }
 0x363   : > { %v2561_v4 = vpop.f32.mrf.mxu2  ;;  %2933 = vmatpush.msra.mxu3 %v2853_v29 }
 0x364   : > { %v2582_v13 = vadd.f32 %v2581_v19, %v2559_v48 }
 0x365   : > { %2934 = vmatpush.msra.mxu3 %v2852_v55 }
 0x366   : > { %v2781_v34 = vmul.f32 %v2582_v13, %v2582_v13 }
 0x367   : > { %v2538_v3 = vpop.f32.mrf.mxu1  ;;  %2935 = vmatpush.msra.mxu3 %v2851_v60 }
 0x368   : > { %v2789_v24 = vadd.f32 %v2781_v34, %v2773_v22  ;;  %v2539_v54 = vadd.f32 %v2538_v3, %v2516_v53  ;;  %v7061_v34 = vld [vmem:[#allocation7_spill] sm:$0xff] }
 0x369   : > { %2936 = vmatpush.msra.mxu3 %v2850_v14  ;;  %v2778_v35 = vmul.f32 %v7061_v34, %v7061_v34 }
 0x36a   : > { %2921 = vmatmul.f32.vlgmr.msra.gmra.mxu2 %v2789_v24  ;;  %v2562_v18 = vadd.f32 %v2561_v4, %v2539_v54  ;;  %v2584_v17 = vpop.f32.mrf.mxu3 }
 0x36b   : > { %2937 = vmatpush.msra.mxu3 %v2849_v41 }
 0x36c   : > { %v2585_v63 = vadd.f32 %v2584_v17, %v2562_v18 }
 0x36d   : > { %2938 = vmatpush.msra.mxu3 %v2848_v57 }
 0x36e   : > { %v2785_v56 = vmul.f32 %v2585_v63, %v2585_v63 }
 0x36f   : > { %2939 = vmatpush.msra.mxu3 %v2847_v15 }
 0x370   : > { %v2793_v32 = vadd.f32 %v2785_v56, %v2777_v58 }
 0x371   : > { %2940 = vmatpush.msra.mxu3 %v2846_v50 }
 0x372   : > { %2924 = vmatmul.f32.gmra.mxu2 %v2793_v32 }
 0x373   : > { %2941 = vmatpush.msra.mxu3 %v2845_v62 }
 0x375   : > { %2942 = vmatpush.msra.mxu3 %v2844_v45 }
 0x377   : > { %2943 = vmatpush.msra.mxu3 %v2843_v38 }
 0x379   : > { %v2604_v16 = vpop.f32.mrf.mxu0 }
 0x37a   : > { %v2627_v49 = vpop.f32.mrf.mxu1 }
 0x37b   : > { %v2628_v46 = vadd.f32 %v2627_v49, %v2604_v16 }
 0x381   : > { %v2650_v9 = vpop.f32.mrf.mxu2  ;;  %v2607_v40 = vpop.f32.mrf.mxu0 }
 0x382   : > { %v2630_v52 = vpop.f32.mrf.mxu1  ;;  %v2651_v20 = vadd.f32 %v2650_v9, %v2628_v46 }
 0x383   : > { %v2631_v26 = vadd.f32 %v2630_v52, %v2607_v40 }
 0x386   : > { %v2673_v36 = vpop.f32.mrf.mxu3 }
 0x387   : > { %v2674_v7 = vadd.f32 %v2673_v36, %v2651_v20 }
 0x389   : > { %v2653_v12 = vpop.f32.mrf.mxu2 }
 0x38a   : > { %v2654_v5 = vadd.f32 %v2653_v12, %v2631_v26 }
 0x38e   : > { %v2676_v11 = vpop.f32.mrf.mxu3 }
 0x38f   : > { %v2677_v59 = vadd.f32 %v2676_v11, %v2654_v5 }
 0x3b5   : > { %v2696_v21 = vpop.f32.mrf.mxu0 }
 0x3b6   : > { %v2697_v1 = vadd.f32 %v2696_v21, %v2674_v7 }
 0x3b9   : > { %v2719_v6 = vpop.f32.mrf.mxu1 }
 0x3ba   : > { %v2720_v61 = vadd.f32 %v2719_v6, %v2697_v1 }
 0x3bd   : > { %v2742_v8 = vpop.f32.mrf.mxu2 }
 0x3be   : > { %v2743_v37 = vadd.f32 %v2742_v8, %v2720_v61  ;;  %v2699_v47 = vpop.f32.mrf.mxu0 }
 0x3bf   : > { %v2700_v2 = vadd.f32 %v2699_v47, %v2677_v59 }
 0x3c0   : > { %v2765_v25 = vpop.f32.mrf.mxu3 }
 0x3c1   : > { %v2766_v44 = vadd.f32 %v2765_v25, %v2743_v37  ;;  %v2722_v43 = vpop.f32.mrf.mxu1 }
 0x3c2   : > { %v2723_v10 = vadd.f32 %v2722_v43, %v2700_v2 }
 0x3c3   : > { %v2782_v31 = vmul.f32 %v2766_v44, %v2766_v44 }
 0x3c5   : > { %v2790_v48 = vadd.f32 %v2782_v31, %v2774_v28  ;;  %v2745_v19 = vpop.f32.mrf.mxu2 }
 0x3c6   : > { %v2746_v13 = vadd.f32 %v2745_v19, %v2723_v10 }
 0x3c7   : > { %2944 = vmatmul.f32.vlgmr.msra.gmra.mxu3 %v2790_v48 }
 0x3c8   : > { %v2768_v30 = vpop.f32.mrf.mxu3 }
 0x3c9   : > { %v2769_v22 = vadd.f32 %v2768_v30, %v2746_v13 }
 0x3cb   : > { %v2786_v53 = vmul.f32 %v2769_v22, %v2769_v22 }
 0x3cd   : > { %v2794_v24 = vadd.f32 %v2786_v53, %v2778_v35 }
 0x3cf   : > { %2947 = vmatmul.f32.gmra.mxu3 %v2794_v24 }
 0x3d6   : > { %v2876_v3 = vpop.f32.mrf.mxu0 }
 0x3d7   : > { %v2899_v54 = vpop.f32.mrf.mxu1 }
 0x3d8   : > { %v2900_v18 = vadd.f32 %v2899_v54, %v2876_v3 }
 0x3de   : > { %v2879_v42 = vpop.f32.mrf.mxu0 }
 0x3df   : > { %v2902_v58 = vpop.f32.mrf.mxu1 }
 0x3e0   : > { %v2903_v0 = vadd.f32 %v2902_v58, %v2879_v42 }
 0x3ed   : > { %v2922_v4 = vpop.f32.mrf.mxu2 }
 0x3ee   : > { %v2923_v17 = vadd.f32 %v2922_v4, %v2900_v18 }
 0x3f5   : > { %v2925_v32 = vpop.f32.mrf.mxu2 }
 0x3f6   : > { %v2926_v23 = vadd.f32 %v2925_v32, %v2903_v0 }
 0x44a   : > { %v2945_v63 = vpop.f32.mrf.mxu3 }
 0x44b   : > { %v2946_v27 = vadd.f32 %v2945_v63, %v2923_v17 }
 0x44d   : > { %v2951_v56 = vmax.f32 %v2946_v27, 1e-10 }
 0x44f   : > { %3146 = vlog2.f32 %v2951_v56 }
 0x452   : > { %v2948_v33 = vpop.f32.mrf.mxu3 }
 0x453   : > { %v2949_v51 = vadd.f32 %v2948_v33, %v2926_v23 }
 0x455   : > { %v3147_v29 = vpop.eup %3146  ;;  %v2952_v55 = vmax.f32 %v2949_v51, 1e-10 }
 0x456   : > { %v2954_v60 = vmul.f32 0.6931472, %v3147_v29 }
 0x457   : > { %3148 = vlog2.f32 %v2952_v55 }
 0x458   : > { %v2957_v14 = vmul.f32 0.4342945, %v2954_v60 }
 0x45a   : > { %v2959_v41 = vmul.f32 10.0, %v2957_v14 }
 0x45c   : > { %2961 = vst [vmem:[%s250_s24] sm:$0xff] %v2959_v41 }
 0x45d   : > { %v3149_v57 = vpop.eup %3148 }
 0x45e   : > { %v2956_v15 = vmul.f32 0.6931472, %v3149_v57 }
 0x460   : > { %v2958_v50 = vmul.f32 0.4342945, %v2956_v15 }
 0x462   : > { %v2960_v62 = vmul.f32 10.0, %v2958_v50 }
 0x464   : > { %2962 = vst [vmem:[%s250_s24 + $0x8] sm:$0xff] %v2960_v62  ;;  %v2963_v16 = vmax.f32 %v2959_v41, %v2960_v62 }
 0x466   : > { %2964 = vmax.xlane.f32.xlu0 %v2963_v16 }
 0x4d9   : > { %v2965_v45 = vpop.xlane.xlu0 %2964 }
 0x4da   : > { %v2966_v49 = vrot.slane %v2965_v45, 4 }
 0x4dc   : > { %v2967_v38 = vmax.f32 %v2965_v45, %v2966_v49 }
 0x4de   : > { %v2968_v9 = vrot.slane %v2967_v38, 2 }
 0x4e0   : > { %v2969_v40 = vmax.f32 %v2967_v38, %v2968_v9 }
 0x4e2   : > { %v2970_v46 = vrot.slane %v2969_v40, 1 }
 0x4e4   : > { %v2971_v36 = vmax.f32 %v2969_v40, %v2970_v46 }
 0x4e6   : > { %3120 = vpush %v2971_v36 }
 0x517   : > { %s3121_s29 = spop %3120 }
 0x518   : > { %v2973_v52 = vstv %s3121_s29 }
 0x519   : > { %2974 = vst [vmem:[%s258_s28] sm:$0xff] %v2973_v52 }
 0x51a PF: > { %s15_s17 = sadd.s32 1, %s3220_s17   ;;  %s7062_s15 = smov %s3216_s16 }
 0x51b   : > { %p12_p5 = scmp.ge.s32.totalorder %s15_s17, 4   ;;  %s7063_s16 = smov %s7065_s18 }
 0x51d   :  { %14 = sbr.rel (!%p12_p5) target bundleno = 2 (0x2), region = 74 }

</bundles_post_ra>
